<compile_context>
chip_gen: v7x
topology: tpu7x:2x2x1
jax: 0.10.0
libtpu: 0.0.40
codegen_flags: <defaults>
</compile_context>

<pallas_src>
import jax
import jax.numpy as jnp
import numpy as np
from jax.experimental import pallas as pl
from jax.experimental.pallas import tpu as pltpu

B = 2            # batch
L_IN = 100       # input length -> 2 branches * 50 ch * 10 = 1000 fc1 features
N_OUT = 8        # "outputs" argument of Fast1D
LANE_C = 128     # packed channel lanes: x-branch 0:50, y-branch 50:100, zero pad 100:128
MM_DTYPE = jnp.bfloat16   # MXU operand dtype (f32 accumulation) for conv2/3 + FC head


# --------------------------------------------------------------------------
# Fused kernel: ONE grid step processes the whole batch.
#   per item:  conv1(VPU, branch-packed) -> relu -> pool
#              conv2/conv3 (3 accumulated per-tap MXU dots each) -> relu -> pool
#   then:      fc1 (accumulated over the 10 pooled positions, M=B) -> relu
#              fc2 -> argmax   (first-index tie-break, matching torch.max)
# Pooling = shift-max on values + one-hot selection matmul (no scratch round-trip).
# --------------------------------------------------------------------------
def _fast1d_kernel(x_ref, y_ref,
                   w1x_ref, w1y_ref, b1_ref,
                   w2_ref, b2_ref, w3_ref, b3_ref,
                   p1_ref, p2_ref, p3_ref,
                   wfc1_ref, bfc1_ref, wfc2_ref, bfc2_ref,
                   out_ref):
    f32 = jnp.float32
    bsz, lin, _ = x_ref.shape
    C = w1x_ref.shape[1]
    l1 = lin - 2
    p1 = l1 // 2
    l2 = p1 - 2
    p2 = l2 // 2
    l3 = p2 - 2
    p3 = l3 // 2
    n_out = wfc2_ref.shape[1]

    w1x = w1x_ref[...]              # (3, C) f32, x weights in lanes 0:50, else 0
    w1y = w1y_ref[...]              # (3, C) f32, y weights in lanes 50:100, else 0
    b1 = b1_ref[...]
    b2 = b2_ref[...]
    b3 = b3_ref[...]

    def conv_block(pool, w_ref, bias, l_out):
        # Conv1d(50->50, k=3) for both branches: 3 accumulated bf16 MXU dots
        # against block-diagonal (128,128) per-tap weight blocks.
        c = jnp.dot(pool[0:l_out, :].astype(MM_DTYPE), w_ref[0:C, :],
                    preferred_element_type=f32)
        c = c + jnp.dot(pool[1:1 + l_out, :].astype(MM_DTYPE), w_ref[C:2 * C, :],
                        preferred_element_type=f32)
        c = c + jnp.dot(pool[2:2 + l_out, :].astype(MM_DTYPE), w_ref[2 * C:3 * C, :],
                        preferred_element_type=f32)
        return jnp.maximum(c + bias, 0.0)                      # (l_out, C) f32

    def max_pool2(r, sel_ref):
        # max_pool1d(k=2, s=2) along rows, entirely on values:
        #   m[i] = max(r[i], r[i+1]);  pool[j] = m[2j]  via one-hot selection matmul.
        nrow = r.shape[0]
        m = jnp.maximum(r[0:nrow - 1, :], r[1:nrow, :])
        return jnp.dot(sel_ref[...], m.astype(MM_DTYPE),
                       preferred_element_type=f32)             # exact selection

    feats = []
    for b in range(bsz):            # batch folded into one grid step (unrolled -> ILP)
        # hoisted lane-broadcasts: 2 per item instead of 6
        xb = jnp.broadcast_to(x_ref[b], (lin, C))
        yb = jnp.broadcast_to(y_ref[b], (lin, C))

        # ---- stage 1: Conv1d(1 -> 50, k=3), both branches packed on lanes (VPU). ----
        r = xb[0:l1, :] * w1x[0:1, :] + yb[0:l1, :] * w1y[0:1, :]
        r = r + xb[1:1 + l1, :] * w1x[1:2, :] + yb[1:1 + l1, :] * w1y[1:2, :]
        r = r + xb[2:2 + l1, :] * w1x[2:3, :] + yb[2:2 + l1, :] * w1y[2:3, :]
        r = jnp.maximum(r + b1, 0.0)                           # (l1, C)
        pool = max_pool2(r, p1_ref)                            # (p1, C)

        # ---- stages 2 / 3: Conv1d(50 -> 50, k=3) -> relu -> pool. ----
        pool = max_pool2(conv_block(pool, w2_ref, b2, l2), p2_ref)   # (p2, C)
        feat = max_pool2(conv_block(pool, w3_ref, b3, l3), p3_ref)   # (p3, C)
        feats.append(feat)

    # ---- FC head for all batch items at once; fc1 accumulated over positions ----
    # (no sublane->lane flatten / (1,1280) relayout; wfc1 rows are ordered
    #  l*128 + packed_channel to match torch's cat+reshape flatten order).
    acc = None
    for l in range(p3):
        rows_l = jnp.concatenate([f[l:l + 1, :] for f in feats],
                                 axis=0).astype(MM_DTYPE)            # (bsz, C)
        term = jnp.dot(rows_l, wfc1_ref[l * C:(l + 1) * C, :],
                       preferred_element_type=f32)
        acc = term if acc is None else acc + term
    h = jnp.maximum(acc + bfc1_ref[...], 0.0)                        # (bsz, C)
    logits = jnp.dot(h.astype(MM_DTYPE), wfc2_ref[...],
                     preferred_element_type=f32) + bfc2_ref[...]     # (bsz, n_out)

    col = jax.lax.broadcasted_iota(jnp.int32, logits.shape, 1)
    mx = jnp.max(logits, axis=1, keepdims=True)
    idx = jnp.min(jnp.where(logits == mx, col, n_out), axis=1, keepdims=True)
    out_ref[...] = idx.astype(jnp.int32)                             # (bsz, 1)


# --------------------------------------------------------------------------
# One-time parameter re-layout (hoisted out of the per-call forward).
# --------------------------------------------------------------------------
def prepare_params(raw, lin=L_IN):
    f32 = jnp.float32
    C = LANE_C
    n_ch = raw['conv1_x_w'].shape[0]                 # 50
    n_hidden = raw['fc1_w'].shape[0]                 # 50
    n_out = raw['fc2_w'].shape[0]
    p3 = raw['fc1_w'].shape[1] // (2 * n_ch)         # 10

    l1 = lin - 2
    p1 = l1 // 2
    l2 = p1 - 2
    p2 = l2 // 2
    l3 = p2 - 2
    if l3 // 2 != p3:
        raise ValueError("input length incompatible with fc1 feature count")

    # stage-1 (VPU) weights: per-tap rows, branch-masked lane blocks.
    w1x = jnp.zeros((3, C), f32).at[:, 0:n_ch].set(
        jnp.transpose(raw['conv1_x_w'][:, 0, :], (1, 0)))
    w1y = jnp.zeros((3, C), f32).at[:, n_ch:2 * n_ch].set(
        jnp.transpose(raw['conv1_y_w'][:, 0, :], (1, 0)))

    def bias_pack(bx, by):
        return jnp.zeros((1, C), f32).at[0, 0:n_ch].set(bx).at[0, n_ch:2 * n_ch].set(by)

    def conv_tap_blocks(wx, wy):
        # (50,50,3) x 2 -> (3*C, C) bf16: 3 stacked (C,C) per-tap blocks, branches
        # block-diagonal on lanes, zero rows/cols for the pad lanes.
        blocks = []
        for k in range(3):
            blk = (jnp.zeros((C, C), f32)
                   .at[0:n_ch, 0:n_ch].set(jnp.transpose(wx[:, :, k], (1, 0)))
                   .at[n_ch:2 * n_ch, n_ch:2 * n_ch].set(
                       jnp.transpose(wy[:, :, k], (1, 0))))
            blocks.append(blk)
        return jnp.concatenate(blocks, axis=0).astype(MM_DTYPE)

    def pool_select(p, rows):
        # (p, rows) one-hot selection: picks row 2j of the shift-max result.
        m = np.zeros((p, rows), np.float32)
        m[np.arange(p), 2 * np.arange(p)] = 1.0
        return jnp.asarray(m, MM_DTYPE)

    # fc1: permute to row order  l*C + packed_channel  (torch flatten = q*10 + l with
    # channels ordered x then y); pad hidden dim to 128 lanes for a lane-dense h.
    fc1_t = jnp.transpose(raw['fc1_w'].reshape(n_hidden, 2 * n_ch, p3), (2, 1, 0))
    wfc1 = (jnp.zeros((p3, C, C), f32)
            .at[:, 0:2 * n_ch, 0:n_hidden].set(fc1_t)
            .reshape(p3 * C, C).astype(MM_DTYPE))
    bfc1 = jnp.zeros((1, C), f32).at[0, 0:n_hidden].set(raw['fc1_b'])
    wfc2 = (jnp.zeros((C, n_out), f32)
            .at[0:n_hidden, :].set(jnp.transpose(raw['fc2_w'], (1, 0)))
            .astype(MM_DTYPE))
    bfc2 = raw['fc2_b'].reshape(1, n_out).astype(f32)

    return dict(
        w1x=w1x, w1y=w1y,
        b1=bias_pack(raw['conv1_x_b'], raw['conv1_y_b']),
        w2=conv_tap_blocks(raw['conv2_x_w'], raw['conv2_y_w']),
        b2=bias_pack(raw['conv2_x_b'], raw['conv2_y_b']),
        w3=conv_tap_blocks(raw['conv3_x_w'], raw['conv3_y_w']),
        b3=bias_pack(raw['conv3_x_b'], raw['conv3_y_b']),
        p1=pool_select(p1, l1 - 1),
        p2=pool_select(p2, l2 - 1),
        p3=pool_select(p3, l3 - 1),
        wfc1=wfc1, bfc1=bfc1, wfc2=wfc2, bfc2=bfc2)


# --------------------------------------------------------------------------
# Forward wrapper: single fused pallas_call, whole batch in one grid step.
# NOTE: if this forward is invoked repeatedly with the same weights, the prepared
# (bf16) weight dict should be kept resident / reused across calls.
# --------------------------------------------------------------------------
def fast1d_forward(x, y, kp):
    """x, y: (B, 1, L) float32 (PyTorch NCL). Returns (B,) int32 argmax (eval mode)."""
    bsz, _, lin = x.shape
    C = LANE_C
    p3 = kp['wfc1'].shape[0] // C
    if (((lin - 2) // 2 - 2) // 2 - 2) // 2 != p3:
        raise ValueError("input length incompatible with fc1 (expects 1000 flatten feats)")

    # NCL with C==1 -> (B, L, 1): pure relabel, no data movement.
    x_t = x.reshape(bsz, lin, 1)
    y_t = y.reshape(bsz, lin, 1)

    args = (x_t, y_t,
            kp['w1x'], kp['w1y'], kp['b1'],
            kp['w2'], kp['b2'], kp['w3'], kp['b3'],
            kp['p1'], kp['p2'], kp['p3'],
            kp['wfc1'], kp['bfc1'], kp['wfc2'], kp['bfc2'])

    def full(a):
        nd = a.ndim
        return pl.BlockSpec(a.shape, lambda i, _nd=nd: (0,) * _nd)

    out = pl.pallas_call(
        _fast1d_kernel,
        out_shape=jax.ShapeDtypeStruct((bsz, 1), jnp.int32),
        grid_spec=pltpu.PrefetchScalarGridSpec(
            num_scalar_prefetch=0,
            grid=(1,),                               # whole batch folded into ONE step
            in_specs=[full(a) for a in args],
            out_specs=pl.BlockSpec((bsz, 1), lambda i: (0, 0)),
        ),
        compiler_params=pltpu.CompilerParams(
            dimension_semantics=("arbitrary",)),     # single step; no megacore weight dup
    )(*args)
    return out[:, 0]


# --------------------------------------------------------------------------
# Deterministic parameter init (PyTorch-like uniform +-1/sqrt(fan_in)), raw layout.
# --------------------------------------------------------------------------
def init_params(key, outputs):
    names_shapes = [
        ('conv1_x_w', (50, 1, 3)), ('conv1_x_b', (50,)),
        ('conv2_x_w', (50, 50, 3)), ('conv2_x_b', (50,)),
        ('conv3_x_w', (50, 50, 3)), ('conv3_x_b', (50,)),
        ('conv1_y_w', (50, 1, 3)), ('conv1_y_b', (50,)),
        ('conv2_y_w', (50, 50, 3)), ('conv2_y_b', (50,)),
        ('conv3_y_w', (50, 50, 3)), ('conv3_y_b', (50,)),
        ('fc1_w', (50, 1000)), ('fc1_b', (50,)),
        ('fc2_w', (outputs, 50)), ('fc2_b', (outputs,)),
    ]
    keys = jax.random.split(key, len(names_shapes))
    params = {}
    for (name, shape), k in zip(names_shapes, keys):
        fan_in = int(np.prod(shape[1:])) if len(shape) > 1 else shape[0]
        scale = 1.0 / float(np.sqrt(fan_in))
        params[name] = jax.random.uniform(k, shape, jnp.float32, -scale, scale)
    return params


# --------------------------------------------------------------------------
# Pure-JAX reference of the PyTorch eval-mode forward, raw-layout params.
# Matmul operands of conv2/conv3/fc1/fc2 are cast to `mm_dtype` (f32 accumulation)
# to mirror the kernel's bf16 MXU precision; pass mm_dtype=jnp.float32 for the
# exact-f32 model (argmax can differ from the bf16 path only on near-ties).
# --------------------------------------------------------------------------
def ref_forward(x, y, params, mm_dtype=MM_DTYPE):
    f32 = jnp.float32

    def conv1d(inp, w, b, cast):
        kk = w.shape[2]
        lout = inp.shape[2] - kk + 1
        xi, wi = (inp, w) if not cast else (inp.astype(mm_dtype), w.astype(mm_dtype))
        out = jnp.zeros((inp.shape[0], w.shape[0], lout), f32)
        for k in range(kk):
            out = out + jnp.einsum('bcl,oc->bol', xi[:, :, k:k + lout], wi[:, :, k],
                                   preferred_element_type=f32)
        return out + b[None, :, None]

    def relu_pool(t):
        t = jnp.maximum(t, 0.0)
        lp = t.shape[2] // 2
        return jnp.max(t[:, :, :2 * lp].reshape(t.shape[0], t.shape[1], lp, 2), -1)

    def branch(t, pfx):
        t = relu_pool(conv1d(t, params[f'conv1_{pfx}_w'], params[f'conv1_{pfx}_b'], False))
        t = relu_pool(conv1d(t, params[f'conv2_{pfx}_w'], params[f'conv2_{pfx}_b'], True))
        t = relu_pool(conv1d(t, params[f'conv3_{pfx}_w'], params[f'conv3_{pfx}_b'], True))
        return t

    hx, hy = branch(x, 'x'), branch(y, 'y')
    conc = jnp.concatenate([hx, hy], axis=1).reshape(x.shape[0], -1)
    h = jnp.maximum(jnp.dot(conc.astype(mm_dtype), params['fc1_w'].T.astype(mm_dtype),
                            preferred_element_type=f32) + params['fc1_b'], 0.0)
    logits = jnp.dot(h.astype(mm_dtype), params['fc2_w'].T.astype(mm_dtype),
                     preferred_element_type=f32) + params['fc2_b']
    return jnp.argmax(logits, axis=1).astype(jnp.int32)


if __name__ == "__main__":
    key = jax.random.PRNGKey(0)
    kp_key, kx, ky = jax.random.split(key, 3)
    params = init_params(kp_key, N_OUT)
    prepped = prepare_params(params)          # one-time weight re-layout (hoisted)
    x = jax.random.normal(kx, (B, 1, L_IN), jnp.float32)
    y = jax.random.normal(ky, (B, 1, L_IN), jnp.float32)

    fwd = jax.jit(fast1d_forward)
    pred = jax.block_until_ready(fwd(x, y, prepped))
    ref = jax.block_until_ready(ref_forward(x, y, params))   # precision-mirrored ref
    np.testing.assert_array_equal(np.asarray(pred), np.asarray(ref))
    print("KERNEL_OK")
</pallas_src>

<mosaic_0001>
module attributes {stable_mosaic.version = 11 : i64} {
  func.func @_fast1d_kernel(%arg0: i32, %arg1: memref<2x100x1xf32, #tpu.memory_space<vmem>>, %arg2: memref<2x100x1xf32, #tpu.memory_space<vmem>>, %arg3: memref<3x128xf32, #tpu.memory_space<vmem>>, %arg4: memref<3x128xf32, #tpu.memory_space<vmem>>, %arg5: memref<1x128xf32, #tpu.memory_space<vmem>>, %arg6: memref<384x128xbf16, #tpu.memory_space<vmem>>, %arg7: memref<1x128xf32, #tpu.memory_space<vmem>>, %arg8: memref<384x128xbf16, #tpu.memory_space<vmem>>, %arg9: memref<1x128xf32, #tpu.memory_space<vmem>>, %arg10: memref<49x97xbf16, #tpu.memory_space<vmem>>, %arg11: memref<23x46xbf16, #tpu.memory_space<vmem>>, %arg12: memref<10x20xbf16, #tpu.memory_space<vmem>>, %arg13: memref<1280x128xbf16, #tpu.memory_space<vmem>>, %arg14: memref<1x128xf32, #tpu.memory_space<vmem>>, %arg15: memref<128x8xbf16, #tpu.memory_space<vmem>>, %arg16: memref<1x8xf32, #tpu.memory_space<vmem>>, %arg17: memref<2x1xi32, #tpu.memory_space<vmem>>) attributes {dimension_semantics = [#tpu.dimension_semantics<arbitrary>], iteration_bounds = array<i64: 1>, scalar_prefetch = 0 : i64, scratch_operands = 0 : i64, tpu.core_type = #tpu.core_type<tc>, window_params = [{pipeline_mode = #tpu.pipeline_mode<synchronous>, transform_indices = @transform_0, window_bounds = array<i64: 2, 100, 1>}, {pipeline_mode = #tpu.pipeline_mode<synchronous>, transform_indices = @transform_1, window_bounds = array<i64: 2, 100, 1>}, {pipeline_mode = #tpu.pipeline_mode<synchronous>, transform_indices = @transform_2, window_bounds = array<i64: 3, 128>}, {pipeline_mode = #tpu.pipeline_mode<synchronous>, transform_indices = @transform_3, window_bounds = array<i64: 3, 128>}, {pipeline_mode = #tpu.pipeline_mode<synchronous>, transform_indices = @transform_4, window_bounds = array<i64: 1, 128>}, {pipeline_mode = #tpu.pipeline_mode<synchronous>, transform_indices = @transform_5, window_bounds = array<i64: 384, 128>}, {pipeline_mode = #tpu.pipeline_mode<synchronous>, transform_indices = @transform_6, window_bounds = array<i64: 1, 128>}, {pipeline_mode = #tpu.pipeline_mode<synchronous>, transform_indices = @transform_7, window_bounds = array<i64: 384, 128>}, {pipeline_mode = #tpu.pipeline_mode<synchronous>, transform_indices = @transform_8, window_bounds = array<i64: 1, 128>}, {pipeline_mode = #tpu.pipeline_mode<synchronous>, transform_indices = @transform_9, window_bounds = array<i64: 49, 97>}, {pipeline_mode = #tpu.pipeline_mode<synchronous>, transform_indices = @transform_10, window_bounds = array<i64: 23, 46>}, {pipeline_mode = #tpu.pipeline_mode<synchronous>, transform_indices = @transform_11, window_bounds = array<i64: 10, 20>}, {pipeline_mode = #tpu.pipeline_mode<synchronous>, transform_indices = @transform_12, window_bounds = array<i64: 1280, 128>}, {pipeline_mode = #tpu.pipeline_mode<synchronous>, transform_indices = @transform_13, window_bounds = array<i64: 1, 128>}, {pipeline_mode = #tpu.pipeline_mode<synchronous>, transform_indices = @transform_14, window_bounds = array<i64: 128, 8>}, {pipeline_mode = #tpu.pipeline_mode<synchronous>, transform_indices = @transform_15, window_bounds = array<i64: 1, 8>}, {pipeline_mode = #tpu.pipeline_mode<synchronous>, transform_indices = @transform_16, window_bounds = array<i64: 2, 1>}]} {
    %c0 = arith.constant 0 : index
    %c0_0 = arith.constant 0 : index
    %0 = vector.load %arg3[%c0, %c0_0] : memref<3x128xf32, #tpu.memory_space<vmem>>, vector<3x128xf32>
    %c0_1 = arith.constant 0 : index
    %c0_2 = arith.constant 0 : index
    %1 = vector.load %arg4[%c0_1, %c0_2] : memref<3x128xf32, #tpu.memory_space<vmem>>, vector<3x128xf32>
    %c0_3 = arith.constant 0 : index
    %c0_4 = arith.constant 0 : index
    %2 = vector.load %arg5[%c0_3, %c0_4] : memref<1x128xf32, #tpu.memory_space<vmem>>, vector<1x128xf32>
    %c0_5 = arith.constant 0 : index
    %c0_6 = arith.constant 0 : index
    %3 = vector.load %arg7[%c0_5, %c0_6] : memref<1x128xf32, #tpu.memory_space<vmem>>, vector<1x128xf32>
    %c0_7 = arith.constant 0 : index
    %c0_8 = arith.constant 0 : index
    %4 = vector.load %arg9[%c0_7, %c0_8] : memref<1x128xf32, #tpu.memory_space<vmem>>, vector<1x128xf32>
    %c0_9 = arith.constant 0 : index
    %c0_10 = arith.constant 0 : index
    %c0_11 = arith.constant 0 : index
    %5 = vector.load %arg1[%c0_9, %c0_10, %c0_11] : memref<2x100x1xf32, #tpu.memory_space<vmem>>, vector<1x100x1xf32>
    %6 = vector.shape_cast %5 : vector<1x100x1xf32> to vector<100x1xf32>
    %7 = vector.shape_cast %6 : vector<100x1xf32> to vector<100x1xf32>
    %8 = vector.broadcast %7 : vector<100x1xf32> to vector<100x128xf32>
    %c0_12 = arith.constant 0 : index
    %c0_13 = arith.constant 0 : index
    %c0_14 = arith.constant 0 : index
    %9 = vector.load %arg2[%c0_12, %c0_13, %c0_14] : memref<2x100x1xf32, #tpu.memory_space<vmem>>, vector<1x100x1xf32>
    %10 = vector.shape_cast %9 : vector<1x100x1xf32> to vector<100x1xf32>
    %11 = vector.shape_cast %10 : vector<100x1xf32> to vector<100x1xf32>
    %12 = vector.broadcast %11 : vector<100x1xf32> to vector<100x128xf32>
    %13 = vector.extract_strided_slice %8 {offsets = [0, 0], sizes = [98, 128], strides = [1, 1]} : vector<100x128xf32> to vector<98x128xf32>
    %14 = vector.extract_strided_slice %0 {offsets = [0, 0], sizes = [1, 128], strides = [1, 1]} : vector<3x128xf32> to vector<1x128xf32>
    %15 = vector.broadcast %14 : vector<1x128xf32> to vector<98x128xf32>
    %16 = arith.mulf %13, %15 : vector<98x128xf32>
    %17 = vector.extract_strided_slice %12 {offsets = [0, 0], sizes = [98, 128], strides = [1, 1]} : vector<100x128xf32> to vector<98x128xf32>
    %18 = vector.extract_strided_slice %1 {offsets = [0, 0], sizes = [1, 128], strides = [1, 1]} : vector<3x128xf32> to vector<1x128xf32>
    %19 = vector.broadcast %18 : vector<1x128xf32> to vector<98x128xf32>
    %20 = arith.mulf %17, %19 : vector<98x128xf32>
    %21 = arith.addf %16, %20 : vector<98x128xf32>
    %22 = vector.extract_strided_slice %8 {offsets = [1, 0], sizes = [98, 128], strides = [1, 1]} : vector<100x128xf32> to vector<98x128xf32>
    %23 = vector.extract_strided_slice %0 {offsets = [1, 0], sizes = [1, 128], strides = [1, 1]} : vector<3x128xf32> to vector<1x128xf32>
    %24 = vector.broadcast %23 : vector<1x128xf32> to vector<98x128xf32>
    %25 = arith.mulf %22, %24 : vector<98x128xf32>
    %26 = arith.addf %21, %25 : vector<98x128xf32>
    %27 = vector.extract_strided_slice %12 {offsets = [1, 0], sizes = [98, 128], strides = [1, 1]} : vector<100x128xf32> to vector<98x128xf32>
    %28 = vector.extract_strided_slice %1 {offsets = [1, 0], sizes = [1, 128], strides = [1, 1]} : vector<3x128xf32> to vector<1x128xf32>
    %29 = vector.broadcast %28 : vector<1x128xf32> to vector<98x128xf32>
    %30 = arith.mulf %27, %29 : vector<98x128xf32>
    %31 = arith.addf %26, %30 : vector<98x128xf32>
    %32 = vector.extract_strided_slice %8 {offsets = [2, 0], sizes = [98, 128], strides = [1, 1]} : vector<100x128xf32> to vector<98x128xf32>
    %33 = vector.extract_strided_slice %0 {offsets = [2, 0], sizes = [1, 128], strides = [1, 1]} : vector<3x128xf32> to vector<1x128xf32>
    %34 = vector.broadcast %33 : vector<1x128xf32> to vector<98x128xf32>
    %35 = arith.mulf %32, %34 : vector<98x128xf32>
    %36 = arith.addf %31, %35 : vector<98x128xf32>
    %37 = vector.extract_strided_slice %12 {offsets = [2, 0], sizes = [98, 128], strides = [1, 1]} : vector<100x128xf32> to vector<98x128xf32>
    %38 = vector.extract_strided_slice %1 {offsets = [2, 0], sizes = [1, 128], strides = [1, 1]} : vector<3x128xf32> to vector<1x128xf32>
    %39 = vector.broadcast %38 : vector<1x128xf32> to vector<98x128xf32>
    %40 = arith.mulf %37, %39 : vector<98x128xf32>
    %41 = arith.addf %36, %40 : vector<98x128xf32>
    %42 = vector.broadcast %2 : vector<1x128xf32> to vector<98x128xf32>
    %43 = arith.addf %41, %42 : vector<98x128xf32>
    %cst = arith.constant 0.000000e+00 : f32
    %44 = vector.broadcast %cst : f32 to vector<98x128xf32>
    %45 = arith.maximumf %43, %44 : vector<98x128xf32>
    %46 = vector.extract_strided_slice %45 {offsets = [0, 0], sizes = [97, 128], strides = [1, 1]} : vector<98x128xf32> to vector<97x128xf32>
    %47 = vector.extract_strided_slice %45 {offsets = [1, 0], sizes = [97, 128], strides = [1, 1]} : vector<98x128xf32> to vector<97x128xf32>
    %48 = arith.maximumf %46, %47 : vector<97x128xf32>
    %c0_15 = arith.constant 0 : index
    %c0_16 = arith.constant 0 : index
    %49 = vector.load %arg10[%c0_15, %c0_16] : memref<49x97xbf16, #tpu.memory_space<vmem>>, vector<49x97xbf16>
    %50 = arith.truncf %48 : vector<97x128xf32> to vector<97x128xbf16>
    %cst_17 = arith.constant dense<0.000000e+00> : vector<49x128xf32>
    %51 = tpu.matmul %49, %50, %cst_17 {dimension_numbers = #tpu.dot_dimension_numbers<[1], [0], [0], [1], [0, 0, 1, 1], [], []>} : vector<49x97xbf16>, vector<97x128xbf16>, vector<49x128xf32> -> vector<49x128xf32>
    %52 = vector.extract_strided_slice %51 {offsets = [0, 0], sizes = [47, 128], strides = [1, 1]} : vector<49x128xf32> to vector<47x128xf32>
    %53 = arith.truncf %52 : vector<47x128xf32> to vector<47x128xbf16>
    %c0_18 = arith.constant 0 : index
    %c0_19 = arith.constant 0 : index
    %54 = vector.load %arg6[%c0_18, %c0_19] : memref<384x128xbf16, #tpu.memory_space<vmem>>, vector<128x128xbf16>
    %cst_20 = arith.constant dense<0.000000e+00> : vector<47x128xf32>
    %55 = tpu.matmul %53, %54, %cst_20 {dimension_numbers = #tpu.dot_dimension_numbers<[1], [0], [0], [1], [0, 0, 1, 1], [], []>} : vector<47x128xbf16>, vector<128x128xbf16>, vector<47x128xf32> -> vector<47x128xf32>
    %56 = vector.extract_strided_slice %51 {offsets = [1, 0], sizes = [47, 128], strides = [1, 1]} : vector<49x128xf32> to vector<47x128xf32>
    %57 = arith.truncf %56 : vector<47x128xf32> to vector<47x128xbf16>
    %c128 = arith.constant 128 : index
    %c0_21 = arith.constant 0 : index
    %58 = vector.load %arg6[%c128, %c0_21] : memref<384x128xbf16, #tpu.memory_space<vmem>>, vector<128x128xbf16>
    %cst_22 = arith.constant dense<0.000000e+00> : vector<47x128xf32>
    %59 = tpu.matmul %57, %58, %cst_22 {dimension_numbers = #tpu.dot_dimension_numbers<[1], [0], [0], [1], [0, 0, 1, 1], [], []>} : vector<47x128xbf16>, vector<128x128xbf16>, vector<47x128xf32> -> vector<47x128xf32>
    %60 = arith.addf %55, %59 : vector<47x128xf32>
    %61 = vector.extract_strided_slice %51 {offsets = [2, 0], sizes = [47, 128], strides = [1, 1]} : vector<49x128xf32> to vector<47x128xf32>
    %62 = arith.truncf %61 : vector<47x128xf32> to vector<47x128xbf16>
    %c256 = arith.constant 256 : index
    %c0_23 = arith.constant 0 : index
    %63 = vector.load %arg6[%c256, %c0_23] : memref<384x128xbf16, #tpu.memory_space<vmem>>, vector<128x128xbf16>
    %cst_24 = arith.constant dense<0.000000e+00> : vector<47x128xf32>
    %64 = tpu.matmul %62, %63, %cst_24 {dimension_numbers = #tpu.dot_dimension_numbers<[1], [0], [0], [1], [0, 0, 1, 1], [], []>} : vector<47x128xbf16>, vector<128x128xbf16>, vector<47x128xf32> -> vector<47x128xf32>
    %65 = arith.addf %60, %64 : vector<47x128xf32>
    %66 = vector.broadcast %3 : vector<1x128xf32> to vector<47x128xf32>
    %67 = arith.addf %65, %66 : vector<47x128xf32>
    %cst_25 = arith.constant 0.000000e+00 : f32
    %68 = vector.broadcast %cst_25 : f32 to vector<47x128xf32>
    %69 = arith.maximumf %67, %68 : vector<47x128xf32>
    %70 = vector.extract_strided_slice %69 {offsets = [0, 0], sizes = [46, 128], strides = [1, 1]} : vector<47x128xf32> to vector<46x128xf32>
    %71 = vector.extract_strided_slice %69 {offsets = [1, 0], sizes = [46, 128], strides = [1, 1]} : vector<47x128xf32> to vector<46x128xf32>
    %72 = arith.maximumf %70, %71 : vector<46x128xf32>
    %c0_26 = arith.constant 0 : index
    %c0_27 = arith.constant 0 : index
    %73 = vector.load %arg11[%c0_26, %c0_27] : memref<23x46xbf16, #tpu.memory_space<vmem>>, vector<23x46xbf16>
    %74 = arith.truncf %72 : vector<46x128xf32> to vector<46x128xbf16>
    %cst_28 = arith.constant dense<0.000000e+00> : vector<23x128xf32>
    %75 = tpu.matmul %73, %74, %cst_28 {dimension_numbers = #tpu.dot_dimension_numbers<[1], [0], [0], [1], [0, 0, 1, 1], [], []>} : vector<23x46xbf16>, vector<46x128xbf16>, vector<23x128xf32> -> vector<23x128xf32>
    %76 = vector.extract_strided_slice %75 {offsets = [0, 0], sizes = [21, 128], strides = [1, 1]} : vector<23x128xf32> to vector<21x128xf32>
    %77 = arith.truncf %76 : vector<21x128xf32> to vector<21x128xbf16>
    %c0_29 = arith.constant 0 : index
    %c0_30 = arith.constant 0 : index
    %78 = vector.load %arg8[%c0_29, %c0_30] : memref<384x128xbf16, #tpu.memory_space<vmem>>, vector<128x128xbf16>
    %cst_31 = arith.constant dense<0.000000e+00> : vector<21x128xf32>
    %79 = tpu.matmul %77, %78, %cst_31 {dimension_numbers = #tpu.dot_dimension_numbers<[1], [0], [0], [1], [0, 0, 1, 1], [], []>} : vector<21x128xbf16>, vector<128x128xbf16>, vector<21x128xf32> -> vector<21x128xf32>
    %80 = vector.extract_strided_slice %75 {offsets = [1, 0], sizes = [21, 128], strides = [1, 1]} : vector<23x128xf32> to vector<21x128xf32>
    %81 = arith.truncf %80 : vector<21x128xf32> to vector<21x128xbf16>
    %c128_32 = arith.constant 128 : index
    %c0_33 = arith.constant 0 : index
    %82 = vector.load %arg8[%c128_32, %c0_33] : memref<384x128xbf16, #tpu.memory_space<vmem>>, vector<128x128xbf16>
    %cst_34 = arith.constant dense<0.000000e+00> : vector<21x128xf32>
    %83 = tpu.matmul %81, %82, %cst_34 {dimension_numbers = #tpu.dot_dimension_numbers<[1], [0], [0], [1], [0, 0, 1, 1], [], []>} : vector<21x128xbf16>, vector<128x128xbf16>, vector<21x128xf32> -> vector<21x128xf32>
    %84 = arith.addf %79, %83 : vector<21x128xf32>
    %85 = vector.extract_strided_slice %75 {offsets = [2, 0], sizes = [21, 128], strides = [1, 1]} : vector<23x128xf32> to vector<21x128xf32>
    %86 = arith.truncf %85 : vector<21x128xf32> to vector<21x128xbf16>
    %c256_35 = arith.constant 256 : index
    %c0_36 = arith.constant 0 : index
    %87 = vector.load %arg8[%c256_35, %c0_36] : memref<384x128xbf16, #tpu.memory_space<vmem>>, vector<128x128xbf16>
    %cst_37 = arith.constant dense<0.000000e+00> : vector<21x128xf32>
    %88 = tpu.matmul %86, %87, %cst_37 {dimension_numbers = #tpu.dot_dimension_numbers<[1], [0], [0], [1], [0, 0, 1, 1], [], []>} : vector<21x128xbf16>, vector<128x128xbf16>, vector<21x128xf32> -> vector<21x128xf32>
    %89 = arith.addf %84, %88 : vector<21x128xf32>
    %90 = vector.broadcast %4 : vector<1x128xf32> to vector<21x128xf32>
    %91 = arith.addf %89, %90 : vector<21x128xf32>
    %cst_38 = arith.constant 0.000000e+00 : f32
    %92 = vector.broadcast %cst_38 : f32 to vector<21x128xf32>
    %93 = arith.maximumf %91, %92 : vector<21x128xf32>
    %94 = vector.extract_strided_slice %93 {offsets = [0, 0], sizes = [20, 128], strides = [1, 1]} : vector<21x128xf32> to vector<20x128xf32>
    %95 = vector.extract_strided_slice %93 {offsets = [1, 0], sizes = [20, 128], strides = [1, 1]} : vector<21x128xf32> to vector<20x128xf32>
    %96 = arith.maximumf %94, %95 : vector<20x128xf32>
    %c0_39 = arith.constant 0 : index
    %c0_40 = arith.constant 0 : index
    %97 = vector.load %arg12[%c0_39, %c0_40] : memref<10x20xbf16, #tpu.memory_space<vmem>>, vector<10x20xbf16>
    %98 = arith.truncf %96 : vector<20x128xf32> to vector<20x128xbf16>
    %cst_41 = arith.constant dense<0.000000e+00> : vector<10x128xf32>
    %99 = tpu.matmul %97, %98, %cst_41 {dimension_numbers = #tpu.dot_dimension_numbers<[1], [0], [0], [1], [0, 0, 1, 1], [], []>} : vector<10x20xbf16>, vector<20x128xbf16>, vector<10x128xf32> -> vector<10x128xf32>
    %c1 = arith.constant 1 : index
    %c0_42 = arith.constant 0 : index
    %c0_43 = arith.constant 0 : index
    %100 = vector.load %arg1[%c1, %c0_42, %c0_43] : memref<2x100x1xf32, #tpu.memory_space<vmem>>, vector<1x100x1xf32>
    %101 = vector.shape_cast %100 : vector<1x100x1xf32> to vector<100x1xf32>
    %102 = vector.shape_cast %101 : vector<100x1xf32> to vector<100x1xf32>
    %103 = vector.broadcast %102 : vector<100x1xf32> to vector<100x128xf32>
    %c1_44 = arith.constant 1 : index
    %c0_45 = arith.constant 0 : index
    %c0_46 = arith.constant 0 : index
    %104 = vector.load %arg2[%c1_44, %c0_45, %c0_46] : memref<2x100x1xf32, #tpu.memory_space<vmem>>, vector<1x100x1xf32>
    %105 = vector.shape_cast %104 : vector<1x100x1xf32> to vector<100x1xf32>
    %106 = vector.shape_cast %105 : vector<100x1xf32> to vector<100x1xf32>
    %107 = vector.broadcast %106 : vector<100x1xf32> to vector<100x128xf32>
    %108 = vector.extract_strided_slice %103 {offsets = [0, 0], sizes = [98, 128], strides = [1, 1]} : vector<100x128xf32> to vector<98x128xf32>
    %109 = vector.extract_strided_slice %0 {offsets = [0, 0], sizes = [1, 128], strides = [1, 1]} : vector<3x128xf32> to vector<1x128xf32>
    %110 = vector.broadcast %109 : vector<1x128xf32> to vector<98x128xf32>
    %111 = arith.mulf %108, %110 : vector<98x128xf32>
    %112 = vector.extract_strided_slice %107 {offsets = [0, 0], sizes = [98, 128], strides = [1, 1]} : vector<100x128xf32> to vector<98x128xf32>
    %113 = vector.extract_strided_slice %1 {offsets = [0, 0], sizes = [1, 128], strides = [1, 1]} : vector<3x128xf32> to vector<1x128xf32>
    %114 = vector.broadcast %113 : vector<1x128xf32> to vector<98x128xf32>
    %115 = arith.mulf %112, %114 : vector<98x128xf32>
    %116 = arith.addf %111, %115 : vector<98x128xf32>
    %117 = vector.extract_strided_slice %103 {offsets = [1, 0], sizes = [98, 128], strides = [1, 1]} : vector<100x128xf32> to vector<98x128xf32>
    %118 = vector.extract_strided_slice %0 {offsets = [1, 0], sizes = [1, 128], strides = [1, 1]} : vector<3x128xf32> to vector<1x128xf32>
    %119 = vector.broadcast %118 : vector<1x128xf32> to vector<98x128xf32>
    %120 = arith.mulf %117, %119 : vector<98x128xf32>
    %121 = arith.addf %116, %120 : vector<98x128xf32>
    %122 = vector.extract_strided_slice %107 {offsets = [1, 0], sizes = [98, 128], strides = [1, 1]} : vector<100x128xf32> to vector<98x128xf32>
    %123 = vector.extract_strided_slice %1 {offsets = [1, 0], sizes = [1, 128], strides = [1, 1]} : vector<3x128xf32> to vector<1x128xf32>
    %124 = vector.broadcast %123 : vector<1x128xf32> to vector<98x128xf32>
    %125 = arith.mulf %122, %124 : vector<98x128xf32>
    %126 = arith.addf %121, %125 : vector<98x128xf32>
    %127 = vector.extract_strided_slice %103 {offsets = [2, 0], sizes = [98, 128], strides = [1, 1]} : vector<100x128xf32> to vector<98x128xf32>
    %128 = vector.extract_strided_slice %0 {offsets = [2, 0], sizes = [1, 128], strides = [1, 1]} : vector<3x128xf32> to vector<1x128xf32>
    %129 = vector.broadcast %128 : vector<1x128xf32> to vector<98x128xf32>
    %130 = arith.mulf %127, %129 : vector<98x128xf32>
    %131 = arith.addf %126, %130 : vector<98x128xf32>
    %132 = vector.extract_strided_slice %107 {offsets = [2, 0], sizes = [98, 128], strides = [1, 1]} : vector<100x128xf32> to vector<98x128xf32>
    %133 = vector.extract_strided_slice %1 {offsets = [2, 0], sizes = [1, 128], strides = [1, 1]} : vector<3x128xf32> to vector<1x128xf32>
    %134 = vector.broadcast %133 : vector<1x128xf32> to vector<98x128xf32>
    %135 = arith.mulf %132, %134 : vector<98x128xf32>
    %136 = arith.addf %131, %135 : vector<98x128xf32>
    %137 = vector.broadcast %2 : vector<1x128xf32> to vector<98x128xf32>
    %138 = arith.addf %136, %137 : vector<98x128xf32>
    %cst_47 = arith.constant 0.000000e+00 : f32
    %139 = vector.broadcast %cst_47 : f32 to vector<98x128xf32>
    %140 = arith.maximumf %138, %139 : vector<98x128xf32>
    %141 = vector.extract_strided_slice %140 {offsets = [0, 0], sizes = [97, 128], strides = [1, 1]} : vector<98x128xf32> to vector<97x128xf32>
    %142 = vector.extract_strided_slice %140 {offsets = [1, 0], sizes = [97, 128], strides = [1, 1]} : vector<98x128xf32> to vector<97x128xf32>
    %143 = arith.maximumf %141, %142 : vector<97x128xf32>
    %c0_48 = arith.constant 0 : index
    %c0_49 = arith.constant 0 : index
    %144 = vector.load %arg10[%c0_48, %c0_49] : memref<49x97xbf16, #tpu.memory_space<vmem>>, vector<49x97xbf16>
    %145 = arith.truncf %143 : vector<97x128xf32> to vector<97x128xbf16>
    %cst_50 = arith.constant dense<0.000000e+00> : vector<49x128xf32>
    %146 = tpu.matmul %144, %145, %cst_50 {dimension_numbers = #tpu.dot_dimension_numbers<[1], [0], [0], [1], [0, 0, 1, 1], [], []>} : vector<49x97xbf16>, vector<97x128xbf16>, vector<49x128xf32> -> vector<49x128xf32>
    %147 = vector.extract_strided_slice %146 {offsets = [0, 0], sizes = [47, 128], strides = [1, 1]} : vector<49x128xf32> to vector<47x128xf32>
    %148 = arith.truncf %147 : vector<47x128xf32> to vector<47x128xbf16>
    %c0_51 = arith.constant 0 : index
    %c0_52 = arith.constant 0 : index
    %149 = vector.load %arg6[%c0_51, %c0_52] : memref<384x128xbf16, #tpu.memory_space<vmem>>, vector<128x128xbf16>
    %cst_53 = arith.constant dense<0.000000e+00> : vector<47x128xf32>
    %150 = tpu.matmul %148, %149, %cst_53 {dimension_numbers = #tpu.dot_dimension_numbers<[1], [0], [0], [1], [0, 0, 1, 1], [], []>} : vector<47x128xbf16>, vector<128x128xbf16>, vector<47x128xf32> -> vector<47x128xf32>
    %151 = vector.extract_strided_slice %146 {offsets = [1, 0], sizes = [47, 128], strides = [1, 1]} : vector<49x128xf32> to vector<47x128xf32>
    %152 = arith.truncf %151 : vector<47x128xf32> to vector<47x128xbf16>
    %c128_54 = arith.constant 128 : index
    %c0_55 = arith.constant 0 : index
    %153 = vector.load %arg6[%c128_54, %c0_55] : memref<384x128xbf16, #tpu.memory_space<vmem>>, vector<128x128xbf16>
    %cst_56 = arith.constant dense<0.000000e+00> : vector<47x128xf32>
    %154 = tpu.matmul %152, %153, %cst_56 {dimension_numbers = #tpu.dot_dimension_numbers<[1], [0], [0], [1], [0, 0, 1, 1], [], []>} : vector<47x128xbf16>, vector<128x128xbf16>, vector<47x128xf32> -> vector<47x128xf32>
    %155 = arith.addf %150, %154 : vector<47x128xf32>
    %156 = vector.extract_strided_slice %146 {offsets = [2, 0], sizes = [47, 128], strides = [1, 1]} : vector<49x128xf32> to vector<47x128xf32>
    %157 = arith.truncf %156 : vector<47x128xf32> to vector<47x128xbf16>
    %c256_57 = arith.constant 256 : index
    %c0_58 = arith.constant 0 : index
    %158 = vector.load %arg6[%c256_57, %c0_58] : memref<384x128xbf16, #tpu.memory_space<vmem>>, vector<128x128xbf16>
    %cst_59 = arith.constant dense<0.000000e+00> : vector<47x128xf32>
    %159 = tpu.matmul %157, %158, %cst_59 {dimension_numbers = #tpu.dot_dimension_numbers<[1], [0], [0], [1], [0, 0, 1, 1], [], []>} : vector<47x128xbf16>, vector<128x128xbf16>, vector<47x128xf32> -> vector<47x128xf32>
    %160 = arith.addf %155, %159 : vector<47x128xf32>
    %161 = vector.broadcast %3 : vector<1x128xf32> to vector<47x128xf32>
    %162 = arith.addf %160, %161 : vector<47x128xf32>
    %cst_60 = arith.constant 0.000000e+00 : f32
    %163 = vector.broadcast %cst_60 : f32 to vector<47x128xf32>
    %164 = arith.maximumf %162, %163 : vector<47x128xf32>
    %165 = vector.extract_strided_slice %164 {offsets = [0, 0], sizes = [46, 128], strides = [1, 1]} : vector<47x128xf32> to vector<46x128xf32>
    %166 = vector.extract_strided_slice %164 {offsets = [1, 0], sizes = [46, 128], strides = [1, 1]} : vector<47x128xf32> to vector<46x128xf32>
    %167 = arith.maximumf %165, %166 : vector<46x128xf32>
    %c0_61 = arith.constant 0 : index
    %c0_62 = arith.constant 0 : index
    %168 = vector.load %arg11[%c0_61, %c0_62] : memref<23x46xbf16, #tpu.memory_space<vmem>>, vector<23x46xbf16>
    %169 = arith.truncf %167 : vector<46x128xf32> to vector<46x128xbf16>
    %cst_63 = arith.constant dense<0.000000e+00> : vector<23x128xf32>
    %170 = tpu.matmul %168, %169, %cst_63 {dimension_numbers = #tpu.dot_dimension_numbers<[1], [0], [0], [1], [0, 0, 1, 1], [], []>} : vector<23x46xbf16>, vector<46x128xbf16>, vector<23x128xf32> -> vector<23x128xf32>
    %171 = vector.extract_strided_slice %170 {offsets = [0, 0], sizes = [21, 128], strides = [1, 1]} : vector<23x128xf32> to vector<21x128xf32>
    %172 = arith.truncf %171 : vector<21x128xf32> to vector<21x128xbf16>
    %c0_64 = arith.constant 0 : index
    %c0_65 = arith.constant 0 : index
    %173 = vector.load %arg8[%c0_64, %c0_65] : memref<384x128xbf16, #tpu.memory_space<vmem>>, vector<128x128xbf16>
    %cst_66 = arith.constant dense<0.000000e+00> : vector<21x128xf32>
    %174 = tpu.matmul %172, %173, %cst_66 {dimension_numbers = #tpu.dot_dimension_numbers<[1], [0], [0], [1], [0, 0, 1, 1], [], []>} : vector<21x128xbf16>, vector<128x128xbf16>, vector<21x128xf32> -> vector<21x128xf32>
    %175 = vector.extract_strided_slice %170 {offsets = [1, 0], sizes = [21, 128], strides = [1, 1]} : vector<23x128xf32> to vector<21x128xf32>
    %176 = arith.truncf %175 : vector<21x128xf32> to vector<21x128xbf16>
    %c128_67 = arith.constant 128 : index
    %c0_68 = arith.constant 0 : index
    %177 = vector.load %arg8[%c128_67, %c0_68] : memref<384x128xbf16, #tpu.memory_space<vmem>>, vector<128x128xbf16>
    %cst_69 = arith.constant dense<0.000000e+00> : vector<21x128xf32>
    %178 = tpu.matmul %176, %177, %cst_69 {dimension_numbers = #tpu.dot_dimension_numbers<[1], [0], [0], [1], [0, 0, 1, 1], [], []>} : vector<21x128xbf16>, vector<128x128xbf16>, vector<21x128xf32> -> vector<21x128xf32>
    %179 = arith.addf %174, %178 : vector<21x128xf32>
    %180 = vector.extract_strided_slice %170 {offsets = [2, 0], sizes = [21, 128], strides = [1, 1]} : vector<23x128xf32> to vector<21x128xf32>
    %181 = arith.truncf %180 : vector<21x128xf32> to vector<21x128xbf16>
    %c256_70 = arith.constant 256 : index
    %c0_71 = arith.constant 0 : index
    %182 = vector.load %arg8[%c256_70, %c0_71] : memref<384x128xbf16, #tpu.memory_space<vmem>>, vector<128x128xbf16>
    %cst_72 = arith.constant dense<0.000000e+00> : vector<21x128xf32>
    %183 = tpu.matmul %181, %182, %cst_72 {dimension_numbers = #tpu.dot_dimension_numbers<[1], [0], [0], [1], [0, 0, 1, 1], [], []>} : vector<21x128xbf16>, vector<128x128xbf16>, vector<21x128xf32> -> vector<21x128xf32>
    %184 = arith.addf %179, %183 : vector<21x128xf32>
    %185 = vector.broadcast %4 : vector<1x128xf32> to vector<21x128xf32>
    %186 = arith.addf %184, %185 : vector<21x128xf32>
    %cst_73 = arith.constant 0.000000e+00 : f32
    %187 = vector.broadcast %cst_73 : f32 to vector<21x128xf32>
    %188 = arith.maximumf %186, %187 : vector<21x128xf32>
    %189 = vector.extract_strided_slice %188 {offsets = [0, 0], sizes = [20, 128], strides = [1, 1]} : vector<21x128xf32> to vector<20x128xf32>
    %190 = vector.extract_strided_slice %188 {offsets = [1, 0], sizes = [20, 128], strides = [1, 1]} : vector<21x128xf32> to vector<20x128xf32>
    %191 = arith.maximumf %189, %190 : vector<20x128xf32>
    %c0_74 = arith.constant 0 : index
    %c0_75 = arith.constant 0 : index
    %192 = vector.load %arg12[%c0_74, %c0_75] : memref<10x20xbf16, #tpu.memory_space<vmem>>, vector<10x20xbf16>
    %193 = arith.truncf %191 : vector<20x128xf32> to vector<20x128xbf16>
    %cst_76 = arith.constant dense<0.000000e+00> : vector<10x128xf32>
    %194 = tpu.matmul %192, %193, %cst_76 {dimension_numbers = #tpu.dot_dimension_numbers<[1], [0], [0], [1], [0, 0, 1, 1], [], []>} : vector<10x20xbf16>, vector<20x128xbf16>, vector<10x128xf32> -> vector<10x128xf32>
    %195 = vector.extract_strided_slice %99 {offsets = [0, 0], sizes = [1, 128], strides = [1, 1]} : vector<10x128xf32> to vector<1x128xf32>
    %196 = vector.extract_strided_slice %194 {offsets = [0, 0], sizes = [1, 128], strides = [1, 1]} : vector<10x128xf32> to vector<1x128xf32>
    %197 = tpu.concatenate %195, %196 in 0 : vector<1x128xf32>, vector<1x128xf32> -> vector<2x128xf32>
    %198 = arith.truncf %197 : vector<2x128xf32> to vector<2x128xbf16>
    %c0_77 = arith.constant 0 : index
    %c0_78 = arith.constant 0 : index
    %199 = vector.load %arg13[%c0_77, %c0_78] : memref<1280x128xbf16, #tpu.memory_space<vmem>>, vector<128x128xbf16>
    %cst_79 = arith.constant dense<0.000000e+00> : vector<2x128xf32>
    %200 = tpu.matmul %198, %199, %cst_79 {dimension_numbers = #tpu.dot_dimension_numbers<[1], [0], [0], [1], [0, 0, 1, 1], [], []>} : vector<2x128xbf16>, vector<128x128xbf16>, vector<2x128xf32> -> vector<2x128xf32>
    %201 = vector.extract_strided_slice %99 {offsets = [1, 0], sizes = [1, 128], strides = [1, 1]} : vector<10x128xf32> to vector<1x128xf32>
    %202 = vector.extract_strided_slice %194 {offsets = [1, 0], sizes = [1, 128], strides = [1, 1]} : vector<10x128xf32> to vector<1x128xf32>
    %203 = tpu.concatenate %201, %202 in 0 : vector<1x128xf32>, vector<1x128xf32> -> vector<2x128xf32>
    %204 = arith.truncf %203 : vector<2x128xf32> to vector<2x128xbf16>
    %c128_80 = arith.constant 128 : index
    %c0_81 = arith.constant 0 : index
    %205 = vector.load %arg13[%c128_80, %c0_81] : memref<1280x128xbf16, #tpu.memory_space<vmem>>, vector<128x128xbf16>
    %cst_82 = arith.constant dense<0.000000e+00> : vector<2x128xf32>
    %206 = tpu.matmul %204, %205, %cst_82 {dimension_numbers = #tpu.dot_dimension_numbers<[1], [0], [0], [1], [0, 0, 1, 1], [], []>} : vector<2x128xbf16>, vector<128x128xbf16>, vector<2x128xf32> -> vector<2x128xf32>
    %207 = arith.addf %200, %206 : vector<2x128xf32>
    %208 = vector.extract_strided_slice %99 {offsets = [2, 0], sizes = [1, 128], strides = [1, 1]} : vector<10x128xf32> to vector<1x128xf32>
    %209 = vector.extract_strided_slice %194 {offsets = [2, 0], sizes = [1, 128], strides = [1, 1]} : vector<10x128xf32> to vector<1x128xf32>
    %210 = tpu.concatenate %208, %209 in 0 : vector<1x128xf32>, vector<1x128xf32> -> vector<2x128xf32>
    %211 = arith.truncf %210 : vector<2x128xf32> to vector<2x128xbf16>
    %c256_83 = arith.constant 256 : index
    %c0_84 = arith.constant 0 : index
    %212 = vector.load %arg13[%c256_83, %c0_84] : memref<1280x128xbf16, #tpu.memory_space<vmem>>, vector<128x128xbf16>
    %cst_85 = arith.constant dense<0.000000e+00> : vector<2x128xf32>
    %213 = tpu.matmul %211, %212, %cst_85 {dimension_numbers = #tpu.dot_dimension_numbers<[1], [0], [0], [1], [0, 0, 1, 1], [], []>} : vector<2x128xbf16>, vector<128x128xbf16>, vector<2x128xf32> -> vector<2x128xf32>
    %214 = arith.addf %207, %213 : vector<2x128xf32>
    %215 = vector.extract_strided_slice %99 {offsets = [3, 0], sizes = [1, 128], strides = [1, 1]} : vector<10x128xf32> to vector<1x128xf32>
    %216 = vector.extract_strided_slice %194 {offsets = [3, 0], sizes = [1, 128], strides = [1, 1]} : vector<10x128xf32> to vector<1x128xf32>
    %217 = tpu.concatenate %215, %216 in 0 : vector<1x128xf32>, vector<1x128xf32> -> vector<2x128xf32>
    %218 = arith.truncf %217 : vector<2x128xf32> to vector<2x128xbf16>
    %c384 = arith.constant 384 : index
    %c0_86 = arith.constant 0 : index
    %219 = vector.load %arg13[%c384, %c0_86] : memref<1280x128xbf16, #tpu.memory_space<vmem>>, vector<128x128xbf16>
    %cst_87 = arith.constant dense<0.000000e+00> : vector<2x128xf32>
    %220 = tpu.matmul %218, %219, %cst_87 {dimension_numbers = #tpu.dot_dimension_numbers<[1], [0], [0], [1], [0, 0, 1, 1], [], []>} : vector<2x128xbf16>, vector<128x128xbf16>, vector<2x128xf32> -> vector<2x128xf32>
    %221 = arith.addf %214, %220 : vector<2x128xf32>
    %222 = vector.extract_strided_slice %99 {offsets = [4, 0], sizes = [1, 128], strides = [1, 1]} : vector<10x128xf32> to vector<1x128xf32>
    %223 = vector.extract_strided_slice %194 {offsets = [4, 0], sizes = [1, 128], strides = [1, 1]} : vector<10x128xf32> to vector<1x128xf32>
    %224 = tpu.concatenate %222, %223 in 0 : vector<1x128xf32>, vector<1x128xf32> -> vector<2x128xf32>
    %225 = arith.truncf %224 : vector<2x128xf32> to vector<2x128xbf16>
    %c512 = arith.constant 512 : index
    %c0_88 = arith.constant 0 : index
    %226 = vector.load %arg13[%c512, %c0_88] : memref<1280x128xbf16, #tpu.memory_space<vmem>>, vector<128x128xbf16>
    %cst_89 = arith.constant dense<0.000000e+00> : vector<2x128xf32>
    %227 = tpu.matmul %225, %226, %cst_89 {dimension_numbers = #tpu.dot_dimension_numbers<[1], [0], [0], [1], [0, 0, 1, 1], [], []>} : vector<2x128xbf16>, vector<128x128xbf16>, vector<2x128xf32> -> vector<2x128xf32>
    %228 = arith.addf %221, %227 : vector<2x128xf32>
    %229 = vector.extract_strided_slice %99 {offsets = [5, 0], sizes = [1, 128], strides = [1, 1]} : vector<10x128xf32> to vector<1x128xf32>
    %230 = vector.extract_strided_slice %194 {offsets = [5, 0], sizes = [1, 128], strides = [1, 1]} : vector<10x128xf32> to vector<1x128xf32>
    %231 = tpu.concatenate %229, %230 in 0 : vector<1x128xf32>, vector<1x128xf32> -> vector<2x128xf32>
    %232 = arith.truncf %231 : vector<2x128xf32> to vector<2x128xbf16>
    %c640 = arith.constant 640 : index
    %c0_90 = arith.constant 0 : index
    %233 = vector.load %arg13[%c640, %c0_90] : memref<1280x128xbf16, #tpu.memory_space<vmem>>, vector<128x128xbf16>
    %cst_91 = arith.constant dense<0.000000e+00> : vector<2x128xf32>
    %234 = tpu.matmul %232, %233, %cst_91 {dimension_numbers = #tpu.dot_dimension_numbers<[1], [0], [0], [1], [0, 0, 1, 1], [], []>} : vector<2x128xbf16>, vector<128x128xbf16>, vector<2x128xf32> -> vector<2x128xf32>
    %235 = arith.addf %228, %234 : vector<2x128xf32>
    %236 = vector.extract_strided_slice %99 {offsets = [6, 0], sizes = [1, 128], strides = [1, 1]} : vector<10x128xf32> to vector<1x128xf32>
    %237 = vector.extract_strided_slice %194 {offsets = [6, 0], sizes = [1, 128], strides = [1, 1]} : vector<10x128xf32> to vector<1x128xf32>
    %238 = tpu.concatenate %236, %237 in 0 : vector<1x128xf32>, vector<1x128xf32> -> vector<2x128xf32>
    %239 = arith.truncf %238 : vector<2x128xf32> to vector<2x128xbf16>
    %c768 = arith.constant 768 : index
    %c0_92 = arith.constant 0 : index
    %240 = vector.load %arg13[%c768, %c0_92] : memref<1280x128xbf16, #tpu.memory_space<vmem>>, vector<128x128xbf16>
    %cst_93 = arith.constant dense<0.000000e+00> : vector<2x128xf32>
    %241 = tpu.matmul %239, %240, %cst_93 {dimension_numbers = #tpu.dot_dimension_numbers<[1], [0], [0], [1], [0, 0, 1, 1], [], []>} : vector<2x128xbf16>, vector<128x128xbf16>, vector<2x128xf32> -> vector<2x128xf32>
    %242 = arith.addf %235, %241 : vector<2x128xf32>
    %243 = vector.extract_strided_slice %99 {offsets = [7, 0], sizes = [1, 128], strides = [1, 1]} : vector<10x128xf32> to vector<1x128xf32>
    %244 = vector.extract_strided_slice %194 {offsets = [7, 0], sizes = [1, 128], strides = [1, 1]} : vector<10x128xf32> to vector<1x128xf32>
    %245 = tpu.concatenate %243, %244 in 0 : vector<1x128xf32>, vector<1x128xf32> -> vector<2x128xf32>
    %246 = arith.truncf %245 : vector<2x128xf32> to vector<2x128xbf16>
    %c896 = arith.constant 896 : index
    %c0_94 = arith.constant 0 : index
    %247 = vector.load %arg13[%c896, %c0_94] : memref<1280x128xbf16, #tpu.memory_space<vmem>>, vector<128x128xbf16>
    %cst_95 = arith.constant dense<0.000000e+00> : vector<2x128xf32>
    %248 = tpu.matmul %246, %247, %cst_95 {dimension_numbers = #tpu.dot_dimension_numbers<[1], [0], [0], [1], [0, 0, 1, 1], [], []>} : vector<2x128xbf16>, vector<128x128xbf16>, vector<2x128xf32> -> vector<2x128xf32>
    %249 = arith.addf %242, %248 : vector<2x128xf32>
    %250 = vector.extract_strided_slice %99 {offsets = [8, 0], sizes = [1, 128], strides = [1, 1]} : vector<10x128xf32> to vector<1x128xf32>
    %251 = vector.extract_strided_slice %194 {offsets = [8, 0], sizes = [1, 128], strides = [1, 1]} : vector<10x128xf32> to vector<1x128xf32>
    %252 = tpu.concatenate %250, %251 in 0 : vector<1x128xf32>, vector<1x128xf32> -> vector<2x128xf32>
    %253 = arith.truncf %252 : vector<2x128xf32> to vector<2x128xbf16>
    %c1024 = arith.constant 1024 : index
    %c0_96 = arith.constant 0 : index
    %254 = vector.load %arg13[%c1024, %c0_96] : memref<1280x128xbf16, #tpu.memory_space<vmem>>, vector<128x128xbf16>
    %cst_97 = arith.constant dense<0.000000e+00> : vector<2x128xf32>
    %255 = tpu.matmul %253, %254, %cst_97 {dimension_numbers = #tpu.dot_dimension_numbers<[1], [0], [0], [1], [0, 0, 1, 1], [], []>} : vector<2x128xbf16>, vector<128x128xbf16>, vector<2x128xf32> -> vector<2x128xf32>
    %256 = arith.addf %249, %255 : vector<2x128xf32>
    %257 = vector.extract_strided_slice %99 {offsets = [9, 0], sizes = [1, 128], strides = [1, 1]} : vector<10x128xf32> to vector<1x128xf32>
    %258 = vector.extract_strided_slice %194 {offsets = [9, 0], sizes = [1, 128], strides = [1, 1]} : vector<10x128xf32> to vector<1x128xf32>
    %259 = tpu.concatenate %257, %258 in 0 : vector<1x128xf32>, vector<1x128xf32> -> vector<2x128xf32>
    %260 = arith.truncf %259 : vector<2x128xf32> to vector<2x128xbf16>
    %c1152 = arith.constant 1152 : index
    %c0_98 = arith.constant 0 : index
    %261 = vector.load %arg13[%c1152, %c0_98] : memref<1280x128xbf16, #tpu.memory_space<vmem>>, vector<128x128xbf16>
    %cst_99 = arith.constant dense<0.000000e+00> : vector<2x128xf32>
    %262 = tpu.matmul %260, %261, %cst_99 {dimension_numbers = #tpu.dot_dimension_numbers<[1], [0], [0], [1], [0, 0, 1, 1], [], []>} : vector<2x128xbf16>, vector<128x128xbf16>, vector<2x128xf32> -> vector<2x128xf32>
    %263 = arith.addf %256, %262 : vector<2x128xf32>
    %c0_100 = arith.constant 0 : index
    %c0_101 = arith.constant 0 : index
    %264 = vector.load %arg14[%c0_100, %c0_101] : memref<1x128xf32, #tpu.memory_space<vmem>>, vector<1x128xf32>
    %265 = vector.broadcast %264 : vector<1x128xf32> to vector<2x128xf32>
    %266 = arith.addf %263, %265 : vector<2x128xf32>
    %cst_102 = arith.constant 0.000000e+00 : f32
    %267 = vector.broadcast %cst_102 : f32 to vector<2x128xf32>
    %268 = arith.maximumf %266, %267 : vector<2x128xf32>
    %269 = arith.truncf %268 : vector<2x128xf32> to vector<2x128xbf16>
    %c0_103 = arith.constant 0 : index
    %c0_104 = arith.constant 0 : index
    %270 = vector.load %arg15[%c0_103, %c0_104] : memref<128x8xbf16, #tpu.memory_space<vmem>>, vector<128x8xbf16>
    %cst_105 = arith.constant dense<0.000000e+00> : vector<2x8xf32>
    %271 = tpu.matmul %269, %270, %cst_105 {dimension_numbers = #tpu.dot_dimension_numbers<[1], [0], [0], [1], [0, 0, 1, 1], [], []>} : vector<2x128xbf16>, vector<128x8xbf16>, vector<2x8xf32> -> vector<2x8xf32>
    %c0_106 = arith.constant 0 : index
    %c0_107 = arith.constant 0 : index
    %272 = vector.load %arg16[%c0_106, %c0_107] : memref<1x8xf32, #tpu.memory_space<vmem>>, vector<1x8xf32>
    %273 = vector.broadcast %272 : vector<1x8xf32> to vector<2x8xf32>
    %274 = arith.addf %271, %273 : vector<2x8xf32>
    %275 = tpu.iota {dimensions = array<i32: 1>} : vector<2x8xi32>
    %cst_108 = arith.constant dense<0xFF800000> : vector<2xf32>
    %276 = vector.multi_reduction <maximumf>, %274, %cst_108 [1] : vector<2x8xf32> to vector<2xf32>
    %277 = vector.shape_cast %276 : vector<2xf32> to vector<2x1xf32>
    %278 = vector.broadcast %277 : vector<2x1xf32> to vector<2x8xf32>
    %279 = arith.cmpf oeq, %274, %278 : vector<2x8xf32>
    %c8_i32 = arith.constant 8 : i32
    %280 = vector.broadcast %c8_i32 : i32 to vector<2x8xi32>
    %281 = arith.select %279, %275, %280 : vector<2x8xi1>, vector<2x8xi32>
    %cst_109 = arith.constant dense<2147483647> : vector<2xi32>
    %282 = vector.multi_reduction <minsi>, %281, %cst_109 [1] : vector<2x8xi32> to vector<2xi32>
    %283 = vector.shape_cast %282 : vector<2xi32> to vector<2x1xi32>
    %c0_110 = arith.constant 0 : index
    %c0_111 = arith.constant 0 : index
    %284 = vector.load %arg17[%c0_110, %c0_111] : memref<2x1xi32, #tpu.memory_space<vmem>>, vector<2x1xi32>
    tpu.vector_store %arg17[%c0_110, %c0_111], %283 {strides = array<i32>} : memref<2x1xi32, #tpu.memory_space<vmem>>, vector<2x1xi32>,
    return
  }
  func.func @transform_0(%arg0: i32) -> (i32, i32, i32) {
    %c0_i32 = arith.constant 0 : i32
    %c0_i32_0 = arith.constant 0 : i32
    %c0_i32_1 = arith.constant 0 : i32
    %c0_i32_2 = arith.constant 0 : i32
    return %c0_i32, %c0_i32_0, %c0_i32_1 : i32, i32, i32
  }
  func.func @transform_1(%arg0: i32) -> (i32, i32, i32) {
    %c0_i32 = arith.constant 0 : i32
    %c0_i32_0 = arith.constant 0 : i32
    %c0_i32_1 = arith.constant 0 : i32
    %c0_i32_2 = arith.constant 0 : i32
    return %c0_i32, %c0_i32_0, %c0_i32_1 : i32, i32, i32
  }
  func.func @transform_2(%arg0: i32) -> (i32, i32) {
    %c0_i32 = arith.constant 0 : i32
    %c0_i32_0 = arith.constant 0 : i32
    %c0_i32_1 = arith.constant 0 : i32
    return %c0_i32, %c0_i32_0 : i32, i32
  }
  func.func @transform_3(%arg0: i32) -> (i32, i32) {
    %c0_i32 = arith.constant 0 : i32
    %c0_i32_0 = arith.constant 0 : i32
    %c0_i32_1 = arith.constant 0 : i32
    return %c0_i32, %c0_i32_0 : i32, i32
  }
  func.func @transform_4(%arg0: i32) -> (i32, i32) {
    %c0_i32 = arith.constant 0 : i32
    %c0_i32_0 = arith.constant 0 : i32
    %c0_i32_1 = arith.constant 0 : i32
    return %c0_i32, %c0_i32_0 : i32, i32
  }
  func.func @transform_5(%arg0: i32) -> (i32, i32) {
    %c0_i32 = arith.constant 0 : i32
    %c0_i32_0 = arith.constant 0 : i32
    %c0_i32_1 = arith.constant 0 : i32
    return %c0_i32, %c0_i32_0 : i32, i32
  }
  func.func @transform_6(%arg0: i32) -> (i32, i32) {
    %c0_i32 = arith.constant 0 : i32
    %c0_i32_0 = arith.constant 0 : i32
    %c0_i32_1 = arith.constant 0 : i32
    return %c0_i32, %c0_i32_0 : i32, i32
  }
  func.func @transform_7(%arg0: i32) -> (i32, i32) {
    %c0_i32 = arith.constant 0 : i32
    %c0_i32_0 = arith.constant 0 : i32
    %c0_i32_1 = arith.constant 0 : i32
    return %c0_i32, %c0_i32_0 : i32, i32
  }
  func.func @transform_8(%arg0: i32) -> (i32, i32) {
    %c0_i32 = arith.constant 0 : i32
    %c0_i32_0 = arith.constant 0 : i32
    %c0_i32_1 = arith.constant 0 : i32
    return %c0_i32, %c0_i32_0 : i32, i32
  }
  func.func @transform_9(%arg0: i32) -> (i32, i32) {
    %c0_i32 = arith.constant 0 : i32
    %c0_i32_0 = arith.constant 0 : i32
    %c0_i32_1 = arith.constant 0 : i32
    return %c0_i32, %c0_i32_0 : i32, i32
  }
  func.func @transform_10(%arg0: i32) -> (i32, i32) {
    %c0_i32 = arith.constant 0 : i32
    %c0_i32_0 = arith.constant 0 : i32
    %c0_i32_1 = arith.constant 0 : i32
    return %c0_i32, %c0_i32_0 : i32, i32
  }
  func.func @transform_11(%arg0: i32) -> (i32, i32) {
    %c0_i32 = arith.constant 0 : i32
    %c0_i32_0 = arith.constant 0 : i32
    %c0_i32_1 = arith.constant 0 : i32
    return %c0_i32, %c0_i32_0 : i32, i32
  }
  func.func @transform_12(%arg0: i32) -> (i32, i32) {
    %c0_i32 = arith.constant 0 : i32
    %c0_i32_0 = arith.constant 0 : i32
    %c0_i32_1 = arith.constant 0 : i32
    return %c0_i32, %c0_i32_0 : i32, i32
  }
  func.func @transform_13(%arg0: i32) -> (i32, i32) {
    %c0_i32 = arith.constant 0 : i32
    %c0_i32_0 = arith.constant 0 : i32
    %c0_i32_1 = arith.constant 0 : i32
    return %c0_i32, %c0_i32_0 : i32, i32
  }
  func.func @transform_14(%arg0: i32) -> (i32, i32) {
    %c0_i32 = arith.constant 0 : i32
    %c0_i32_0 = arith.constant 0 : i32
    %c0_i32_1 = arith.constant 0 : i32
    return %c0_i32, %c0_i32_0 : i32, i32
  }
  func.func @transform_15(%arg0: i32) -> (i32, i32) {
    %c0_i32 = arith.constant 0 : i32
    %c0_i32_0 = arith.constant 0 : i32
    %c0_i32_1 = arith.constant 0 : i32
    return %c0_i32, %c0_i32_0 : i32, i32
  }
  func.func @transform_16(%arg0: i32) -> (i32, i32) {
    %c0_i32 = arith.constant 0 : i32
    %c0_i32_0 = arith.constant 0 : i32
    %c0_i32_1 = arith.constant 0 : i32
    return %c0_i32, %c0_i32_0 : i32, i32
  }
}

</mosaic_0001>

<bundles_post_ra>
// kernel: fast1d_forward.1
= control target key start
LH: loop header
LB: loop body
LE: loop exit
PB: predicated region body
PF: predicated region fallthrough
CT: control target
= control target key end

     0   :  { %s7450_s0 = inlined_call_operand.vmem [shape: f32[2,100,1], index: 0, kind: input, shape index: {}]   ;;  %s7451_s1 = inlined_call_operand.vmem [shape: f32[2,100,1], index: 1, kind: input, shape index: {}]   ;;  %s7452_s2 = inlined_call_operand.vmem [shape: f32[3,128], index: 2, kind: input, shape index: {}]   ;;  %s7453_s3 = inlined_call_operand.vmem [shape: f32[3,128], index: 3, kind: input, shape index: {}]   ;;  %s7454_s4 = inlined_call_operand.vmem [shape: f32[1,128], index: 4, kind: input, shape index: {}]   ;;  %s7455_s5 = inlined_call_operand.vmem [shape: bf16[384,128], index: 5, kind: input, shape index: {}]   ;;  %s7456_s6 = inlined_call_operand.vmem [shape: f32[1,128], index: 6, kind: input, shape index: {}]   ;;  %s7457_s7 = inlined_call_operand.vmem [shape: bf16[384,128], index: 7, kind: input, shape index: {}]   ;;  %s7458_s8 = inlined_call_operand.vmem [shape: f32[1,128], index: 8, kind: input, shape index: {}]   ;;  %s7459_s9 = inlined_call_operand.vmem [shape: bf16[49,97], index: 9, kind: input, shape index: {}]   ;;  %s7460_s10 = inlined_call_operand.vmem [shape: bf16[23,46], index: 10, kind: input, shape index: {}]   ;;  %s7461_s11 = inlined_call_operand.vmem [shape: bf16[10,20], index: 11, kind: input, shape index: {}]   ;;  %s7462_s12 = inlined_call_operand.hbm [shape: bf16[1280,128], index: 12, kind: input, shape index: {}]   ;;  %s7463_s13 = inlined_call_operand.vmem [shape: f32[1,128], index: 13, kind: input, shape index: {}]   ;;  %s7464_s14 = inlined_call_operand.vmem [shape: bf16[128,8], index: 14, kind: input, shape index: {}]   ;;  %s7465_s15 = inlined_call_operand.vmem [shape: f32[1,8], index: 15, kind: input, shape index: {}]   ;;  %s7466_s16 = inlined_call_operand.vmem [shape: s32[2,1], index: 16, kind: output, shape index: {}]  }
   0x1   :  { %7473 = sst [smem:[#allocation5_spill]] %s7450_s0 }
   0x2   :  { %21 = vsyncpa [#allocation3], 0  ;;  %s5537_s21 = smov [#allocation2]   ;;  %s5513_s25 = scalar_lea.hbm %s7462_s12, 10240 }
   0x3   :  { %s51_s22 = sshll.u32 %s5537_s21, 4  ;;  %p5514_p0 = scmp.ne.s32.totalorder %s7462_s12, %s5513_s25  ;;  %s52_s22 = int_to_ptr.vmem [resolvable:$true] %s51_s22 }
   0x4   :  { %p5517_p1 = scmp.lt.u32.totalorder %s5513_s25, %s7462_s12 }
   0x6   :  { %p5519_p2 = pnand %p5517_p1, %p5514_p0 }
   0x8   :  { %5522 = shalt.err (!%p5519_p2)
}
   0x9   :  { %s5523_s30 = scalar_lea.vmem %s52_s22, 10240  ;;  %p5528_p4 = scmp.lt.s32.totalorder %s52_s22, %s52_s22 }
   0xa   :  { %p5524_p3 = scmp.ne.s32.totalorder %s52_s22, %s5523_s30  ;;  %p5529_p5 = scmp.lt.s32.totalorder %s5523_s30, %s5523_s30 }
   0xc   :  { %p5530_p6 = por %p5529_p5, %p5528_p4 }
   0xe   :  { %p5531_p7 = pnand %p5530_p6, %p5524_p3 }
  0x10   :  { %5534 = shalt.err (!%p5531_p7)
}
  0x11   :  { %s5538_s0 = smov 64   ;;  %s5539_s17 = smov 4  }
  0x12   :  { %57 = dma.hbm_to_vmem [thread:$0]  %s7462_s12, 10240, %s52_s22, [#allocation3], %s5538_s0, %s5538_s0, %s5539_s17  }
  0x13   :  { %5535 = dma.done.wait [#allocation3], 10240  }
  0x14   :  { %5536 = vsyncadd [#allocation3], 4294957056  ;;  %v7469_v0 = vmov 0   ;;  %s7474_s23 = sld [smem:[#allocation5_spill]]  ;;  %v87_v5 = vld [vmem:[%s7451_s1 + $0x8] sm:$0xff]  ;;  %v86_v6 = vld [vmem:[%s7451_s1] sm:$0xff]  ;;  %v7468_v56 = vlaneseq }
  0x15   :  { %5323 = vset.pattern.permute.xlu1 %v7469_v0  ;;  %5322 = vset.pattern.permute.xlu0 %v7469_v0  ;;  %v89_v7 = vld [vmem:[%s7451_s1 + $0x18] sm:$0xff]  ;;  %v88_v8 = vld [vmem:[%s7451_s1 + $0x10] sm:$0xff]  ;;  %v91_v11 = vld [vmem:[%s7451_s1 + $0x28] sm:$0xff]  ;;  %vm730_vm0 = vcmask 793600   ;;  %vm469_vm1 = vcmask 1045504   ;;  %vm306_vm2 = vcmask 1046528  }
  0x16   :  { %v90_v12 = vld [vmem:[%s7451_s1 + $0x20] sm:$0xff]  ;;  %v93_v15 = vld [vmem:[%s7451_s1 + $0x38] sm:$0xff]  ;;  %v92_v16 = vld [vmem:[%s7451_s1 + $0x30] sm:$0xff]  ;;  %v165_v59 = vshrl.u32 %v7468_v56, 7  ;;  %vm743_vm3 = vcmask 1040384   ;;  %vm5542_vm4 = vmmov 0  }
  0x17   :  { %v95_v19 = vld [vmem:[%s7451_s1 + $0x48] sm:$0xff]  ;;  %v94_v20 = vld [vmem:[%s7451_s1 + $0x40] sm:$0xff]  ;;  %v97_v23 = vld [vmem:[%s7451_s1 + $0x58] sm:$0xff]  ;;  %vm848_vm5 = vsmask.f32 7424  ;;  %vm1289_vm6 = vcmask 375808  }
  0x18   :  { %v96_v24 = vld [vmem:[%s7451_s1 + $0x50] sm:$0xff]  ;;  %v98_v25 = vld [vmem:[%s7451_s1 + $0x60] sm:$0xf]  ;;  %v4353_v32 = vld [vmem:[%s7451_s1 + $0x68] sm:$0xff]  ;;  %v278_v62 = vsub.s32 1, %v165_v59  ;;  %v441_v63 = vsub.s32 2, %v165_v59 }
  0x19   :  { %v4354_v31 = vld [vmem:[%s7451_s1 + $0x70] sm:$0xff]  ;;  %v4356_v33 = vld [vmem:[%s7451_s1 + $0x80] sm:$0xff]  ;;  %v4355_v34 = vld [vmem:[%s7451_s1 + $0x78] sm:$0xff]  ;;  %vm1751_vm7 = vcmask 1041408   ;;  %vm1747_vm8 = vcmask 162816   ;;  %vm4247_vm9 = vcmask 58368  }
  0x1a   :  { %v75_v1 = vld [vmem:[%s7474_s23 + $0x10] sm:$0xff]  ;;  %v73_v2 = vld [vmem:[%s7474_s23] sm:$0xff]  ;;  %v76_v3 = vld [vmem:[%s7474_s23 + $0x18] sm:$0xff]  ;;  %vm4268_vm12 = vcmask 1024  }
  0x1b   :  { %111 = vperm.xlu1 %5323, %v75_v1   ;;  %101 = vperm.xlu0 %5322, %v73_v2   ;;  %v74_v4 = vld [vmem:[%s7474_s23 + $0x8] sm:$0xff]  ;;  %v77_v10 = vld [vmem:[%s7474_s23 + $0x20] sm:$0xff]  ;;  %v80_v13 = vld [vmem:[%s7474_s23 + $0x38] sm:$0xff]  ;;  %v166_v2 = vsub.s32 0, %v165_v59 }
  0x1c   :  { %v78_v9 = vld [vmem:[%s7474_s23 + $0x28] sm:$0xff]  ;;  %v79_v14 = vld [vmem:[%s7474_s23 + $0x30] sm:$0xff]  ;;  %v81_v18 = vld [vmem:[%s7474_s23 + $0x40] sm:$0xff] }
  0x1d   :  { %v82_v17 = vld [vmem:[%s7474_s23 + $0x48] sm:$0xff]  ;;  %v84_v21 = vld [vmem:[%s7474_s23 + $0x58] sm:$0xff]  ;;  %v83_v22 = vld [vmem:[%s7474_s23 + $0x50] sm:$0xff] }
  0x1e   :  { %v85_v26 = vld [vmem:[%s7474_s23 + $0x60] sm:$0xf]  ;;  %v4341_v27 = vld [vmem:[%s7474_s23 + $0x70] sm:$0xff]  ;;  %v4340_v28 = vld [vmem:[%s7474_s23 + $0x68] sm:$0xff] }
  0x1f   :  { %116 = vperm.xlu1 %5323, %v76_v3   ;;  %106 = vperm.xlu0 %5322, %v74_v4   ;;  %v4343_v29 = vld [vmem:[%s7474_s23 + $0x80] sm:$0xff]  ;;  %v4342_v30 = vld [vmem:[%s7474_s23 + $0x78] sm:$0xff]  ;;  %v4345_v35 = vld [vmem:[%s7474_s23 + $0x90] sm:$0xff] }
  0x20   :  { %v4344_v36 = vld [vmem:[%s7474_s23 + $0x88] sm:$0xff]  ;;  %v4358_v37 = vld [vmem:[%s7451_s1 + $0x90] sm:$0xff]  ;;  %v4347_v39 = vld [vmem:[%s7474_s23 + $0xa0] sm:$0xff] }
  0x21   :  { %v4357_v38 = vld [vmem:[%s7451_s1 + $0x88] sm:$0xff]  ;;  %v4346_v40 = vld [vmem:[%s7474_s23 + $0x98] sm:$0xff]  ;;  %v4360_v41 = vld [vmem:[%s7451_s1 + $0xa0] sm:$0xff] }
  0x22   :  { %v4359_v42 = vld [vmem:[%s7451_s1 + $0x98] sm:$0xff]  ;;  %v4349_v43 = vld [vmem:[%s7474_s23 + $0xb0] sm:$0xff]  ;;  %v4348_v44 = vld [vmem:[%s7474_s23 + $0xa8] sm:$0xff] }
  0x23   :  { %188 = vperm.xlu1 %5323, %v87_v5   ;;  %183 = vperm.xlu0 %5322, %v86_v6   ;;  %v4362_v45 = vld [vmem:[%s7451_s1 + $0xb0] sm:$0xff]  ;;  %v4361_v46 = vld [vmem:[%s7451_s1 + $0xa8] sm:$0xff]  ;;  %v4351_v47 = vld [vmem:[%s7474_s23 + $0xc0] sm:$0xff] }
  0x24   :  { %v4350_v48 = vld [vmem:[%s7474_s23 + $0xb8] sm:$0xff]  ;;  %v4364_v49 = vld [vmem:[%s7451_s1 + $0xc0] sm:$0xff]  ;;  %v4365_v51 = vld [vmem:[%s7451_s1 + $0xc8] sm:$0xf] }
  0x25   :  { %v4363_v50 = vld [vmem:[%s7451_s1 + $0xb8] sm:$0xff]  ;;  %v4352_v52 = vld [vmem:[%s7474_s23 + $0xc8] sm:$0xf]  ;;  %v5324_v53 = vld [vmem:[%s7459_s9] sm:$0xff]  }
  0x26   :  { %4740 = vmatprep.mubr.msk.bf16.mxu0 %vm730_vm0, %v5324_v53  ;;  %v68_v1 = vld [vmem:[%s7452_s2] sm:$0x7] }
  0x27   :  { %198 = vperm.xlu1 %5323, %v89_v7   ;;  %193 = vperm.xlu0 %5322, %v88_v8   ;;  %v5810_v5 = vrot.slane %v68_v1, %v278_v62  ;;  %v5812_v6 = vrot.slane %v68_v1, %v441_v63  ;;  %v69_v7 = vld [vmem:[%s7453_s3] sm:$0x7]  ;;  %v5817_v8 = vrot.slane %v68_v1, %v166_v2 }
  0x2b   :  { %126 = vperm.xlu1 %5323, %v78_v9   ;;  %121 = vperm.xlu0 %5322, %v77_v10  }
  0x2f   :  { %208 = vperm.xlu1 %5323, %v91_v11   ;;  %203 = vperm.xlu0 %5322, %v90_v12   ;;  %v5826_v12 = vrot.slane %v69_v7, %v166_v2 }
  0x33   :  { %136 = vperm.xlu1 %5323, %v80_v13   ;;  %131 = vperm.xlu0 %5322, %v79_v14  }
  0x37   :  { %218 = vperm.xlu1 %5323, %v93_v15   ;;  %213 = vperm.xlu0 %5322, %v92_v16  }
  0x3b   :  { %146 = vperm.xlu1 %5323, %v82_v17   ;;  %141 = vperm.xlu0 %5322, %v81_v18  }
  0x3f   :  { %228 = vperm.xlu1 %5323, %v95_v19   ;;  %223 = vperm.xlu0 %5322, %v94_v20   ;;  %v5837_v20 = vrot.slane %v69_v7, %v278_v62 }
  0x43   :  { %156 = vperm.xlu1 %5323, %v84_v21   ;;  %151 = vperm.xlu0 %5322, %v83_v22   ;;  %v5840_v22 = vrot.slane %v69_v7, %v441_v63 }
  0x47   :  { %238 = vperm.xlu1 %5323, %v97_v23   ;;  %233 = vperm.xlu0 %5322, %v96_v24  }
  0x4b   :  { %243 = vperm.xlu1 %5323, %v98_v25   ;;  %161 = vperm.xlu0 %5322, %v85_v26  }
  0x4f   :  { %1831 = vperm.xlu1 %5323, %v4341_v27   ;;  %1826 = vperm.xlu0 %5322, %v4340_v28  }
  0x53   :  { %1841 = vperm.xlu1 %5323, %v4343_v29   ;;  %1836 = vperm.xlu0 %5322, %v4342_v30  }
  0x57   :  { %1909 = vperm.xlu1 %5323, %v4354_v31   ;;  %1904 = vperm.xlu0 %5322, %v4353_v32  }
  0x5b   :  { %1919 = vperm.xlu1 %5323, %v4356_v33   ;;  %1914 = vperm.xlu0 %5322, %v4355_v34  }
  0x5f   :  { %1851 = vperm.xlu1 %5323, %v4345_v35   ;;  %1846 = vperm.xlu0 %5322, %v4344_v36  }
  0x63   :  { %1929 = vperm.xlu1 %5323, %v4358_v37   ;;  %1924 = vperm.xlu0 %5322, %v4357_v38  }
  0x67   :  { %1861 = vperm.xlu1 %5323, %v4347_v39   ;;  %1856 = vperm.xlu0 %5322, %v4346_v40  }
  0x6b   :  { %1939 = vperm.xlu1 %5323, %v4360_v41   ;;  %1934 = vperm.xlu0 %5322, %v4359_v42  }
  0x6f   :  { %1871 = vperm.xlu1 %5323, %v4349_v43   ;;  %1866 = vperm.xlu0 %5322, %v4348_v44  }
  0x73   :  { %1949 = vperm.xlu1 %5323, %v4362_v45   ;;  %1944 = vperm.xlu0 %5322, %v4361_v46  }
  0x77   :  { %1881 = vperm.xlu1 %5323, %v4351_v47   ;;  %1876 = vperm.xlu0 %5322, %v4350_v48  }
  0x7b   :  { %1959 = vperm.xlu1 %5323, %v4364_v49   ;;  %1954 = vperm.xlu0 %5322, %v4363_v50  }
  0x7f   :  { %1964 = vperm.xlu1 %5323, %v4365_v51   ;;  %1886 = vperm.xlu0 %5322, %v4352_v52  }
  0x9a   :  { %v112_v54 = vpop.permute.xlu1 %111  ;;  %v102_v55 = vpop.permute.xlu0 %101 }
  0x9b   :  { %v282_v13 = vmul.f32 %v5810_v5, %v112_v54  ;;  %v445_v14 = vmul.f32 %v5812_v6, %v112_v54  ;;  %v280_v17 = vmul.f32 %v5810_v5, %v102_v55  ;;  %v443_v18 = vmul.f32 %v5812_v6, %v102_v55 }
  0x9c   :  { %v170_v21 = vmul.f32 %v5817_v8, %v112_v54  ;;  %v168_v26 = vmul.f32 %v5817_v8, %v102_v55 }
  0x9d   :  { %v310_v30 = vrot.slane %v282_v13, 1  ;;  %v473_v31 = vrot.slane %v445_v14, 2  ;;  %v307_v34 = vrot.slane %v280_v17, 1  ;;  %v470_v35 = vrot.slane %v443_v18, 2 }
  0x9e   :  { %v117_v57 = vpop.permute.xlu1 %116  ;;  %v107_v58 = vpop.permute.xlu0 %106 }
  0x9f   :  { %v5824_v11 = vmul.f32 %v5812_v6, %v117_v57  ;;  %v281_v15 = vmul.f32 %v5810_v5, %v107_v58  ;;  %v444_v16 = vmul.f32 %v5812_v6, %v107_v58  ;;  %v5835_v19 = vmul.f32 %v5810_v5, %v117_v57 }
  0xa0   :  { %v171_v38 = vmul.f32 %v5817_v8, %v117_v57  ;;  %v169_v39 = vmul.f32 %v5817_v8, %v107_v58 }
  0xa1   :  { %v475_v27 = vrot.slane %v5824_v11, 2  ;;  %v308_v32 = vrot.slane %v281_v15, 1  ;;  %v471_v33 = vrot.slane %v444_v16, 2  ;;  %v312_v36 = vrot.slane %v5835_v19, 1 }
  0xa2   :  { %v189_v60 = vpop.permute.xlu1 %188  ;;  %v184_v61 = vpop.permute.xlu0 %183 }
  0xa3   :  { %v251_v37 = vmul.f32 %v5826_v12, %v189_v60  ;;  %v363_v40 = vmul.f32 %v5837_v20, %v189_v60  ;;  %v476_v43 = vsel %vm469_vm1, %v473_v31, %v475_v27  ;;  %v250_v44 = vmul.f32 %v5826_v12, %v184_v61 }
  0xa4   :  { %v5874_v48 = vsel %vm469_vm1, %v470_v35, %v471_v33  ;;  %v5877_v49 = vsel %vm469_vm1, %v471_v33, %v473_v31  ;;  %v311_v50 = vsel %vm306_vm2, %v308_v32, %v310_v30  ;;  %v526_v51 = vmul.f32 %v5840_v22, %v189_v60 }
  0xa5   :  { %v264_v52 = vadd.f32 %v251_v37, %v169_v39  ;;  %v362_v53 = vmul.f32 %v5837_v20, %v184_v61  ;;  %v525_v54 = vmul.f32 %v5840_v22, %v184_v61  ;;  %v313_v55 = vsel %vm306_vm2, %v310_v30, %v312_v36 }
  0xa6   :  { %v5806_v3 = vpop.permute.xlu1 %198  ;;  %v5808_v4 = vpop.permute.xlu0 %193  ;;  %v389_v57 = vrot.slane %v363_v40, 1  ;;  %v263_v1 = vadd.f32 %v250_v44, %v168_v26  ;;  %v552_v7 = vrot.slane %v526_v51, 2 }
  0xa7   :  { %v252_v23 = vmul.f32 %v5826_v12, %v5808_v4  ;;  %v5852_v28 = vmul.f32 %v5837_v20, %v5806_v3  ;;  %v5856_v29 = vmul.f32 %v5837_v20, %v5808_v4  ;;  %v253_v60 = vmul.f32 %v5826_v12, %v5806_v3 }
  0xa8   :  { %v5901_v13 = vmul.f32 %v5840_v22, %v5806_v3  ;;  %v388_v16 = vrot.slane %v362_v53, 1  ;;  %v551_v17 = vrot.slane %v525_v54, 2  ;;  %v527_v18 = vmul.f32 %v5840_v22, %v5808_v4 }
  0xa9   :  { %v265_v41 = vadd.f32 %v252_v23, %v170_v21  ;;  %v393_v45 = vrot.slane %v5852_v28, 1  ;;  %v391_v46 = vrot.slane %v5856_v29, 1  ;;  %v309_v3 = vsel %vm306_vm2, %v307_v34, %v308_v32 }
  0xaa   :  { %v5819_v9 = vpop.permute.xlu1 %126  ;;  %v5821_v10 = vpop.permute.xlu0 %121  ;;  %v346_v30 = vadd.f32 %v311_v50, %v264_v52  ;;  %v345_v31 = vadd.f32 %v309_v3, %v263_v1  ;;  %v266_v33 = vadd.f32 %v253_v60, %v171_v38  ;;  %v556_v39 = vrot.slane %v5901_v13, 2 }
  0xab   :  { %v347_v58 = vadd.f32 %v313_v55, %v265_v41  ;;  %v5886_v59 = vmul.f32 %v5810_v5, %v5819_v9  ;;  %v284_v62 = vmul.f32 %v5810_v5, %v5821_v10  ;;  %v394_v61 = vsel %vm306_vm2, %v391_v46, %v393_v45 }
  0xac   :  { %v172_v19 = vmul.f32 %v5817_v8, %v5821_v10  ;;  %v447_v4 = vmul.f32 %v5812_v6, %v5821_v10  ;;  %v390_v32 = vsel %vm306_vm2, %v388_v16, %v389_v57  ;;  %v553_v34 = vsel %vm469_vm1, %v551_v17, %v552_v7 }
  0xad   :  { %v428_v23 = vadd.f32 %v394_v61, %v347_v58  ;;  %v316_v26 = vrot.slane %v5886_v59, 1  ;;  %v314_v29 = vrot.slane %v284_v62, 1  ;;  %v554_v44 = vrot.slane %v527_v18, 2 }
  0xae   :  { %v5844_v24 = vpop.permute.xlu1 %208  ;;  %v5846_v25 = vpop.permute.xlu0 %203  ;;  %v5927_v50 = vmul.f32 %v5812_v6, %v5819_v9  ;;  %v392_v38 = vsel %vm306_vm2, %v389_v57, %v391_v46  ;;  %v173_v53 = vmul.f32 %v5817_v8, %v5819_v9  ;;  %v477_v62 = vrot.slane %v447_v4, 2 }
  0xaf   :  { %v254_v2 = vmul.f32 %v5826_v12, %v5846_v25  ;;  %v5905_v14 = vmul.f32 %v5837_v20, %v5844_v24  ;;  %v366_v15 = vmul.f32 %v5837_v20, %v5846_v25  ;;  %v510_v51 = vadd.f32 %v476_v43, %v428_v23 }
  0xb0   :  { %v255_v52 = vmul.f32 %v5826_v12, %v5844_v24  ;;  %v317_v10 = vsel %vm306_vm2, %v314_v29, %v316_v26  ;;  %v315_v54 = vsel %vm306_vm2, %v312_v36, %v314_v29  ;;  %v5938_v55 = vmul.f32 %v5840_v22, %v5844_v24 }
  0xb1   :  { %v267_v35 = vadd.f32 %v254_v2, %v172_v19  ;;  %v397_v40 = vrot.slane %v5905_v14, 1  ;;  %v395_v41 = vrot.slane %v366_v15, 1  ;;  %v529_v46 = vmul.f32 %v5840_v22, %v5846_v25 }
  0xb2   :  { %v5863_v42 = vpop.permute.xlu1 %136  ;;  %v5871_v47 = vpop.permute.xlu0 %131  ;;  %v426_v57 = vadd.f32 %v390_v32, %v345_v31  ;;  %v427_v36 = vadd.f32 %v392_v38, %v346_v30  ;;  %v557_v24 = vsel %vm469_vm1, %v554_v44, %v556_v39  ;;  %v479_v1 = vrot.slane %v5927_v50, 2 }
  0xb3   :  { %v349_v58 = vadd.f32 %v317_v10, %v267_v35  ;;  %v398_v43 = vsel %vm306_vm2, %v395_v41, %v397_v40  ;;  %v286_v9 = vmul.f32 %v5810_v5, %v5871_v47  ;;  %v555_v61 = vsel %vm469_vm1, %v552_v7, %v554_v44 }
  0xb4   :  { %v591_v2 = vadd.f32 %v557_v24, %v510_v51  ;;  %v268_v15 = vadd.f32 %v255_v52, %v173_v53  ;;  %v396_v25 = vsel %vm306_vm2, %v393_v45, %v395_v41  ;;  %v348_v16 = vadd.f32 %v315_v54, %v266_v33  ;;  %v5997_v41 = vld [vmem:[%s7454_s4] ss:$0 sm:$0xff] }
  0xb5   :  { %v430_v17 = vadd.f32 %v398_v43, %v349_v58  ;;  %v5961_v18 = vmul.f32 %v5810_v5, %v5863_v42  ;;  %v5965_v19 = vmul.f32 %v5812_v6, %v5863_v42  ;;  %v478_v7 = vsel %vm469_vm1, %v475_v27, %v477_v62 }
  0xb6   :  { %v5890_v63 = vpop.permute.xlu1 %218  ;;  %v5913_v21 = vpop.permute.xlu0 %213  ;;  %v560_v3 = vrot.slane %v5938_v55, 2  ;;  %v558_v23 = vrot.slane %v529_v46, 2  ;;  %v318_v28 = vrot.slane %v286_v9, 1  ;;  %v480_v45 = vsel %vm469_vm1, %v477_v62, %v479_v1 }
  0xb7   :  { %v429_v29 = vadd.f32 %v396_v25, %v348_v16  ;;  %v5976_v30 = vmul.f32 %v5812_v6, %v5871_v47  ;;  %v256_v31 = vmul.f32 %v5826_v12, %v5913_v21  ;;  %v5984_v11 = vmul.f32 %v5817_v8, %v5863_v42 }
  0xb8   :  { %v174_v27 = vmul.f32 %v5817_v8, %v5871_v47  ;;  %v5990_v35 = vmul.f32 %v5837_v20, %v5890_v63  ;;  %v368_v4 = vmul.f32 %v5837_v20, %v5913_v21  ;;  %v512_v32 = vadd.f32 %v480_v45, %v430_v17 }
  0xb9   :  { %v320_v44 = vrot.slane %v5961_v18, 1  ;;  %v7470_v42 = vrot.slane %v5965_v19, 2  ;;  %v508_v38 = vadd.f32 %v5874_v48, %v426_v57  ;;  %v561_v51 = vsel %vm469_vm1, %v558_v23, %v560_v3 }
  0xba   :  { %v5917_v37 = vpop.permute.xlu1 %146  ;;  %v5940_v59 = vpop.permute.xlu0 %141  ;;  %v319_v52 = vsel %vm306_vm2, %v316_v26, %v318_v28  ;;  %v509_v10 = vadd.f32 %v5877_v49, %v427_v36  ;;  %v6010_v53 = vadd.f32 %v5997_v41, %v591_v2  ;;  %v511_v54 = vadd.f32 %v478_v7, %v429_v29 }
  0xbb   :  { %v481_v58 = vrot.slane %v5976_v30, 2  ;;  %v269_v62 = vadd.f32 %v256_v31, %v174_v27  ;;  %v589_v43 = vadd.f32 %v553_v34, %v508_v38  ;;  %v401_v48 = vrot.slane %v5990_v35, 1 }
  0xbc   :  { %v399_v46 = vrot.slane %v368_v4, 1  ;;  %v590_v9 = vadd.f32 %v555_v61, %v509_v10  ;;  %v623_v57 = vmax.f32 %v6010_v53, 0.0  ;;  %v559_v26 = vsel %vm469_vm1, %v556_v39, %v558_v23 }
  0xbd   :  { %v593_v24 = vadd.f32 %v561_v51, %v512_v32  ;;  %v350_v49 = vadd.f32 %v319_v52, %v268_v15  ;;  %v257_v36 = vmul.f32 %v5826_v12, %v5890_v63  ;;  %v6024_v34 = vmul.f32 %v5840_v22, %v5890_v63 }
  0xbe   :  { %v5953_v60 = vpop.permute.xlu1 %228  ;;  %v5980_v33 = vpop.permute.xlu0 %223  ;;  %v321_v61 = vsel %vm306_vm2, %v318_v28, %v320_v44  ;;  %v608_v25 = vadd.f32 %v5997_v41, %v589_v43  ;;  %v609_v13 = vadd.f32 %v5997_v41, %v590_v9  ;;  %v592_v39 = vadd.f32 %v559_v26, %v511_v54 }
  0xbf   :  { %v484_v15 = vsel %vm469_vm1, %v481_v58, %v7470_v42  ;;  %v351_v16 = vadd.f32 %v321_v61, %v269_v62  ;;  %v6036_v17 = vmul.f32 %v5810_v5, %v5917_v37  ;;  %v402_v7 = vsel %vm306_vm2, %v399_v46, %v401_v48 }
  0xc0   :  { %v621_v23 = vmax.f32 %v608_v25, 0.0  ;;  %v622_v28 = vmax.f32 %v609_v13, 0.0  ;;  %v6045_v45 = vrot.slane %v623_v57, 1  ;;  %v6048_v29 = vadd.f32 %v5997_v41, %v593_v24 }
  0xc1   :  { %v531_v30 = vmul.f32 %v5840_v22, %v5913_v21  ;;  %v6054_v31 = vmul.f32 %v5812_v6, %v5917_v37  ;;  %v288_v27 = vmul.f32 %v5810_v5, %v5940_v59  ;;  %v400_v4 = vsel %vm306_vm2, %v397_v40, %v399_v46 }
  0xc2   :  { %v6002_v47 = vpop.permute.xlu1 %156  ;;  %v6020_v2 = vpop.permute.xlu0 %151  ;;  %v258_v32 = vmul.f32 %v5826_v12, %v5980_v33  ;;  %v647_v38 = vrot.slane %v621_v23, 1  ;;  %v648_v51 = vrot.slane %v622_v28, 1  ;;  %v432_v52 = vadd.f32 %v402_v7, %v351_v16 }
  0xc3   :  { %v176_v21 = vmul.f32 %v5817_v8, %v5940_v59  ;;  %v6067_v10 = vmul.f32 %v5837_v20, %v5953_v60  ;;  %v370_v54 = vmul.f32 %v5837_v20, %v5980_v33  ;;  %v324_v14 = vrot.slane %v6036_v17, 1 }
  0xc4   :  { %v6076_v40 = vmul.f32 %v5812_v6, %v5940_v59  ;;  %v649_v43 = vsel %vm306_vm2, %v647_v38, %v648_v51  ;;  %v651_v46 = vsel %vm306_vm2, %v648_v51, %v6045_v45  ;;  %v431_v9 = vadd.f32 %v400_v4, %v350_v49 }
  0xc5   :  { %v322_v26 = vrot.slane %v288_v27, 1  ;;  %v685_v24 = vmax.f32 %v621_v23, %v649_v43  ;;  %v686_v61 = vmax.f32 %v622_v28, %v651_v46  ;;  %v625_v13 = vmax.f32 %v6048_v29, 0.0 }
  0xc6   :  { %v6038_v63 = vpop.permute.xlu1 %238  ;;  %v6071_v62 = vpop.permute.xlu0 %233  ;;  %v564_v16 = vrot.slane %v6024_v34, 2  ;;  %v562_v7 = vrot.slane %v531_v30, 2  ;;  %v271_v56 = vadd.f32 %v258_v32, %v176_v21  ;;  %v514_v0 = vadd.f32 %v484_v15, %v432_v52 }
  0xc7   :  { %v405_v59 = vrot.slane %v6067_v10, 1  ;;  %v403_v42 = vrot.slane %v370_v54, 1  ;;  %v705_v38 = vpack.c.bf16 %v686_v61, %v685_v24  ;;  %v482_v49 = vsel %vm469_vm1, %v479_v1, %v481_v58 }
  0xc8   :  { %v487_v23 = vrot.slane %v6054_v31, 2  ;;  %v485_v28 = vrot.slane %v6076_v40, 2  ;;  %v611_v27 = vadd.f32 %v5997_v41, %v592_v39  ;;  %v270_v4 = vadd.f32 %v257_v36, %v5984_v11 }
  0xc9   :  { %v513_v51 = vadd.f32 %v482_v49, %v431_v9  ;;  %v323_v15 = vsel %vm306_vm2, %v320_v44, %v322_v26  ;;  %v325_v30 = vsel %vm306_vm2, %v322_v26, %v324_v14  ;;  %4726 = vmatprep.subr.bf16.mxu0 %v705_v38  ;;  %v563_v1 = vsel %vm469_vm1, %v560_v3, %v562_v7 }
  0xca   :  { %v6081_v25 = vpop.permute.xlu1 %243  ;;  %v6099_v50 = vpop.permute.xlu0 %161  ;;  %v565_v11 = vsel %vm469_vm1, %v562_v7, %v564_v16  ;;  %v353_v58 = vadd.f32 %v325_v30, %v271_v56  ;;  %4727 = vmatpush3.bf16.msra.mxu0 %v705_v38  ;;  %v624_v18 = vmax.f32 %v611_v27, 0.0  ;;  %v6109_v44 = vmul.f32 %v5840_v22, %v5953_v60 }
  0xcb   :  { %v595_v36 = vadd.f32 %v565_v11, %v514_v0  ;;  %v406_v39 = vsel %vm306_vm2, %v403_v42, %v405_v59  ;;  %v6116_v55 = vrot.slane %v625_v13, 1  ;;  %v352_v32 = vadd.f32 %v323_v15, %v270_v4 }
  0xcc   :  { %v488_v56 = vsel %vm469_vm1, %v485_v28, %v487_v23  ;;  %v6125_v0 = vmul.f32 %v5810_v5, %v6002_v47  ;;  %v290_v52 = vmul.f32 %v5810_v5, %v6020_v2  ;;  %v594_v21 = vadd.f32 %v563_v1, %v513_v51 }
  0xcd   :  { %v533_v54 = vmul.f32 %v5840_v22, %v5980_v33  ;;  %v260_v40 = vmul.f32 %v5826_v12, %v6071_v62  ;;  %v652_v43 = vrot.slane %v624_v18, 1  ;;  %v404_v46 = vsel %vm306_vm2, %v401_v48, %v403_v42 }
  0xce   :  { %v6118_v3 = vpop.permute.xlu1 %1831  ;;  %v434_v9 = vadd.f32 %v406_v39, %v353_v58  ;;  %v6138_v26 = vmul.f32 %v5837_v20, %v6038_v63  ;;  %v372_v24 = vmul.f32 %v5837_v20, %v6071_v62  ;;  %v6143_v61 = vadd.f32 %v5997_v41, %v595_v36  ;;  %v6151_v42 = vpop.permute.xlu0 %1826 }
  0xcf   :  { %v178_v33 = vmul.f32 %v5817_v8, %v6020_v2  ;;  %v653_v7 = vsel %vm306_vm2, %v6045_v45, %v652_v43  ;;  %v655_v35 = vsel %vm306_vm2, %v652_v43, %v6116_v55  ;;  %v328_v48 = vrot.slane %v6125_v0, 1 }
  0xd0   :  { %v326_v38 = vrot.slane %v290_v52, 1  ;;  %v687_v49 = vmax.f32 %v623_v57, %v653_v7  ;;  %v688_v27 = vmax.f32 %v624_v18, %v655_v35  ;;  %v568_v4 = vrot.slane %v6109_v44, 2 }
  0xd1   :  { %v433_v51 = vadd.f32 %v404_v46, %v352_v32  ;;  %v566_v15 = vrot.slane %v533_v54, 2  ;;  %v273_v30 = vadd.f32 %v260_v40, %v178_v33  ;;  %v516_v45 = vadd.f32 %v488_v56, %v434_v9 }
  0xd2   :  { %v6157_v1 = vpop.permute.xlu1 %1841  ;;  %v409_v11 = vrot.slane %v6138_v26, 1  ;;  %v407_v58 = vrot.slane %v372_v24, 1  ;;  %v706_v36 = vpack.c.bf16 %v688_v27, %v687_v49  ;;  %v627_v39 = vmax.f32 %v6143_v61, 0.0  ;;  %v6188_v9 = vpop.permute.xlu0 %1836 }
  0xd3   :  { %v177_v52 = vmul.f32 %v5817_v8, %v5917_v37  ;;  %v6165_v53 = vmul.f32 %v5812_v6, %v6002_v47  ;;  %v453_v57 = vmul.f32 %v5812_v6, %v6020_v2  ;;  %v329_v18 = vsel %vm306_vm2, %v326_v38, %v328_v48 }
  0xd4   :  { %4728 = vmatprep.subr.bf16.mxu0 %v706_v36  ;;  %v262_v32 = vmul.f32 %v5826_v12, %v6081_v25  ;;  %v180_v56 = vmul.f32 %v5817_v8, %v6099_v50  ;;  %v6178_v37 = vmul.f32 %v5810_v5, %v6099_v50  ;;  %v7475_v54 = vrot.slane %v5965_v19, 2 }
  0xd5   :  { %v259_v2 = vmul.f32 %v5826_v12, %v5953_v60  ;;  %v569_v43 = vsel %vm469_vm1, %v566_v15, %v568_v4  ;;  %v355_v46 = vadd.f32 %v329_v18, %v273_v30  ;;  %4729 = vmatpush3.bf16.msra.mxu0 %v706_v36  ;;  %v410_v7 = vsel %vm306_vm2, %v407_v58, %v409_v11 }
  0xd6   :  { %v486_v40 = vsel %vm469_vm1, %v7475_v54, %v485_v28  ;;  %v597_v33 = vadd.f32 %v569_v43, %v516_v45  ;;  %v613_v19 = vadd.f32 %v5997_v41, %v594_v21  ;;  %v491_v28 = vrot.slane %v6165_v53, 2  ;;  %v6201_v27 = vpop.permute.xlu1 %1909 }
  0xd7   :  { %v515_v24 = vadd.f32 %v486_v40, %v433_v51  ;;  %v489_v35 = vrot.slane %v453_v57, 2  ;;  %v6197_v60 = vmul.f32 %v5840_v22, %v6038_v63  ;;  %v535_v49 = vmul.f32 %v5840_v22, %v6071_v62 }
  0xd8   :  { %v275_v51 = vadd.f32 %v262_v32, %v180_v56  ;;  %v330_v30 = vrot.slane %v6178_v37, 1  ;;  %v626_v45 = vmax.f32 %v613_v19, 0.0  ;;  %v658_v36 = vrot.slane %v627_v39, 1 }
  0xd9   :  { %v272_v21 = vadd.f32 %v259_v2, %v177_v52  ;;  %v567_v57 = vsel %vm469_vm1, %v564_v16, %v566_v15  ;;  %v436_v18 = vadd.f32 %v410_v7, %v355_v46  ;;  %v6210_v54 = vadd.f32 %v5997_v41, %v597_v33  ;;  %v6221_v15 = vpop.permute.xlu0 %1904 }
  0xda   :  { %v327_v62 = vsel %vm306_vm2, %v324_v14, %v326_v38  ;;  %v374_v32 = vmul.f32 %v5837_v20, %v6081_v25  ;;  %v656_v56 = vrot.slane %v626_v45, 1  ;;  %v596_v37 = vadd.f32 %v567_v57, %v515_v24  ;;  %v6231_v33 = vpop.permute.xlu1 %1919 }
  0xdb   :  { %v492_v52 = vsel %vm469_vm1, %v489_v35, %v491_v28  ;;  %v572_v34 = vrot.slane %v6197_v60, 2  ;;  %v570_v16 = vrot.slane %v535_v49, 2  ;;  %v408_v17 = vsel %vm306_vm2, %v405_v59, %v407_v58 }
  0xdc   :  { %v357_v40 = vadd.f32 %v330_v30, %v275_v51  ;;  %v657_v14 = vsel %vm306_vm2, %v6116_v55, %v656_v56  ;;  %v659_v38 = vsel %vm306_vm2, %v656_v56, %v658_v36  ;;  %v354_v2 = vadd.f32 %v327_v62, %v272_v21 }
  0xdd   :  { %v518_v43 = vadd.f32 %v492_v52, %v436_v18  ;;  %v689_v46 = vmax.f32 %v625_v13, %v657_v14  ;;  %v690_v24 = vmax.f32 %v626_v45, %v659_v38  ;;  %v629_v7 = vmax.f32 %v6210_v54, 0.0  ;;  %v6253_v18 = vpop.permute.xlu0 %1914 }
  0xde   :  { %v411_v19 = vrot.slane %v374_v32, 1  ;;  %v455_v10 = vmul.f32 %v5812_v6, %v6099_v50  ;;  %v261_v59 = vmul.f32 %v5826_v12, %v6038_v63  ;;  %v435_v55 = vadd.f32 %v408_v17, %v354_v2 }
  0xdf   :  { %v573_v58 = vsel %vm469_vm1, %v570_v16, %v572_v34  ;;  %v707_v49 = vpack.c.bf16 %v690_v24, %v689_v46  ;;  %v1892_v13 = vmul.f32 %v6157_v1, %v5817_v8  ;;  %v615_v51 = vadd.f32 %v5997_v41, %v596_v37 }
  0xe0   :  { %v438_v29 = vadd.f32 %v411_v19, %v357_v40  ;;  %v1970_v45 = vmul.f32 %v6231_v33, %v5826_v12  ;;  %v179_v50 = vmul.f32 %v5817_v8, %v6002_v47  ;;  %v490_v63 = vsel %vm469_vm1, %v487_v23, %v489_v35 }
  0xe1   :  { %v599_v21 = vadd.f32 %v573_v58, %v518_v43  ;;  %v537_v57 = vmul.f32 %v5840_v22, %v6081_v25  ;;  %4730 = vmatprep.subr.bf16.mxu0 %v707_v49  ;;  %v493_v62 = vrot.slane %v455_v10, 2  ;;  %v628_v32 = vmax.f32 %v615_v51, 0.0 }
  0xe2   :  { %4731 = vmatpush3.bf16.msra.mxu0 %v707_v49  ;;  %v662_v56 = vrot.slane %v629_v7, 1  ;;  %v1983_v37 = vadd.f32 %v1970_v45, %v1892_v13  ;;  %v517_v52 = vadd.f32 %v490_v63, %v435_v55  ;;  %v331_v47 = vsel %vm306_vm2, %v328_v48, %v330_v30  ;;  %v6270_v30 = vpop.permute.xlu0 %1846 }
  0xe3   :  { %v274_v31 = vadd.f32 %v261_v59, %v179_v50  ;;  %v520_v23 = vadd.f32 %v493_v62, %v438_v29  ;;  %v660_v35 = vrot.slane %v628_v32, 1  ;;  %v6261_v25 = vadd.f32 %v5997_v41, %v599_v21 }
  0xe4   :  { %v574_v17 = vrot.slane %v537_v57, 2  ;;  %v571_v40 = vsel %vm469_vm1, %v568_v4, %v570_v16  ;;  %v6274_v24 = vmul.f32 %v6157_v1, %v5810_v5  ;;  %v412_v4 = vsel %vm306_vm2, %v409_v11, %v411_v19 }
  0xe5   :  { %v356_v14 = vadd.f32 %v331_v47, %v274_v31  ;;  %v661_v38 = vsel %vm306_vm2, %v658_v36, %v660_v35  ;;  %v663_v2 = vsel %vm306_vm2, %v660_v35, %v662_v56  ;;  %v598_v43 = vadd.f32 %v571_v40, %v517_v52  ;;  %v6333_v40 = vpop.permute.xlu1 %1851 }
  0xe6   :  { %v691_v0 = vmax.f32 %v627_v39, %v661_v38  ;;  %v692_v48 = vmax.f32 %v628_v32, %v663_v2  ;;  %v601_v46 = vadd.f32 %v574_v17, %v520_v23  ;;  %v631_v44 = vmax.f32 %v6261_v25, 0.0  ;;  %v1925_v29 = vpop.permute.xlu0 %1924 }
  0xe7   :  { %v437_v16 = vadd.f32 %v412_v4, %v356_v14  ;;  %v6282_v61 = vmul.f32 %v6270_v30, %v5810_v5  ;;  %v617_v39 = vadd.f32 %v5997_v41, %v598_v43  ;;  %v2024_v59 = vrot.slane %v6274_v24, 1 }
  0xe8   :  { %v708_v36 = vpack.c.bf16 %v692_v48, %v691_v0  ;;  %v620_v10 = vadd.f32 %v5997_v41, %v601_v46  ;;  %v494_v26 = vsel %vm469_vm1, %v491_v28, %v493_v62  ;;  %v666_v19 = vrot.slane %v631_v44, 1 }
  0xe9   :  { %v2026_v55 = vrot.slane %v6282_v61, 1  ;;  %v630_v11 = vmax.f32 %v617_v39, 0.0  ;;  %v519_v58 = vadd.f32 %v494_v26, %v437_v16  ;;  %v6298_v13 = vmul.f32 %v6231_v33, %v5837_v20  ;;  %v6349_v16 = vpop.permute.xlu1 %1929 }
  0xea   :  { %4732 = vmatprep.subr.bf16.mxu0 %v708_v36  ;;  %v6302_v53 = vmul.f32 %v6270_v30, %v5812_v6  ;;  %v633_v45 = vmax.f32 %v620_v10, 0.0  ;;  %v6306_v50 = vmul.f32 %v6157_v1, %v5812_v6  ;;  %v6311_v57 = vmul.f32 %v1925_v29, %v5837_v20 }
  0xeb   :  { %4733 = vmatpush3.bf16.msra.mxu0 %v708_v36  ;;  %v2027_v49 = vsel %vm306_vm2, %v2024_v59, %v2026_v55  ;;  %v664_v28 = vrot.slane %v630_v11, 1  ;;  %v6314_v62 = vmul.f32 %v1925_v29, %v5840_v22  ;;  %v575_v32 = vsel %vm469_vm1, %v572_v34, %v574_v17 }
  0xec   :  { %v2060_v51 = vadd.f32 %v2027_v49, %v1983_v37  ;;  %v6321_v37 = vmul.f32 %v6231_v33, %v5840_v22  ;;  %v2101_v52 = vrot.slane %v6298_v13, 1  ;;  %v2180_v47 = vrot.slane %v6302_v53, 2 }
  0xed   :  { %v665_v63 = vsel %vm306_vm2, %v662_v56, %v664_v28  ;;  %v667_v21 = vsel %vm306_vm2, %v664_v28, %v666_v19  ;;  %v2103_v31 = vrot.slane %v6311_v57, 1  ;;  %v600_v23 = vadd.f32 %v575_v32, %v519_v58 }
  0xee   :  { %v693_v1 = vmax.f32 %v629_v7, %v665_v63  ;;  %v694_v56 = vmax.f32 %v630_v11, %v667_v21  ;;  %v2178_v60 = vrot.slane %v6306_v50, 2  ;;  %v2257_v25 = vrot.slane %v6314_v62, 2  ;;  %v5330_v62 = vld [vmem:[%s7455_s5 + $0x40] sm:$0xff]  }
  0xef   :  { %v2104_v34 = vsel %vm306_vm2, %v2101_v52, %v2103_v31  ;;  %v670_v33 = vrot.slane %v633_v45, 1  ;;  %v619_v54 = vadd.f32 %v5997_v41, %v600_v23  ;;  %v2255_v7 = vrot.slane %v6321_v37, 2  ;;  %v5325_v23 = vld [vmem:[%s7459_s9 + $0x8] sm:$0xff]  }
  0xf0   :  { %v709_v35 = vpack.c.bf16 %v694_v56, %v693_v1  ;;  %v2137_v17 = vadd.f32 %v2104_v34, %v2060_v51  ;;  %v2181_v14 = vsel %vm469_vm1, %v2178_v60, %v2180_v47  ;;  %v7476_v11 = vmov 0  }
  0xf1   :  { %v632_v2 = vmax.f32 %v619_v54, 0.0  ;;  %v2258_v43 = vsel %vm469_vm1, %v2255_v7, %v2257_v25  ;;  %v697_v0 = vmax.f32 %v633_v45, %v670_v33  ;;  %v6353_v58 = vsel %vm743_vm3, 65535, %v7476_v11  ;;  %v5328_v11 = vld [vmem:[%s7455_s5] sm:$0xff]  }
  0xf2   :  { %4734 = vmatprep.subr.bf16.mxu0 %v709_v35  ;;  %v2214_v38 = vadd.f32 %v2181_v14, %v2137_v17  ;;  %v6357_v49 = vmul.f32 %v6333_v40, %v5810_v5  ;;  %v1971_v13 = vmul.f32 %v1925_v29, %v5826_v12  ;;  %v1969_v28 = vmul.f32 %v6253_v18, %v5826_v12  ;;  %v5326_v17 = vld [vmem:[%s7459_s9 + $0x10] sm:$0xff]  }
  0xf3   :  { %4735 = vmatpush3.bf16.msra.mxu0 %v709_v35  ;;  %v668_v46 = vrot.slane %v632_v2, 1  ;;  %v711_v26 = vpack.c.bf16 %v697_v0, %v697_v0  ;;  %v1893_v45 = vmul.f32 %v6270_v30, %v5817_v8  ;;  %v6375_v29 = vmul.f32 %v6253_v18, %v5837_v20 }
  0xf4   :  { %v6345_v48 = vadd.f32 %v2258_v43, %v2214_v38  ;;  %v2028_v21 = vrot.slane %v6357_v49, 1  ;;  %v1891_v57 = vmul.f32 %v6188_v9, %v5817_v8  ;;  %v6388_v34 = vmul.f32 %v6333_v40, %v5812_v6 }
  0xf5   :  { %v669_v4 = vsel %vm306_vm2, %v666_v19, %v668_v46  ;;  %v671_v36 = vsel %vm306_vm2, %v668_v46, %v670_v33  ;;  %v6362_v19 = vmul.f32 %v6188_v9, %v5810_v5  ;;  %v747_v63 = vand.u32 %v6353_v58, %v711_v26 }
  0xf6   :  { %v695_v39 = vmax.f32 %v631_v44, %v669_v4  ;;  %v696_v10 = vmax.f32 %v632_v2, %v671_v36  ;;  %v6366_v44 = vmul.f32 %v6349_v16, %v5837_v20  ;;  %v1984_v32 = vadd.f32 %v1971_v13, %v1893_v45 }
  0xf7   :  { %v2022_v1 = vrot.slane %v6362_v19, 1  ;;  %v1982_v30 = vadd.f32 %v1969_v28, %v1891_v57  ;;  %v2099_v35 = vrot.slane %v6375_v29, 1  ;;  %v2029_v33 = vsel %vm306_vm2, %v2026_v55, %v2028_v21  ;;  %v5334_v57 = vld [vmem:[%s7455_s5 + $0x50] sm:$0xff]  }
  0xf8   :  { %v710_v51 = vpack.c.bf16 %v696_v10, %v695_v39  ;;  %v2105_v56 = vrot.slane %v6366_v44, 1  ;;  %v2061_v54 = vadd.f32 %v2029_v33, %v1984_v32  ;;  %v6400_v14 = vmul.f32 %v6188_v9, %v5812_v6  ;;  %v5336_v33 = vld [vmem:[%s7455_s5 + $0x58] sm:$0xff]  }
  0xf9   :  { %v2025_v38 = vsel %vm306_vm2, %v2022_v1, %v2024_v59  ;;  %v2102_v2 = vsel %vm306_vm2, %v2099_v35, %v2101_v52  ;;  %v2182_v9 = vrot.slane %v6388_v34, 2  ;;  %v6417_v24 = vmul.f32 %v6349_v16, %v5840_v22  ;;  %v5327_v52 = vld [vmem:[%s7459_s9 + $0x18] ss:$0 sps:$4 sm:$0x11]  }
  0xfa   :  { %4736 = vmatprep.subr.bf16.mxu0 %v710_v51  ;;  %v2106_v61 = vsel %vm306_vm2, %v2103_v31, %v2105_v56  ;;  %v2059_v55 = vadd.f32 %v2025_v38, %v1982_v30  ;;  %v2176_v43 = vrot.slane %v6400_v14, 2  ;;  %v6423_v31 = vmul.f32 %v6253_v18, %v5840_v22 }
  0xfb   :  { %4737 = vmatpush3.bf16.msra.mxu0 %v710_v51  ;;  %v2138_v59 = vadd.f32 %v2106_v61, %v2061_v54  ;;  %v2183_v46 = vsel %vm469_vm1, %v2180_v47, %v2182_v9  ;;  %v2259_v4 = vrot.slane %v6417_v24, 2  ;;  %v7471_v13 = vmov 0.0   ;;  %v5332_v51 = vld [vmem:[%s7455_s5 + $0x48] sm:$0xff]  }
  0xfc   :  { %4738 = vmatprep.subr.bf16.mxu0 %v747_v63  ;;  %v2136_v0 = vadd.f32 %v2102_v2, %v2059_v55  ;;  %v2179_v18 = vsel %vm469_vm1, %v2176_v43, %v2178_v60  ;;  %v2253_v39 = vrot.slane %v6423_v31, 2  ;;  %4748 = vmatprep.subr.bf16.mxu1 %v7471_v13  ;;  %v2304_v45 = vadd.f32 %v5997_v41, %v6345_v48  ;;  %v5335_v2 = vld [vmem:[%s7455_s5 + $0x20] sm:$0xff]  }
  0xfd   :  { %v2215_v36 = vadd.f32 %v2183_v46, %v2138_v59  ;;  %v2260_v53 = vsel %vm469_vm1, %v2257_v25, %v2259_v4  ;;  %4749 = vmatpush3.bf16.msra.mxu1 %v5330_v62  ;;  %v5338_v59 = vld [vmem:[%s7455_s5 + $0x60] sm:$0xff]   ;;  %v5340_v46 = vld [vmem:[%s7455_s5 + $0x68] sm:$0xff]   ;;  %4764 = vmatprep.mubr.msk.bf16.mxu1 %vm5542_vm4, %v7471_v13 }
  0xfe   :  { %v2213_v10 = vadd.f32 %v2179_v18, %v2136_v0  ;;  %v2256_v50 = vsel %vm469_vm1, %v2253_v39, %v2255_v7  ;;  %v5329_v7 = vld [vmem:[%s7455_s5 + $0x8] sm:$0xff]   ;;  %4750 = vmatprep.subr.bf16.mxu1 %v7471_v13  ;;  %v2317_v32 = vmax.f32 %v2304_v45, 0.0  ;;  %v5342_v18 = vld [vmem:[%s7455_s5 + $0x70] sm:$0xff]  }
  0xff   :  { %4739 = vmatpush3.bf16.msra.mxu0 %v747_v63  ;;  %v2292_v47 = vadd.f32 %v2260_v53, %v2215_v36  ;;  %v5331_v63 = vld [vmem:[%s7455_s5 + $0x10] sm:$0xff]   ;;  %v5337_v0 = vld [vmem:[%s7455_s5 + $0x28] sm:$0xff]   ;;  %v5341_v36 = vld [vmem:[%s7455_s5 + $0x38] sm:$0xff]  }
 0x100   :  { %v2290_v26 = vadd.f32 %v2256_v50, %v2213_v10  ;;  %4776 = vmatprep.subr.bf16.mxu0 %v7471_v13  ;;  %v2345_v48 = vrot.slane %v2317_v32, 1  ;;  %v5343_v10 = vld [vmem:[%s7455_s5 + $0x78] sm:$0xff]  }
 0x101   :  { %v6452_v60 = vadd.f32 %v5997_v41, %v2292_v47  ;;  %4751 = vmatpush3.bf16.msra.mxu1 %v5332_v51 }
 0x102   :  { %4741 = vmatmul.mubr.msk.bf16.vlgmr.msra.gmra.mrb[0].mxu0 %vm730_vm0, %v5325_v23  ;;  %v2303_v25 = vadd.f32 %v5997_v41, %v2290_v26  ;;  %4752 = vmatprep.subr.bf16.mxu1 %v7471_v13  ;;  %v5333_v23 = vld [vmem:[%s7455_s5 + $0x18] sm:$0xff]  }
 0x103   :  { %4744 = vmatprep.mubr.msk.bf16.mxu0 %vm730_vm0, %v5326_v17  ;;  %v2318_v37 = vmax.f32 %v6452_v60, 0.0  ;;  %4777 = vmatpush3.bf16.msra.mxu0 %v5328_v11 }
 0x104   :  { %4778 = vmatprep.subr.bf16.mxu0 %v7471_v13  ;;  %v2316_v28 = vmax.f32 %v2303_v25, 0.0 }
 0x105   :  { %v6482_v30 = vrot.slane %v2318_v37, 1  ;;  %4753 = vmatpush3.bf16.msra.mxu1 %v5334_v57 }
 0x106   :  { %v6486_v41 = vrot.slane %v2316_v28, 1  ;;  %4754 = vmatprep.subr.bf16.mxu1 %v7471_v13 }
 0x107   :  { %4779 = vmatpush3.bf16.msra.mxu0 %v5329_v7  ;;  %v2348_v54 = vsel %vm306_vm2, %v2345_v48, %v6482_v30 }
 0x108   :  { %4780 = vmatprep.subr.bf16.mxu0 %v7471_v13  ;;  %v2346_v17 = vsel %vm306_vm2, %v6486_v41, %v2345_v48  ;;  %v2381_v61 = vmax.f32 %v2317_v32, %v2348_v54 }
 0x109   :  { %v2380_v38 = vmax.f32 %v2316_v28, %v2346_v17  ;;  %4755 = vmatpush3.bf16.msra.mxu1 %v5336_v33 }
 0x10a   :  { %4745 = vmatmul.mubr.msk.bf16.gmra.mrb[4].mxu0 %vm730_vm0, %v5327_v52  ;;  %4756 = vmatprep.subr.bf16.mxu1 %v7471_v13  ;;  %v5339_v52 = vld [vmem:[%s7455_s5 + $0x30] sm:$0xff]  }
 0x10b   :  { %4781 = vmatpush3.bf16.msra.mxu0 %v5331_v63  ;;  %v6500_v55 = vpack.c.bf16 %v2381_v61, %v2380_v38  ;;  %4792 = vmatprep.mubr.msk.bf16.mxu0 %vm5542_vm4, %v7471_v13  ;;  %v5344_v38 = vld [vmem:[%s7455_s5 + $0x80] sm:$0xff]  }
 0x10c   :  { %4782 = vmatprep.subr.bf16.mxu0 %v7471_v13 }
 0x10d   :  { %4757 = vmatpush3.bf16.msra.mxu1 %v5338_v59 }
 0x10e   :  { %4758 = vmatprep.subr.bf16.mxu1 %v7471_v13 }
 0x10f   :  { %4783 = vmatpush3.bf16.msra.mxu0 %v5333_v23 }
 0x110   :  { %4784 = vmatprep.subr.bf16.mxu0 %v7471_v13 }
 0x111   :  { %4759 = vmatpush3.bf16.msra.mxu1 %v5340_v46 }
 0x112   :  { %4760 = vmatprep.subr.bf16.mxu1 %v7471_v13 }
 0x113   :  { %4785 = vmatpush3.bf16.msra.mxu0 %v5335_v2 }
 0x114   :  { %4786 = vmatprep.subr.bf16.mxu0 %v7471_v13 }
 0x115   :  { %4761 = vmatpush3.bf16.msra.mxu1 %v5342_v18 }
 0x116   :  { %4762 = vmatprep.subr.bf16.mxu1 %v7471_v13 }
 0x117   :  { %4787 = vmatpush3.bf16.msra.mxu0 %v5337_v0 }
 0x118   :  { %4788 = vmatprep.subr.bf16.mxu0 %v7471_v13 }
 0x119   :  { %4763 = vmatpush3.bf16.msra.mxu1 %v5343_v10 }
 0x11a   :  { %4804 = vmatprep.subr.bf16.mxu1 %v7471_v13 }
 0x11b   :  { %4789 = vmatpush3.bf16.msra.mxu0 %v5339_v52  ;;  %v5345_v52 = vld [vmem:[%s7455_s5 + $0x88] sm:$0xff]  }
 0x11c   :  { %4790 = vmatprep.subr.bf16.mxu0 %v7471_v13 }
 0x11f   :  { %4791 = vmatpush3.bf16.msra.mxu0 %v5341_v36 }
 0x1d5   :  { %v4742_v53 = vpop.f32.mrb[0].mxu0 }
 0x1d6   :  { %v783_v47 = vpop.f32.mrb[1].mxu0 }
 0x1d7   :  { %v4743_v50 = vpop.f32.mrb[2].mxu0 }
 0x1d8   :  { %v814_v26 = vpack.c.bf16 %v4743_v50, %v4742_v53  ;;  %v786_v11 = vpop.f32.mrb[3].mxu0 }
 0x1d9   :  { %v813_v62 = vpack.c.bf16 %v786_v11, %v783_v47 }
 0x1da   :  { %v1108_v25 = vrot.slane %v814_v26, 1  ;;  %v857_v28 = vshll.u32 %v814_v26, 16  ;;  %v861_v46 = vshrl.u32 %v814_v26, 16 }
 0x1db   :  { %v852_v7 = vshll.u32 %v813_v62, 16  ;;  %v1107_v51 = vrot.slane %v813_v62, 1  ;;  %4793 = vmatmul.mubr.bf16.vlgmr.msra.gmra.mrb[8].mxu0 %v813_v62  ;;  %v850_v63 = vshrl.u32 %v813_v62, 16  ;;  %v5347_v62 = vld [vmem:[%s7455_s5 + $0x98] sm:$0xff]  }
 0x1dc   :  { %4796 = vmatprep.mubr.msk.bf16.mxu0 %vm5542_vm4, %v7471_v13  ;;  %v859_v54 = vrot.slane %v857_v28, 1  ;;  %v5349_v28 = vld [vmem:[%s7455_s5 + $0xa8] sm:$0xff]  }
 0x1dd   :  { %v4746_v45 = vpop.f32.mrb[4].mxu0  ;;  %v854_v57 = vrot.slane %v852_v7, 1  ;;  %v1109_v32 = vsel %vm306_vm2, %v1107_v51, %v1108_v25  ;;  %v5348_v7 = vld [vmem:[%s7455_s5 + $0xa0] sm:$0xff]  }
 0x1de   :  { %v1085_v48 = vpack.c.bf16 %v4746_v45, %v4746_v45  ;;  %v799_v23 = vpop.f32.mrb[5].mxu0  ;;  %v863_v10 = vor.u32 %v861_v46, %v859_v54  ;;  %v5350_v45 = vld [vmem:[%s7455_s5 + $0xb0] sm:$0xff]  }
 0x1df   :  { %v4747_v33 = vpop.f32.mrb[6].mxu0  ;;  %v855_v17 = vor.u32 %v854_v57, %v850_v63  ;;  %v5351_v63 = vld [vmem:[%s7455_s5 + $0xb8] sm:$0xff]   ;;  %v5352_v57 = vld [vmem:[%s7460_s10] sm:$0xff]  }
 0x1e0   :  { %v802_v61 = vpop.f32.mrb[7].mxu0  ;;  %v1112_v2 = vrot.slane %v1085_v48, 1  ;;  %v5362_v48 = vld [vmem:[%s7457_s7 + $0x40] sm:$0xff]   ;;  %v5365_v33 = vld [vmem:[%s7457_s7 + $0x58] sm:$0xff]  }
 0x1e1   :  { %v815_v59 = vpack.c.bf16 %v802_v61, %v799_v23  ;;  %v860_v0 = vsel %vm848_vm5, %v855_v17, %v859_v54  ;;  %v5364_v23 = vld [vmem:[%s7457_s7 + $0x50] sm:$0xff]   ;;  %v5366_v17 = vld [vmem:[%s7457_s7 + $0x60] sm:$0xff]  }
 0x1e2   :  { %4765 = vmatmul.mubr.bf16.vlgmr.msra.gmra.mrb[0].mxu1 %v860_v0 }
 0x1e3   :  { %4805 = vmatpush3.bf16.msra.mxu1 %v5344_v38  ;;  %4797 = vmatmul.mubr.bf16.gmra.mrb[12].mxu0 %v814_v26  ;;  %v865_v36 = vshll.u32 %v815_v59, 16  ;;  %v1110_v18 = vrot.slane %v815_v59, 1  ;;  %v5346_v26 = vld [vmem:[%s7455_s5 + $0x90] sm:$0xff]  }
 0x1e4   :  { %4806 = vmatprep.subr.bf16.mxu1 %v7471_v13  ;;  %4768 = vmatprep.mubr.msk.bf16.mxu1 %vm5542_vm4, %v7471_v13 }
 0x1e5   :  { %v867_v53 = vrot.slane %v865_v36, 1  ;;  %4800 = vmatprep.mubr.msk.bf16.mxu0 %vm5542_vm4, %v7471_v13  ;;  %v1111_v47 = vsel %vm306_vm2, %v1108_v25, %v1110_v18  ;;  %v1113_v50 = vsel %vm306_vm2, %v1110_v18, %v1112_v2  ;;  %v869_v25 = vshrl.u32 %v815_v59, 16 }
 0x1e7   :  { %4807 = vmatpush3.bf16.msra.mxu1 %v5345_v52  ;;  %v868_v11 = vsel %vm848_vm5, %v863_v10, %v867_v53  ;;  %v871_v51 = vor.u32 %v869_v25, %v867_v53 }
 0x1e8   :  { %4808 = vmatprep.subr.bf16.mxu1 %v7471_v13 }
 0x1ea   :  { %4769 = vmatmul.mubr.bf16.gmra.mrb[4].mxu1 %v868_v11 }
 0x1eb   :  { %4809 = vmatpush3.bf16.msra.mxu1 %v5346_v26  ;;  %4801 = vmatmul.mubr.bf16.gmra.mrb[16].mxu0 %v815_v59 }
 0x1ec   :  { %4810 = vmatprep.subr.bf16.mxu1 %v7471_v13  ;;  %4772 = vmatprep.mubr.msk.bf16.mxu1 %vm5542_vm4, %v7471_v13 }
 0x1ed   :  { %4838 = vmatprep.mubr.msk.bf16.mxu0 %vm1289_vm6, %v5352_v57 }
 0x1ef   :  { %4811 = vmatpush3.bf16.msra.mxu1 %v5347_v62 }
 0x1f0   :  { %4812 = vmatprep.subr.bf16.mxu1 %v7471_v13 }
 0x1f2   :  { %4773 = vmatmul.mubr.bf16.gmra.mrb[8].mxu1 %v871_v51 }
 0x1f3   :  { %4813 = vmatpush3.bf16.msra.mxu1 %v5348_v7  ;;  %4820 = vmatprep.mubr.msk.bf16.mxu1 %vm5542_vm4, %v7471_v13 }
 0x1f4   :  { %4814 = vmatprep.subr.bf16.mxu1 %v7471_v13 }
 0x1f7   :  { %4815 = vmatpush3.bf16.msra.mxu1 %v5349_v28 }
 0x1f8   :  { %4816 = vmatprep.subr.bf16.mxu1 %v7471_v13 }
 0x1fb   :  { %4817 = vmatpush3.bf16.msra.mxu1 %v5350_v45 }
 0x1fc   :  { %4818 = vmatprep.subr.bf16.mxu1 %v7471_v13 }
 0x1ff   :  { %4819 = vmatpush3.bf16.msra.mxu1 %v5351_v63 }
 0x200   :  { %4842 = vmatprep.subr.bf16.mxu1 %v5362_v48 }
 0x202   :  { %4821 = vmatmul.mubr.bf16.vlgmr.msra.gmra.mrb[12].mxu1 %v1109_v32  ;;  %v5363_v32 = vld [vmem:[%s7457_s7 + $0x48] sm:$0xff]  }
 0x203   :  { %4824 = vmatprep.mubr.msk.bf16.mxu1 %vm5542_vm4, %v7471_v13  ;;  %4843 = vmatpush3.bf16.msra.mxu1 %v5362_v48 }
 0x204   :  { %4844 = vmatprep.subr.bf16.mxu1 %v5363_v32 }
 0x207   :  { %4845 = vmatpush3.bf16.msra.mxu1 %v5363_v32 }
 0x208   :  { %4846 = vmatprep.subr.bf16.mxu1 %v5364_v23 }
 0x20a   :  { %4825 = vmatmul.mubr.bf16.gmra.mrb[16].mxu1 %v1111_v47 }
 0x20b   :  { %4828 = vmatprep.mubr.msk.bf16.mxu1 %vm5542_vm4, %v7471_v13  ;;  %4847 = vmatpush3.bf16.msra.mxu1 %v5364_v23 }
 0x20c   :  { %4848 = vmatprep.subr.bf16.mxu1 %v5365_v33 }
 0x20f   :  { %4849 = vmatpush3.bf16.msra.mxu1 %v5365_v33 }
 0x210   :  { %4850 = vmatprep.subr.bf16.mxu1 %v5366_v17 }
 0x212   :  { %4829 = vmatmul.mubr.bf16.gmra.mrb[20].mxu1 %v1113_v50 }
 0x213   :  { %4851 = vmatpush3.bf16.msra.mxu1 %v5366_v17 }
 0x2ae   :  { %v1062_v54 = vpop.f32.mrb[8].mxu0 }
 0x2af   :  { %v4794_v38 = vpop.f32.mrb[9].mxu0 }
 0x2b0   :  { %v1065_v61 = vpop.f32.mrb[10].mxu0  ;;  %v4308_v38 = vld [vmem:[%s7456_s6] ss:$0 sm:$0xff] }
 0x2b1   :  { %v4795_v2 = vpop.f32.mrb[11].mxu0 }
 0x2b5   :  { %v957_v59 = vpop.f32.mrb[0].mxu1 }
 0x2b6   :  { %v1063_v0 = vadd.f32 %v1062_v54, %v957_v59  ;;  %v4766_v52 = vpop.f32.mrb[1].mxu1  ;;  %v1070_v46 = vpop.f32.mrb[12].mxu0 }
 0x2b7   :  { %v960_v36 = vpop.f32.mrb[2].mxu1  ;;  %v4798_v18 = vpop.f32.mrb[13].mxu0 }
 0x2b8   :  { %v1066_v10 = vadd.f32 %v1065_v61, %v960_v36  ;;  %v4767_v53 = vpop.f32.mrb[3].mxu1  ;;  %v1073_v47 = vpop.f32.mrb[14].mxu0 }
 0x2b9   :  { %v4799_v50 = vpop.f32.mrb[15].mxu0 }
 0x2bd   :  { %v965_v11 = vpop.f32.mrb[4].mxu1 }
 0x2be   :  { %v1071_v26 = vadd.f32 %v1070_v46, %v965_v11  ;;  %v4770_v62 = vpop.f32.mrb[5].mxu1  ;;  %v1078_v25 = vpop.f32.mrb[16].mxu0 }
 0x2bf   :  { %v968_v7 = vpop.f32.mrb[6].mxu1  ;;  %v4802_v51 = vpop.f32.mrb[17].mxu0 }
 0x2c0   :  { %v1074_v28 = vadd.f32 %v1073_v47, %v968_v7  ;;  %v4771_v45 = vpop.f32.mrb[7].mxu1  ;;  %v1081_v63 = vpop.f32.mrb[18].mxu0 }
 0x2c1   :  { %v4803_v57 = vpop.f32.mrb[19].mxu0 }
 0x2c5   :  { %v973_v48 = vpop.f32.mrb[8].mxu1 }
 0x2c6   :  { %v1079_v32 = vadd.f32 %v1078_v25, %v973_v48  ;;  %v4774_v23 = vpop.f32.mrb[9].mxu1 }
 0x2c7   :  { %v976_v33 = vpop.f32.mrb[10].mxu1 }
 0x2c8   :  { %v1082_v17 = vadd.f32 %v1081_v63, %v976_v33  ;;  %v4775_v54 = vpop.f32.mrb[11].mxu1 }
 0x2d5   :  { %v1199_v61 = vpop.f32.mrb[12].mxu1 }
 0x2d6   :  { %v1222_v2 = vadd.f32 %v1199_v61, %v1063_v0  ;;  %v4822_v59 = vpop.f32.mrb[13].mxu1 }
 0x2d7   :  { %v1202_v52 = vpop.f32.mrb[14].mxu1 }
 0x2d8   :  { %v1234_v46 = vadd.f32 %v4308_v38, %v1222_v2  ;;  %v1223_v36 = vadd.f32 %v1202_v52, %v1066_v10  ;;  %v4823_v18 = vpop.f32.mrb[15].mxu1 }
 0x2da   :  { %v1240_v53 = vmax.f32 %v1234_v46, 0.0  ;;  %v1235_v47 = vadd.f32 %v4308_v38, %v1223_v36 }
 0x2dc   :  { %v1241_v50 = vmax.f32 %v1235_v47, 0.0  ;;  %v1252_v62 = vrot.slane %v1240_v53, 1 }
 0x2dd   :  { %v1207_v11 = vpop.f32.mrb[16].mxu1 }
 0x2de   :  { %v1253_v25 = vrot.slane %v1241_v50, 1  ;;  %v1224_v7 = vadd.f32 %v1207_v11, %v1071_v26  ;;  %v4826_v51 = vpop.f32.mrb[17].mxu1 }
 0x2df   :  { %v1210_v45 = vpop.f32.mrb[18].mxu1 }
 0x2e0   :  { %v1236_v63 = vadd.f32 %v4308_v38, %v1224_v7  ;;  %v1225_v57 = vadd.f32 %v1210_v45, %v1074_v28  ;;  %v4827_v48 = vpop.f32.mrb[19].mxu1  ;;  %v1254_v23 = vsel %vm306_vm2, %v1252_v62, %v1253_v25 }
 0x2e1   :  { %v1269_v0 = vmax.f32 %v1240_v53, %v1254_v23 }
 0x2e2   :  { %v1242_v33 = vmax.f32 %v1236_v63, 0.0  ;;  %v1237_v54 = vadd.f32 %v4308_v38, %v1225_v57 }
 0x2e4   :  { %v1255_v61 = vrot.slane %v1242_v33, 1  ;;  %v1243_v10 = vmax.f32 %v1237_v54, 0.0  ;;  %v1890_v54 = vmul.f32 %v6118_v3, %v5817_v8 }
 0x2e5   :  { %v1215_v2 = vpop.f32.mrb[20].mxu1 }
 0x2e6   :  { %v1257_v59 = vrot.slane %v1243_v10, 1  ;;  %v1226_v52 = vadd.f32 %v1215_v2, %v1079_v32  ;;  %v4830_v46 = vpop.f32.mrb[21].mxu1  ;;  %v1256_v36 = vsel %vm306_vm2, %v1253_v25, %v1255_v61  ;;  %v1994_v32 = vmul.f32 %v6118_v3, %v5810_v5 }
 0x2e7   :  { %v1218_v18 = vpop.f32.mrb[22].mxu1  ;;  %v1270_v26 = vmax.f32 %v1241_v50, %v1256_v36  ;;  %v1993_v25 = vmul.f32 %v6151_v42, %v5810_v5  ;;  %v1967_v50 = vmul.f32 %v6221_v15, %v5826_v12 }
 0x2e8   :  { %v1238_v47 = vadd.f32 %v4308_v38, %v1226_v52  ;;  %v1227_v11 = vadd.f32 %v1218_v18, %v1082_v17  ;;  %v4831_v7 = vpop.f32.mrb[23].mxu1  ;;  %v1258_v28 = vsel %vm306_vm2, %v1255_v61, %v1257_v59  ;;  %v1968_v17 = vmul.f32 %v6201_v27, %v5826_v12 }
 0x2e9   :  { %v1278_v51 = vpack.c.bf16 %v1270_v26, %v1269_v0  ;;  %v1271_v62 = vmax.f32 %v1242_v33, %v1258_v28  ;;  %v2070_v0 = vmul.f32 %v6221_v15, %v5837_v20  ;;  %v1889_v61 = vmul.f32 %v6151_v42, %v5817_v8 }
 0x2ea   :  { %v1244_v53 = vmax.f32 %v1238_v47, 0.0  ;;  %v1239_v45 = vadd.f32 %v4308_v38, %v1227_v11  ;;  %v2071_v38 = vmul.f32 %v6201_v27, %v5837_v20  ;;  %v2020_v46 = vrot.slane %v1994_v32, 1 }
 0x2eb   :  { %4832 = vmatprep.subr.bf16.mxu0 %v1278_v51  ;;  %v2019_v36 = vrot.slane %v1993_v25, 1  ;;  %v1981_v26 = vadd.f32 %v1968_v17, %v1890_v54  ;;  %v1980_v47 = vadd.f32 %v1967_v50, %v1889_v61  ;;  %v2096_v7 = vrot.slane %v2070_v0, 1  ;;  %v5355_v50 = vld [vmem:[%s7457_s7 + $0x8] sm:$0xff]  }
 0x2ec   :  { %v1259_v63 = vrot.slane %v1244_v53, 1  ;;  %v1245_v57 = vmax.f32 %v1239_v45, 0.0  ;;  %4833 = vmatpush3.bf16.msra.mxu0 %v1278_v51  ;;  %v2097_v11 = vrot.slane %v2071_v38, 1  ;;  %v2147_v51 = vmul.f32 %v6151_v42, %v5812_v6 }
 0x2ed   :  { %v2023_v45 = vsel %vm306_vm2, %v2020_v46, %v2022_v1  ;;  %v5353_v1 = vld [vmem:[%s7460_s10 + $0x8] ss:$0 sps:$4 sm:$0xff]   ;;  %v2225_v25 = vmul.f32 %v6201_v27, %v5840_v22  ;;  %v2224_v17 = vmul.f32 %v6221_v15, %v5840_v22  ;;  %v5356_v15 = vld [vmem:[%s7457_s7 + $0x10] sm:$0xff]  }
 0x2ee   :  { %v1261_v48 = vrot.slane %v1245_v57, 1  ;;  %v1260_v23 = vsel %vm306_vm2, %v1257_v59, %v1259_v63  ;;  %v2098_v42 = vsel %vm306_vm2, %v2096_v7, %v2097_v11 }
 0x2ef   :  { %v1272_v33 = vmax.f32 %v1243_v10, %v1260_v23  ;;  %v2148_v10 = vmul.f32 %v6118_v3, %v5812_v6  ;;  %v5354_v3 = vld [vmem:[%s7457_s7] sm:$0xff]   ;;  %v2251_v27 = vrot.slane %v2225_v25, 2 }
 0x2f0   :  { %v1262_v2 = vsel %vm306_vm2, %v1259_v63, %v1261_v48  ;;  %v1274_v52 = vmax.f32 %v1245_v57, %v1261_v48  ;;  %v2058_v63 = vadd.f32 %v2023_v45, %v1981_v26 }
 0x2f1   :  { %v1273_v18 = vmax.f32 %v1244_v53, %v1262_v2  ;;  %v1279_v59 = vpack.c.bf16 %v1272_v33, %v1271_v62  ;;  %v2021_v53 = vsel %vm306_vm2, %v2019_v36, %v2020_v46  ;;  %v2100_v62 = vsel %vm306_vm2, %v2097_v11, %v2099_v35  ;;  %v5357_v2 = vld [vmem:[%s7457_s7 + $0x18] sm:$0xff]   ;;  %v6677_v46 = vld [vmem:[%s7454_s4] ss:$0 sm:$0xff]  ;;  %v5360_v11 = vld [vmem:[%s7457_s7 + $0x30] sm:$0xff]  }
 0x2f2   :  { %v2057_v57 = vadd.f32 %v2021_v53, %v1980_v47  ;;  %v2135_v32 = vadd.f32 %v2100_v62, %v2058_v63  ;;  %v2174_v29 = vrot.slane %v2148_v10, 2  ;;  %v2173_v35 = vrot.slane %v2147_v51, 2  ;;  %v5361_v51 = vld [vmem:[%s7457_s7 + $0x38] sm:$0xff]  }
 0x2f3   :  { %v1280_v28 = vpack.c.bf16 %v1274_v52, %v1273_v18  ;;  %4834 = vmatprep.subr.bf16.mxu0 %v1279_v59  ;;  %v2250_v33 = vrot.slane %v2224_v17, 2  ;;  %v2254_v14 = vsel %vm469_vm1, %v2251_v27, %v2253_v39  ;;  %v5358_v39 = vld [vmem:[%s7457_s7 + $0x20] sm:$0xff]   ;;  %v6715_v63 = vld [vmem:[%s7457_s7 + $0x78] sm:$0xff]  }
 0x2f4   :  { %4835 = vmatpush3.bf16.msra.mxu0 %v1279_v59  ;;  %v2134_v48 = vadd.f32 %v2098_v42, %v2057_v57  ;;  %v2177_v23 = vsel %vm469_vm1, %v2174_v29, %v2176_v43  ;;  %v2175_v0 = vsel %vm469_vm1, %v2173_v35, %v2174_v29  ;;  %v5359_v59 = vld [vmem:[%s7457_s7 + $0x28] sm:$0xff]   ;;  %v6722_v57 = vld [vmem:[%s7457_s7 + $0x80] sm:$0xff]   ;;  %v1857_v42 = vpop.permute.xlu0 %1856 }
 0x2f5   :  { %5314 = vmatprep.subr.msk.bf16.mxu0 %vm306_vm2, %v1280_v28  ;;  %v1297_v19 = vsel %vm306_vm2, %v1280_v28, 0  ;;  %v2212_v38 = vadd.f32 %v2177_v23, %v2135_v32  ;;  %v2252_v43 = vsel %vm469_vm1, %v2250_v33, %v2251_v27  ;;  %v1999_v25 = vmul.f32 %v1857_v42, %v5810_v5 }
 0x2f6   :  { %v2211_v54 = vadd.f32 %v2175_v0, %v2134_v48  ;;  %v1972_v23 = vmul.f32 %v6349_v16, %v5826_v12  ;;  %v1894_v33 = vmul.f32 %v6333_v40, %v5817_v8 }
 0x2f7   :  { %v2289_v61 = vadd.f32 %v2254_v14, %v2212_v38  ;;  %v2030_v38 = vrot.slane %v1999_v25, 1 }
 0x2f8   :  { %4837 = vmatpush3.bf16.msra.mxu0 %v1297_v19  ;;  %v2288_v52 = vadd.f32 %v2252_v43, %v2211_v54  ;;  %v1862_v19 = vpop.permute.xlu1 %1861  ;;  %v1895_v43 = vmul.f32 %v1857_v42, %v5817_v8 }
 0x2f9   :  { %4862 = vmatprep.subr.bf16.mxu0 %v5354_v3  ;;  %v2302_v31 = vadd.f32 %v6677_v46, %v2289_v61  ;;  %v2000_v48 = vmul.f32 %v1862_v19, %v5810_v5  ;;  %v6741_v61 = vmul.f32 %v1862_v19, %v5812_v6  ;;  %v2031_v40 = vsel %vm306_vm2, %v2028_v21, %v2030_v38 }
 0x2fa   :  { %v2301_v36 = vadd.f32 %v6677_v46, %v2288_v52  ;;  %v1985_v52 = vadd.f32 %v1972_v23, %v1894_v33 }
 0x2fb   :  { %4839 = vmatmul.mubr.msk.bf16.vlgmr.msra.gmra.mrb[20].mxu0 %vm1289_vm6, %v5353_v1  ;;  %v2315_v18 = vmax.f32 %v2302_v31, 0.0  ;;  %v1935_v1 = vpop.permute.xlu0 %1934  ;;  %v2032_v14 = vrot.slane %v2000_v48, 1  ;;  %v2186_v49 = vrot.slane %v6741_v61, 2 }
 0x2fc   :  { %4863 = vmatpush3.bf16.msra.mxu0 %v5354_v3  ;;  %v2314_v26 = vmax.f32 %v2301_v36, 0.0  ;;  %v6702_v3 = vld [vmem:[%s7457_s7 + $0x68] sm:$0xff]   ;;  %v1940_v32 = vpop.permute.xlu1 %1939  ;;  %v1973_v0 = vmul.f32 %v1935_v1, %v5826_v12  ;;  %v2076_v27 = vmul.f32 %v1935_v1, %v5837_v20 }
 0x2fd   :  { %4864 = vmatprep.subr.bf16.mxu0 %v5355_v50  ;;  %v2341_v47 = vrot.slane %v2315_v18, 1  ;;  %4852 = vmatprep.subr.bf16.mxu1 %v6702_v3  ;;  %v6738_v54 = vmul.f32 %v1940_v32, %v5837_v20  ;;  %v1974_v16 = vmul.f32 %v1940_v32, %v5826_v12  ;;  %v6751_v31 = vmul.f32 %v1940_v32, %v5840_v22 }
 0x2fe   :  { %v2340_v7 = vrot.slane %v2314_v26, 1  ;;  %4853 = vmatpush3.bf16.msra.mxu1 %v6702_v3 }
 0x2ff   :  { %v2344_v10 = vsel %vm306_vm2, %v2341_v47, %v6486_v41  ;;  %v6709_v41 = vld [vmem:[%s7457_s7 + $0x70] sm:$0xff]   ;;  %v1867_v29 = vpop.permute.xlu0 %1866 }
 0x300   :  { %4865 = vmatpush3.bf16.msra.mxu0 %v5355_v50  ;;  %v2342_v28 = vsel %vm306_vm2, %v2340_v7, %v2341_v47  ;;  %v2379_v53 = vmax.f32 %v2315_v18, %v2344_v10  ;;  %4854 = vmatprep.subr.bf16.mxu1 %v6709_v41  ;;  %v1872_v35 = vpop.permute.xlu1 %1871  ;;  %v1896_v18 = vmul.f32 %v1862_v19, %v5817_v8  ;;  %v2109_v7 = vrot.slane %v6738_v54, 1 }
 0x301   :  { %4866 = vmatprep.subr.bf16.mxu0 %v5356_v15  ;;  %v2378_v45 = vmax.f32 %v2314_v26, %v2342_v28  ;;  %v2107_v26 = vrot.slane %v2076_v27, 1  ;;  %v2001_v47 = vmul.f32 %v1867_v29, %v5810_v5  ;;  %v2062_v28 = vadd.f32 %v2031_v40, %v1985_v52 }
 0x302   :  { %4855 = vmatpush3.bf16.msra.mxu1 %v6709_v41  ;;  %v1987_v21 = vadd.f32 %v1974_v16, %v1896_v18  ;;  %v2033_v10 = vsel %vm306_vm2, %v2030_v38, %v2032_v14  ;;  %v1898_v33 = vmul.f32 %v1872_v35, %v5817_v8  ;;  %v2155_v34 = vmul.f32 %v1867_v29, %v5812_v6 }
 0x303   :  { %v6696_v62 = vpack.c.bf16 %v2379_v53, %v2378_v45  ;;  %4856 = vmatprep.subr.bf16.mxu1 %v6715_v63  ;;  %v6727_v17 = vpop.permute.xlu0 %1944  ;;  %v6763_v53 = vmul.f32 %v1872_v35, %v5810_v5  ;;  %v2034_v32 = vrot.slane %v2001_v47, 1  ;;  %v2110_v38 = vsel %vm306_vm2, %v2107_v26, %v2109_v7 }
 0x304   :  { %4867 = vmatpush3.bf16.msra.mxu0 %v5356_v15  ;;  %v1950_v50 = vpop.permute.xlu1 %1949  ;;  %v2153_v15 = vmul.f32 %v1857_v42, %v5812_v6  ;;  %v6766_v42 = vmul.f32 %v1872_v35, %v5812_v6  ;;  %v1975_v25 = vmul.f32 %v6727_v17, %v5826_v12  ;;  %v2078_v44 = vmul.f32 %v6727_v17, %v5837_v20 }
 0x305   :  { %4868 = vmatprep.subr.bf16.mxu0 %v5357_v2  ;;  %v2036_v16 = vrot.slane %v6763_v53, 1  ;;  %v2035_v40 = vsel %vm306_vm2, %v2032_v14, %v2034_v32  ;;  %v6810_v47 = vmul.f32 %v1950_v50, %v5840_v22 }
 0x306   :  { %4857 = vmatpush3.bf16.msra.mxu1 %v6715_v63  ;;  %v2190_v35 = vrot.slane %v6766_v42, 2  ;;  %v2111_v18 = vrot.slane %v2078_v44, 1 }
 0x307   :  { %4882 = vmatprep.subr.bf16.mxu1 %v6722_v57 }
 0x308   :  { %4869 = vmatpush3.bf16.msra.mxu0 %v5357_v2  ;;  %v6745_v2 = vpop.permute.xlu0 %1876  ;;  %v6754_v36 = vpop.permute.xlu1 %1881 }
 0x309   :  { %4870 = vmatprep.subr.bf16.mxu0 %v5358_v39  ;;  %v2004_v24 = vmul.f32 %v6754_v36, %v5810_v5 }
 0x30b   :  { %v2040_v44 = vrot.slane %v2004_v24, 1  ;;  %v2158_v24 = vmul.f32 %v6754_v36, %v5812_v6 }
 0x30c   :  { %4871 = vmatpush3.bf16.msra.mxu0 %v5358_v39  ;;  %v2230_v39 = vmul.f32 %v1935_v1, %v5840_v22  ;;  %v2108_v1 = vsel %vm306_vm2, %v2105_v56, %v2107_v26  ;;  %v6773_v48 = vpop.permute.xlu0 %1954  ;;  %v1960_v56 = vpop.permute.xlu1 %1959  ;;  %v1976_v26 = vmul.f32 %v1950_v50, %v5826_v12 }
 0x30d   :  { %4872 = vmatprep.subr.bf16.mxu0 %v5359_v59  ;;  %v2080_v53 = vmul.f32 %v6773_v48, %v5837_v20 }
 0x30e   :  { %v2261_v45 = vrot.slane %v2230_v39, 2 }
 0x310   :  { %4873 = vmatpush3.bf16.msra.mxu0 %v5359_v59  ;;  %v1986_v59 = vadd.f32 %v1973_v0, %v1895_v43  ;;  %v6782_v0 = vmul.f32 %v1950_v50, %v5837_v20  ;;  %v6793_v61 = vsel %vm469_vm1, %v2259_v4, %v2261_v45  ;;  %v2003_v4 = vmul.f32 %v6745_v2, %v5810_v5  ;;  %v1887_v14 = vpop.permute.xlu0 %1886 }
 0x311   :  { %4874 = vmatprep.subr.bf16.mxu0 %v5360_v11  ;;  %v1899_v50 = vmul.f32 %v6745_v2, %v5817_v8  ;;  %v1901_v13 = vmul.f32 %v1887_v14, %v5817_v8 }
 0x312   :  { %v2063_v19 = vadd.f32 %v2033_v10, %v1986_v59  ;;  %v2188_v59 = vrot.slane %v2155_v34, 2  ;;  %v2037_v10 = vsel %vm306_vm2, %v2034_v32, %v2036_v16  ;;  %v2005_v32 = vmul.f32 %v1887_v14, %v5810_v5 }
 0x313   :  { %v2267_v5 = vrot.slane %v6810_v47, 2 }
 0x314   :  { %4875 = vmatpush3.bf16.msra.mxu0 %v5360_v11  ;;  %v2184_v11 = vrot.slane %v2153_v15, 2  ;;  %v1897_v15 = vmul.f32 %v1867_v29, %v5817_v8  ;;  %v2140_v52 = vadd.f32 %v2110_v38, %v2063_v19  ;;  %v2113_v29 = vrot.slane %v6782_v0, 1  ;;  %v6820_v19 = vpop.permute.xlu1 %1964 }
 0x315   :  { %4876 = vmatprep.subr.bf16.mxu0 %v5361_v51 }
 0x316   :  { %v2185_v23 = vsel %vm469_vm1, %v2182_v9, %v2184_v11  ;;  %v2187_v27 = vsel %vm469_vm1, %v2184_v11, %v2186_v49  ;;  %v2139_v9 = vadd.f32 %v2108_v1, %v2062_v28  ;;  %v1988_v39 = vadd.f32 %v1975_v25, %v1897_v15 }
 0x317   :  { %v1977_v11 = vmul.f32 %v6773_v48, %v5826_v12  ;;  %v2217_v1 = vadd.f32 %v2187_v27, %v2140_v52  ;;  %v2064_v25 = vadd.f32 %v2035_v40, %v1987_v21  ;;  %v2114_v0 = vsel %vm306_vm2, %v2111_v18, %v2113_v29 }
 0x318   :  { %4877 = vmatpush3.bf16.msra.mxu0 %v5361_v51  ;;  %v2263_v51 = vrot.slane %v6751_v31, 2  ;;  %v2216_v28 = vadd.f32 %v2185_v23, %v2139_v9  ;;  %v2065_v38 = vadd.f32 %v2037_v10, %v1988_v39  ;;  %v2038_v23 = vrot.slane %v2003_v4, 1 }
 0x319   :  { %4910 = vmatprep.subr.bf16.mxu0 %v6696_v62  ;;  %v2189_v15 = vsel %vm469_vm1, %v2186_v49, %v2188_v59  ;;  %v1990_v34 = vadd.f32 %v1977_v11, %v1899_v50  ;;  %v1979_v9 = vmul.f32 %v6820_v19, %v5826_v12  ;;  %v2191_v21 = vsel %vm469_vm1, %v2188_v59, %v2190_v35 }
 0x31a   :  { %v6798_v43 = vsel %vm469_vm1, %v2261_v45, %v2263_v51  ;;  %v6816_v45 = vmul.f32 %v1960_v56, %v5837_v20  ;;  %v2232_v27 = vmul.f32 %v6727_v17, %v5840_v22  ;;  %v2115_v40 = vrot.slane %v2080_v53, 1 }
 0x31b   :  { %v1989_v39 = vadd.f32 %v1976_v26, %v1898_v33  ;;  %v2142_v49 = vadd.f32 %v2114_v0, %v2065_v38  ;;  %v2112_v4 = vsel %vm306_vm2, %v2109_v7, %v2111_v18  ;;  %v2157_v59 = vmul.f32 %v6745_v2, %v5812_v6 }
 0x31c   :  { %v2117_v52 = vrot.slane %v6816_v45, 1  ;;  %v2041_v11 = vsel %vm306_vm2, %v2038_v23, %v2040_v44  ;;  %v2042_v17 = vrot.slane %v2005_v32, 1  ;;  %v1900_v10 = vmul.f32 %v6754_v36, %v5817_v8 }
 0x31d   :  { %v1978_v33 = vmul.f32 %v1960_v56, %v5826_v12  ;;  %v2067_v26 = vadd.f32 %v2041_v11, %v1990_v34  ;;  %v1992_v47 = vadd.f32 %v1979_v9, %v1901_v13  ;;  %v2265_v45 = vrot.slane %v2232_v27, 2 }
 0x31e   :  { %v2039_v53 = vsel %vm306_vm2, %v2036_v16, %v2038_v23  ;;  %v2118_v54 = vsel %vm306_vm2, %v2115_v40, %v2117_v52  ;;  %v2082_v7 = vmul.f32 %v6820_v19, %v5837_v20  ;;  %v2141_v18 = vadd.f32 %v2112_v4, %v2064_v25 }
 0x31f   :  { %v2219_v2 = vadd.f32 %v2191_v21, %v2142_v49  ;;  %v2194_v38 = vrot.slane %v2158_v24, 2  ;;  %v2235_v50 = vmul.f32 %v1960_v56, %v5840_v22  ;;  %v2192_v0 = vrot.slane %v2157_v59, 2 }
 0x320   :  { %v2116_v8 = vsel %vm306_vm2, %v2113_v29, %v2115_v40  ;;  %v2234_v12 = vmul.f32 %v6773_v48, %v5840_v22  ;;  %v2043_v13 = vsel %vm306_vm2, %v2040_v44, %v2042_v17  ;;  %v2066_v36 = vadd.f32 %v2039_v53, %v1989_v39 }
 0x321   :  { %v1991_v16 = vadd.f32 %v1978_v33, %v1900_v10  ;;  %v2144_v23 = vadd.f32 %v2118_v54, %v2067_v26  ;;  %v2069_v32 = vadd.f32 %v2042_v17, %v1992_v47  ;;  %v2293_v34 = vadd.f32 %v6793_v61, %v2216_v28 }
 0x322   :  { %v2294_v20 = vadd.f32 %v6798_v43, %v2217_v1  ;;  %v2119_v25 = vrot.slane %v2082_v7, 1  ;;  %v2159_v9 = vmul.f32 %v1887_v14, %v5812_v6  ;;  %v2218_v56 = vadd.f32 %v2189_v15, %v2141_v18 }
 0x323   :  { %v2266_v29 = vsel %vm469_vm1, %v2263_v51, %v2265_v45  ;;  %v2143_v21 = vadd.f32 %v2116_v8, %v2066_v36  ;;  %v2068_v48 = vadd.f32 %v2043_v13, %v1991_v16  ;;  %v2268_v44 = vsel %vm469_vm1, %v2265_v45, %v2267_v5 }
 0x324   :  { %v2195_v27 = vsel %vm469_vm1, %v2192_v0, %v2194_v38  ;;  %v2271_v40 = vrot.slane %v2235_v50, 2  ;;  %v2269_v39 = vrot.slane %v2234_v12, 2  ;;  %v2296_v49 = vadd.f32 %v2268_v44, %v2219_v2 }
 0x325   :  { %v2193_v61 = vsel %vm469_vm1, %v2190_v35, %v2192_v0  ;;  %v2221_v43 = vadd.f32 %v2195_v27, %v2144_v23  ;;  %v2146_v6 = vadd.f32 %v2119_v25, %v2069_v32  ;;  %v2120_v14 = vsel %vm306_vm2, %v2117_v52, %v2119_v25 }
 0x326   :  { %v2236_v31 = vmul.f32 %v6820_v19, %v5840_v22  ;;  %v2196_v51 = vrot.slane %v2159_v9, 2  ;;  %v2306_v28 = vadd.f32 %v6677_v46, %v2293_v34  ;;  %v6873_v1 = vadd.f32 %v6677_v46, %v2294_v20 }
 0x327   :  { %v2295_v15 = vadd.f32 %v2266_v29, %v2218_v56  ;;  %v2220_v24 = vadd.f32 %v2193_v61, %v2143_v21  ;;  %v2145_v4 = vadd.f32 %v2120_v14, %v2068_v48  ;;  %v2272_v42 = vsel %vm469_vm1, %v2269_v39, %v2271_v40 }
 0x328   :  { %v6877_v35 = vadd.f32 %v6677_v46, %v2296_v49  ;;  %v2298_v59 = vadd.f32 %v2272_v42, %v2221_v43  ;;  %v2223_v11 = vadd.f32 %v2196_v51, %v2146_v6  ;;  %v2270_v52 = vsel %vm469_vm1, %v2267_v5, %v2269_v39 }
 0x329   :  { %v2273_v17 = vrot.slane %v2236_v31, 2  ;;  %v2197_v22 = vsel %vm469_vm1, %v2194_v38, %v2196_v51  ;;  %v2319_v19 = vmax.f32 %v2306_v28, 0.0  ;;  %v2320_v10 = vmax.f32 %v6873_v1, 0.0  ;;  %v5468_v51 = vld [vmem:[%s7459_s9] sm:$0xff]  }
 0x32a   :  { %v2297_v33 = vadd.f32 %v2270_v52, %v2220_v24  ;;  %v2222_v26 = vadd.f32 %v2197_v22, %v2145_v4  ;;  %v2308_v47 = vadd.f32 %v6677_v46, %v2295_v15  ;;  %v6884_v45 = vadd.f32 %v6677_v46, %v2298_v59 }
 0x32b   :  { %v2300_v53 = vadd.f32 %v2273_v17, %v2223_v11  ;;  %v2322_v54 = vmax.f32 %v6877_v35, 0.0  ;;  %v2274_v7 = vsel %vm469_vm1, %v2271_v40, %v2273_v17  ;;  %v2349_v18 = vrot.slane %v2319_v19, 1  ;;  %v6925_v11 = vld [vmem:[%s7457_s7 + $0x88] sm:$0xff]  }
 0x32c   :  { %v2351_v5 = vrot.slane %v2320_v10, 1  ;;  %v2321_v2 = vmax.f32 %v2308_v47, 0.0  ;;  %v2310_v38 = vadd.f32 %v6677_v46, %v2297_v33  ;;  %v2299_v50 = vadd.f32 %v2274_v7, %v2222_v26 }
 0x32d   :  { %v2324_v8 = vmax.f32 %v6884_v45, 0.0  ;;  %v6891_v12 = vadd.f32 %v6677_v46, %v2300_v53  ;;  %v2350_v23 = vsel %vm306_vm2, %v6482_v30, %v2349_v18  ;;  %v2355_v32 = vrot.slane %v2322_v54, 1  ;;  %v6951_v45 = vld [vmem:[%s7457_s7 + $0xa0] sm:$0xff]  }
 0x32e   :  { %v2352_v20 = vsel %vm306_vm2, %v2349_v18, %v2351_v5  ;;  %v2353_v25 = vrot.slane %v2321_v2, 1  ;;  %v2323_v9 = vmax.f32 %v2310_v38, 0.0  ;;  %v2312_v56 = vadd.f32 %v6677_v46, %v2299_v50  ;;  %v6944_v18 = vld [vmem:[%s7457_s7 + $0x98] sm:$0xff]   ;;  %v6959_v50 = vld [vmem:[%s7457_s7 + $0xa8] sm:$0xff]  }
 0x32f   :  { %v2326_v48 = vmax.f32 %v6891_v12, 0.0  ;;  %v2382_v44 = vmax.f32 %v2318_v37, %v2350_v23  ;;  %v2359_v27 = vrot.slane %v2324_v8, 1  ;;  %v2383_v40 = vmax.f32 %v2319_v19, %v2352_v20  ;;  %v6978_v12 = vld [vmem:[%s7457_s7 + $0xb8] sm:$0xff]   ;;  %v5472_v23 = vld [vmem:[%s7455_s5 + $0x8] sm:$0xff]  }
 0x330   :  { %v2354_v46 = vsel %vm306_vm2, %v2351_v5, %v2353_v25  ;;  %v2356_v61 = vsel %vm306_vm2, %v2353_v25, %v2355_v32  ;;  %v2357_v43 = vrot.slane %v2323_v9, 1  ;;  %v2325_v6 = vmax.f32 %v2312_v56, 0.0  ;;  %v5475_v20 = vld [vmem:[%s7455_s5 + $0x18] sm:$0xff]   ;;  %v5476_v25 = vld [vmem:[%s7455_s5 + $0x20] sm:$0xff]  }
 0x331   :  { %v2384_v15 = vmax.f32 %v2320_v10, %v2354_v46  ;;  %v2385_v24 = vmax.f32 %v2321_v2, %v2356_v61  ;;  %v2363_v42 = vrot.slane %v2326_v48, 1  ;;  %v6933_v10 = vld [vmem:[%s7457_s7 + $0x90] sm:$0xff]   ;;  %v5479_v56 = vld [vmem:[%s7455_s5 + $0x38] sm:$0xff]  }
 0x332   :  { %v2358_v4 = vsel %vm306_vm2, %v2355_v32, %v2357_v43  ;;  %v2360_v52 = vsel %vm306_vm2, %v2357_v43, %v2359_v27  ;;  %v2361_v17 = vrot.slane %v2325_v6, 1  ;;  %v5473_v32 = vld [vmem:[%s7459_s9 + $0x18] ss:$0 sps:$4 sm:$0x11]  }
 0x333   :  { %v2394_v22 = vpack.c.bf16 %v2385_v24, %v2384_v15  ;;  %v2386_v19 = vmax.f32 %v2322_v54, %v2358_v4  ;;  %v2390_v7 = vmax.f32 %v2326_v48, %v2363_v42 }
 0x334   :  { %v2362_v33 = vsel %vm306_vm2, %v2359_v27, %v2361_v17  ;;  %v2364_v26 = vsel %vm306_vm2, %v2361_v17, %v2363_v42 }
 0x335   :  { %v2388_v53 = vmax.f32 %v2324_v8, %v2362_v33  ;;  %v2389_v54 = vmax.f32 %v2325_v6, %v2364_v26  ;;  %v2397_v2 = vpack.c.bf16 %v2390_v7, %v2390_v7  ;;  %v5469_v8 = vld [vmem:[%s7459_s9 + $0x8] sm:$0xff]  }
 0x337   :  { %v2396_v5 = vpack.c.bf16 %v2389_v54, %v2388_v53  ;;  %v2399_v38 = vand.u32 %v2397_v2, %v6353_v58  ;;  %v7477_v58 = vmov 0.0  }
 0x3ce   :  { %v4840_v0 = vpop.f32.mrb[20].mxu0 }
 0x3cf   :  { %v6893_v13 = vpack.c.bf16 %v4840_v0, %v4840_v0  ;;  %v1333_v36 = vpop.f32.mrb[21].mxu0  ;;  %v6966_v0 = vld [vmem:[%s7457_s7 + $0xb0] sm:$0xff]  }
 0x3d0   :  { %v4841_v16 = vpop.f32.mrb[22].mxu0 }
 0x3d1   :  { %v1336_v34 = vpop.f32.mrb[23].mxu0  ;;  %v1389_v21 = vshll.u32 %v6893_v13, 16  ;;  %v1609_v49 = vrot.slane %v6893_v13, 1  ;;  %v1393_v28 = vshrl.u32 %v6893_v13, 16  ;;  %v5471_v16 = vld [vmem:[%s7455_s5] sm:$0xff]  }
 0x3d2   :  { %v1347_v29 = vpack.c.bf16 %v1336_v34, %v1333_v36  ;;  %v5470_v36 = vld [vmem:[%s7459_s9 + $0x10] sm:$0xff]  }
 0x3d3   :  { %v1391_v14 = vrot.slane %v1389_v21, 1  ;;  %v5474_v34 = vld [vmem:[%s7455_s5 + $0x10] sm:$0xff]  }
 0x3d4   :  { %v1384_v30 = vshll.u32 %v1347_v29, 16  ;;  %4878 = vmatprep.mubr.bf16.mxu0 %v1347_v29  ;;  %v1608_v39 = vrot.slane %v1347_v29, 1  ;;  %v1382_v60 = vshrl.u32 %v1347_v29, 16 }
 0x3d5   :  { %4879 = vmatmul.mubr.bf16.vlgmr.msra.gmra.mrb[24].mxu0 %v6893_v13  ;;  %v1395_v59 = vor.u32 %v1393_v28, %v1391_v14  ;;  %v5477_v13 = vld [vmem:[%s7455_s5 + $0x28] sm:$0xff]  }
 0x3d6   :  { %4911 = vmatpush3.bf16.msra.mxu0 %v6696_v62  ;;  %v1386_v37 = vrot.slane %v1384_v30, 1  ;;  %v1610_v31 = vsel %vm306_vm2, %v1608_v39, %v1609_v49  ;;  %4924 = vmatprep.mubr.msk.bf16.mxu0 %vm730_vm0, %v5468_v51  ;;  %v2393_v62 = vpack.c.bf16 %v2383_v40, %v2382_v44 }
 0x3d7   :  { %4912 = vmatprep.subr.bf16.mxu0 %v6500_v55 }
 0x3d8   :  { %v1387_v1 = vor.u32 %v1386_v37, %v1382_v60 }
 0x3da   :  { %4913 = vmatpush3.bf16.msra.mxu0 %v6500_v55  ;;  %v1392_v35 = vsel %vm848_vm5, %v1387_v1, %v1391_v14  ;;  %v2387_v55 = vmax.f32 %v2323_v9, %v2360_v52  ;;  %v5478_v9 = vld [vmem:[%s7455_s5 + $0x30] sm:$0xff]  }
 0x3db   :  { %4914 = vmatprep.subr.bf16.mxu0 %v2393_v62  ;;  %4858 = vmatprep.mubr.bf16.mxu1 %v1392_v35 }
 0x3dc   :  { %4859 = vmatmul.mubr.bf16.vlgmr.msra.gmra.mrb[24].mxu1 %v1395_v59  ;;  %v2395_v47 = vpack.c.bf16 %v2387_v55, %v2386_v19  ;;  %v7037_v55 = vld [vmem:[%s7458_s8] ss:$0 sm:$0xff] }
 0x3dd   :  { %4883 = vmatpush3.bf16.msra.mxu1 %v6722_v57  ;;  %4898 = vmatprep.mubr.bf16.mxu1 %v1610_v31 }
 0x3de   :  { %4915 = vmatpush3.bf16.msra.mxu0 %v2393_v62  ;;  %4884 = vmatprep.subr.bf16.mxu1 %v6925_v11 }
 0x3df   :  { %4916 = vmatprep.subr.bf16.mxu0 %v2394_v22 }
 0x3e1   :  { %4885 = vmatpush3.bf16.msra.mxu1 %v6925_v11 }
 0x3e2   :  { %4917 = vmatpush3.bf16.msra.mxu0 %v2394_v22  ;;  %4886 = vmatprep.subr.bf16.mxu1 %v6933_v10 }
 0x3e3   :  { %4918 = vmatprep.subr.bf16.mxu0 %v2395_v47 }
 0x3e5   :  { %4887 = vmatpush3.bf16.msra.mxu1 %v6933_v10 }
 0x3e6   :  { %4919 = vmatpush3.bf16.msra.mxu0 %v2395_v47  ;;  %4888 = vmatprep.subr.bf16.mxu1 %v6944_v18 }
 0x3e7   :  { %4920 = vmatprep.subr.bf16.mxu0 %v2396_v5 }
 0x3e9   :  { %4889 = vmatpush3.bf16.msra.mxu1 %v6944_v18 }
 0x3ea   :  { %4921 = vmatpush3.bf16.msra.mxu0 %v2396_v5  ;;  %4890 = vmatprep.subr.bf16.mxu1 %v6951_v45 }
 0x3eb   :  { %4922 = vmatprep.subr.bf16.mxu0 %v2399_v38 }
 0x3ed   :  { %4891 = vmatpush3.bf16.msra.mxu1 %v6951_v45 }
 0x3ee   :  { %4923 = vmatpush3.bf16.msra.mxu0 %v2399_v38  ;;  %4892 = vmatprep.subr.bf16.mxu1 %v6959_v50 }
 0x3ef   :  { %4960 = vmatprep.subr.bf16.mxu0 %v7477_v58 }
 0x3f1   :  { %4893 = vmatpush3.bf16.msra.mxu1 %v6959_v50  ;;  %4925 = vmatmul.mubr.msk.bf16.vlgmr.msra.gmra.mrb[28].mxu0 %vm730_vm0, %v5469_v8 }
 0x3f2   :  { %4894 = vmatprep.subr.bf16.mxu1 %v6966_v0  ;;  %4928 = vmatprep.mubr.msk.bf16.mxu0 %vm730_vm0, %v5470_v36 }
 0x3f3   :  { %4961 = vmatpush3.bf16.msra.mxu0 %v5471_v16 }
 0x3f4   :  { %4962 = vmatprep.subr.bf16.mxu0 %v7477_v58 }
 0x3f5   :  { %4895 = vmatpush3.bf16.msra.mxu1 %v6966_v0 }
 0x3f6   :  { %4896 = vmatprep.subr.bf16.mxu1 %v6978_v12 }
 0x3f7   :  { %4963 = vmatpush3.bf16.msra.mxu0 %v5472_v23 }
 0x3f8   :  { %4964 = vmatprep.subr.bf16.mxu0 %v7477_v58 }
 0x3f9   :  { %4897 = vmatpush3.bf16.msra.mxu1 %v6978_v12  ;;  %4929 = vmatmul.mubr.msk.bf16.gmra.mrb[32].mxu0 %vm730_vm0, %v5473_v32 }
 0x3fa   :  { %4902 = vmatprep.subr.bf16.mxu1 %v7477_v58  ;;  %4976 = vmatprep.mubr.msk.bf16.mxu0 %vm5542_vm4, %v7477_v58 }
 0x3fb   :  { %4965 = vmatpush3.bf16.msra.mxu0 %v5474_v34 }
 0x3fc   :  { %4899 = vmatmul.mubr.bf16.vlgmr.msra.gmra.mrb[28].mxu1 %v1609_v49  ;;  %4966 = vmatprep.subr.bf16.mxu0 %v7477_v58 }
 0x3fd   :  { %4906 = vmatprep.mubr.msk.bf16.mxu1 %vm5542_vm4, %v7477_v58 }
 0x3ff   :  { %4967 = vmatpush3.bf16.msra.mxu0 %v5475_v20 }
 0x400   :  { %4968 = vmatprep.subr.bf16.mxu0 %v7477_v58 }
 0x403   :  { %4969 = vmatpush3.bf16.msra.mxu0 %v5476_v25 }
 0x404   :  { %4970 = vmatprep.subr.bf16.mxu0 %v7477_v58 }
 0x407   :  { %4971 = vmatpush3.bf16.msra.mxu0 %v5477_v13 }
 0x408   :  { %4972 = vmatprep.subr.bf16.mxu0 %v7477_v58 }
 0x40b   :  { %4973 = vmatpush3.bf16.msra.mxu0 %v5478_v9 }
 0x40c   :  { %4974 = vmatprep.subr.bf16.mxu0 %v7477_v58 }
 0x40f   :  { %4975 = vmatpush3.bf16.msra.mxu0 %v5479_v56 }
 0x4a8   :  { %v4880_v29 = vpop.f32.mrb[24].mxu0 }
 0x4a9   :  { %v1576_v21 = vpop.f32.mrb[25].mxu0 }
 0x4aa   :  { %v4881_v48 = vpop.f32.mrb[26].mxu0 }
 0x4ab   :  { %v1579_v44 = vpop.f32.mrb[27].mxu0 }
 0x4af   :  { %v4860_v27 = vpop.f32.mrb[24].mxu1 }
 0x4b0   :  { %v1585_v30 = vadd.f32 %v4880_v29, %v4860_v27  ;;  %v1480_v40 = vpop.f32.mrb[25].mxu1 }
 0x4b1   :  { %v1577_v39 = vadd.f32 %v1576_v21, %v1480_v40  ;;  %v4861_v49 = vpop.f32.mrb[26].mxu1 }
 0x4b2   :  { %v1483_v46 = vpop.f32.mrb[27].mxu1 }
 0x4b3   :  { %v1580_v61 = vadd.f32 %v1579_v44, %v1483_v46 }
 0x4c4   :  { %v4926_v43 = vpop.f32.mrb[28].mxu0 }
 0x4c5   :  { %v2435_v6 = vpop.f32.mrb[29].mxu0 }
 0x4c6   :  { %v4927_v60 = vpop.f32.mrb[30].mxu0 }
 0x4c7   :  { %v2466_v37 = vpack.c.bf16 %v4927_v60, %v4926_v43  ;;  %v2438_v14 = vpop.f32.mrb[31].mxu0 }
 0x4c8   :  { %v2465_v31 = vpack.c.bf16 %v2438_v14, %v2435_v6 }
 0x4c9   :  { %v2614_v51 = vrot.slane %v2466_v37, 1  ;;  %v2476_v62 = vshll.u32 %v2466_v37, 16  ;;  %v2480_v19 = vshrl.u32 %v2466_v37, 16 }
 0x4ca   :  { %v2469_v28 = vshrl.u32 %v2465_v31, 16  ;;  %v2471_v1 = vshll.u32 %v2465_v31, 16  ;;  %v2613_v15 = vrot.slane %v2465_v31, 1  ;;  %4977 = vmatmul.mubr.bf16.vlgmr.msra.gmra.mrb[36].mxu0 %v2465_v31  ;;  %v7073_v31 = vld [vmem:[%s7461_s11] sm:$0x1f]  }
 0x4cb   :  { %4980 = vmatprep.mubr.msk.bf16.mxu0 %vm5542_vm4, %v7477_v58  ;;  %v2478_v22 = vrot.slane %v2476_v62, 1  ;;  %v5485_v62 = vld [vmem:[%s7455_s5 + $0x60] sm:$0xff]  }
 0x4cc   :  { %v2473_v24 = vrot.slane %v2471_v1, 1  ;;  %v4930_v4 = vpop.f32.mrb[32].mxu0  ;;  %v7032_v42 = vsel %vm306_vm2, %v2613_v15, %v2614_v51  ;;  %v5483_v1 = vld [vmem:[%s7455_s5 + $0x50] sm:$0xff]   ;;  %v5484_v15 = vld [vmem:[%s7455_s5 + $0x58] sm:$0xff]  }
 0x4cd   :  { %v2608_v35 = vpack.c.bf16 %v4930_v4, %v4930_v4  ;;  %v2451_v59 = vpop.f32.mrb[33].mxu0  ;;  %v2482_v16 = vor.u32 %v2480_v19, %v2478_v22  ;;  %v5487_v4 = vld [vmem:[%s7455_s5 + $0x70] sm:$0xff]   ;;  %v5492_v19 = vld [vmem:[%s7455_s5 + $0x98] sm:$0xff]  }
 0x4ce   :  { %v4931_v52 = vpop.f32.mrb[34].mxu0  ;;  %v2474_v17 = vor.u32 %v2473_v24, %v2469_v28  ;;  %v5482_v28 = vld [vmem:[%s7455_s5 + $0x48] sm:$0xff]  }
 0x4cf   :  { %v4900_v33 = vpop.f32.mrb[28].mxu1  ;;  %v2454_v26 = vpop.f32.mrb[35].mxu0  ;;  %v2618_v54 = vrot.slane %v2608_v35, 1  ;;  %v5486_v24 = vld [vmem:[%s7455_s5 + $0x68] sm:$0xff]   ;;  %v5488_v35 = vld [vmem:[%s7455_s5 + $0x78] sm:$0xff]  }
 0x4d0   :  { %v1711_v47 = vadd.f32 %v4900_v33, %v1585_v30  ;;  %v1695_v53 = vpop.f32.mrb[29].mxu1  ;;  %v7039_v7 = vpack.c.bf16 %v2454_v26, %v2451_v59  ;;  %v7042_v5 = vsel %vm848_vm5, %v2474_v17, %v2478_v22  ;;  %v5489_v59 = vld [vmem:[%s7455_s5 + $0x80] sm:$0xff]   ;;  %v5490_v52 = vld [vmem:[%s7455_s5 + $0x88] sm:$0xff]   ;;  %v5491_v17 = vld [vmem:[%s7455_s5 + $0x90] sm:$0xff]  }
 0x4d1   :  { %v1709_v2 = vadd.f32 %v1695_v53, %v1577_v39  ;;  %v4901_v38 = vpop.f32.mrb[30].mxu1  ;;  %v5493_v26 = vld [vmem:[%s7455_s5 + $0xa0] sm:$0xff]   ;;  %v5495_v53 = vld [vmem:[%s7455_s5 + $0xb0] sm:$0xff]  }
 0x4d2   :  { %v1720_v8 = vadd.f32 %v7037_v55, %v1711_v47  ;;  %v1698_v36 = vpop.f32.mrb[31].mxu1  ;;  %4981 = vmatmul.mubr.bf16.gmra.mrb[40].mxu0 %v2466_v37  ;;  %v2484_v23 = vshll.u32 %v7039_v7, 16  ;;  %v2616_v32 = vrot.slane %v7039_v7, 1  ;;  %v2488_v22 = vshrl.u32 %v7039_v7, 16  ;;  %v5494_v47 = vld [vmem:[%s7455_s5 + $0xa8] sm:$0xff]   ;;  %v5501_v38 = vld [vmem:[%s7457_s7 + $0x60] sm:$0xff]  }
 0x4d3   :  { %v1718_v34 = vadd.f32 %v7037_v55, %v1709_v2  ;;  %v1710_v20 = vadd.f32 %v1698_v36, %v1580_v61  ;;  %4984 = vmatprep.mubr.msk.bf16.mxu0 %vm5542_vm4, %v7477_v58  ;;  %v5480_v61 = vld [vmem:[%s7460_s10] sm:$0xff]   ;;  %v5499_v2 = vld [vmem:[%s7457_s7 + $0x50] sm:$0xff]  }
 0x4d4   :  { %v1723_v25 = vmax.f32 %v1720_v8, 0.0  ;;  %v7050_v13 = vrot.slane %v2484_v23, 1  ;;  %v7053_v9 = vsel %vm306_vm2, %v2614_v51, %v2616_v32  ;;  %v7056_v56 = vsel %vm306_vm2, %v2616_v32, %v2618_v54  ;;  %v5481_v51 = vld [vmem:[%s7455_s5 + $0x40] sm:$0xff]   ;;  %v5496_v54 = vld [vmem:[%s7455_s5 + $0xb8] sm:$0xff]  }
 0x4d5   :  { %v1721_v29 = vmax.f32 %v1718_v34, 0.0  ;;  %v1719_v21 = vadd.f32 %v7037_v55, %v1710_v20 }
 0x4d6   :  { %v2487_v48 = vsel %vm848_vm5, %v2482_v16, %v7050_v13  ;;  %v1730_v44 = vrot.slane %v1723_v25, 1  ;;  %v2490_v33 = vor.u32 %v2488_v22, %v7050_v13 }
 0x4d7   :  { %v1722_v27 = vmax.f32 %v1719_v21, 0.0  ;;  %v1727_v30 = vrot.slane %v1721_v29, 1 }
 0x4d8   :  { %v1737_v39 = vmax.f32 %v1723_v25, %v1730_v44 }
 0x4d9   :  { %v1728_v40 = vrot.slane %v1722_v27, 1 }
 0x4da   :  { %4985 = vmatmul.mubr.bf16.gmra.mrb[44].mxu0 %v7039_v7  ;;  %v1741_v37 = vpack.c.bf16 %v1737_v39, %v1737_v39  ;;  %v5497_v7 = vld [vmem:[%s7457_s7 + $0x40] sm:$0xff]  }
 0x4db   :  { %v1729_v49 = vsel %vm306_vm2, %v1727_v30, %v1728_v40  ;;  %v1731_v46 = vsel %vm306_vm2, %v1728_v40, %v1730_v44  ;;  %5022 = vmatprep.mubr.msk.bf16.mxu0 %vm1289_vm6, %v5480_v61 }
 0x4dc   :  { %v1735_v43 = vmax.f32 %v1721_v29, %v1729_v49  ;;  %v1736_v6 = vmax.f32 %v1722_v27, %v1731_v46  ;;  %v1753_v14 = vsel %vm1751_vm7, %v1741_v37, 0 }
 0x4de   :  { %v1740_v60 = vpack.c.bf16 %v1736_v6, %v1735_v43 }
 0x4e0   :  { %4903 = vmatpush3.bf16.msra.mxu1 %v1740_v60 }
 0x4e1   :  { %4904 = vmatprep.subr.bf16.mxu1 %v7477_v58 }
 0x4e4   :  { %4905 = vmatpush3.bf16.msra.mxu1 %v1753_v14 }
 0x4e5   :  { %4932 = vmatprep.subr.bf16.mxu1 %v7477_v58 }
 0x4e7   :  { %4907 = vmatmul.mubr.msk.bf16.vlgmr.msra.gmra.mrb[32].mxu1 %vm1747_vm8, %v7073_v31 }
 0x4e8   :  { %4933 = vmatpush3.bf16.msra.mxu1 %v5481_v51  ;;  %4948 = vmatprep.mubr.msk.bf16.mxu1 %vm5542_vm4, %v7477_v58 }
 0x4e9   :  { %4934 = vmatprep.subr.bf16.mxu1 %v7477_v58 }
 0x4ec   :  { %4935 = vmatpush3.bf16.msra.mxu1 %v5482_v28 }
 0x4ed   :  { %4936 = vmatprep.subr.bf16.mxu1 %v7477_v58 }
 0x4f0   :  { %4937 = vmatpush3.bf16.msra.mxu1 %v5483_v1 }
 0x4f1   :  { %4938 = vmatprep.subr.bf16.mxu1 %v7477_v58 }
 0x4f4   :  { %4939 = vmatpush3.bf16.msra.mxu1 %v5484_v15 }
 0x4f5   :  { %4940 = vmatprep.subr.bf16.mxu1 %v7477_v58 }
 0x4f8   :  { %4941 = vmatpush3.bf16.msra.mxu1 %v5485_v62 }
 0x4f9   :  { %4942 = vmatprep.subr.bf16.mxu1 %v7477_v58 }
 0x4fc   :  { %4943 = vmatpush3.bf16.msra.mxu1 %v5486_v24 }
 0x4fd   :  { %4944 = vmatprep.subr.bf16.mxu1 %v7477_v58 }
 0x500   :  { %4945 = vmatpush3.bf16.msra.mxu1 %v5487_v4 }
 0x501   :  { %4946 = vmatprep.subr.bf16.mxu1 %v7477_v58 }
 0x504   :  { %4947 = vmatpush3.bf16.msra.mxu1 %v5488_v35  ;;  %v5502_v35 = vld [vmem:[%s7456_s6] ss:$0 sm:$0xff] }
 0x505   :  { %4988 = vmatprep.subr.bf16.mxu1 %v7477_v58 }
 0x507   :  { %4949 = vmatmul.mubr.bf16.vlgmr.msra.gmra.mrb[36].mxu1 %v7042_v5  ;;  %v5498_v5 = vld [vmem:[%s7457_s7 + $0x48] sm:$0xff]  }
 0x508   :  { %4989 = vmatpush3.bf16.msra.mxu1 %v5489_v59  ;;  %4952 = vmatprep.mubr.msk.bf16.mxu1 %vm5542_vm4, %v7477_v58 }
 0x509   :  { %4990 = vmatprep.subr.bf16.mxu1 %v7477_v58 }
 0x50c   :  { %4991 = vmatpush3.bf16.msra.mxu1 %v5490_v52 }
 0x50d   :  { %4992 = vmatprep.subr.bf16.mxu1 %v7477_v58 }
 0x50f   :  { %4953 = vmatmul.mubr.bf16.gmra.mrb[40].mxu1 %v2487_v48 }
 0x510   :  { %4993 = vmatpush3.bf16.msra.mxu1 %v5491_v17  ;;  %4956 = vmatprep.mubr.msk.bf16.mxu1 %vm5542_vm4, %v7477_v58 }
 0x511   :  { %4994 = vmatprep.subr.bf16.mxu1 %v7477_v58 }
 0x514   :  { %4995 = vmatpush3.bf16.msra.mxu1 %v5492_v19 }
 0x515   :  { %4996 = vmatprep.subr.bf16.mxu1 %v7477_v58 }
 0x517   :  { %4957 = vmatmul.mubr.bf16.gmra.mrb[44].mxu1 %v2490_v33 }
 0x518   :  { %4997 = vmatpush3.bf16.msra.mxu1 %v5493_v26  ;;  %5004 = vmatprep.mubr.msk.bf16.mxu1 %vm5542_vm4, %v7477_v58 }
 0x519   :  { %4998 = vmatprep.subr.bf16.mxu1 %v7477_v58 }
 0x51c   :  { %4999 = vmatpush3.bf16.msra.mxu1 %v5494_v47 }
 0x51d   :  { %5000 = vmatprep.subr.bf16.mxu1 %v7477_v58 }
 0x520   :  { %5001 = vmatpush3.bf16.msra.mxu1 %v5495_v53 }
 0x521   :  { %5002 = vmatprep.subr.bf16.mxu1 %v7477_v58 }
 0x524   :  { %5003 = vmatpush3.bf16.msra.mxu1 %v5496_v54 }
 0x525   :  { %5026 = vmatprep.subr.bf16.mxu1 %v5497_v7 }
 0x527   :  { %5005 = vmatmul.mubr.bf16.vlgmr.msra.gmra.mrb[48].mxu1 %v7032_v42  ;;  %v5500_v42 = vld [vmem:[%s7457_s7 + $0x58] sm:$0xff]  }
 0x528   :  { %5008 = vmatprep.mubr.msk.bf16.mxu1 %vm5542_vm4, %v7477_v58  ;;  %5027 = vmatpush3.bf16.msra.mxu1 %v5497_v7 }
 0x529   :  { %5028 = vmatprep.subr.bf16.mxu1 %v5498_v5 }
 0x52c   :  { %5029 = vmatpush3.bf16.msra.mxu1 %v5498_v5 }
 0x52d   :  { %5030 = vmatprep.subr.bf16.mxu1 %v5499_v2 }
 0x52f   :  { %5009 = vmatmul.mubr.bf16.gmra.mrb[52].mxu1 %v7053_v9 }
 0x530   :  { %5012 = vmatprep.mubr.msk.bf16.mxu1 %vm5542_vm4, %v7477_v58  ;;  %5031 = vmatpush3.bf16.msra.mxu1 %v5499_v2 }
 0x531   :  { %5032 = vmatprep.subr.bf16.mxu1 %v5500_v42 }
 0x534   :  { %5033 = vmatpush3.bf16.msra.mxu1 %v5500_v42 }
 0x535   :  { %5034 = vmatprep.subr.bf16.mxu1 %v5501_v38 }
 0x537   :  { %5013 = vmatmul.mubr.bf16.gmra.mrb[56].mxu1 %v7056_v56 }
 0x538   :  { %5035 = vmatpush3.bf16.msra.mxu1 %v5501_v38 }
 0x539   :  { %5036 = vmatprep.subr.bf16.mxu1 %v6702_v3 }
 0x53c   :  { %5037 = vmatpush3.bf16.msra.mxu1 %v6702_v3 }
 0x53d   :  { %5038 = vmatprep.subr.bf16.mxu1 %v6709_v41 }
 0x540   :  { %5039 = vmatpush3.bf16.msra.mxu1 %v6709_v41 }
 0x541   :  { %5040 = vmatprep.subr.bf16.mxu1 %v6715_v63 }
 0x544   :  { %5041 = vmatpush3.bf16.msra.mxu1 %v6715_v63 }
 0x545   :  { %5066 = vmatprep.subr.bf16.mxu1 %v6722_v57 }
 0x59d   :  { %v2585_v8 = vpop.f32.mrb[36].mxu0 }
 0x59e   :  { %v4978_v36 = vpop.f32.mrb[37].mxu0 }
 0x59f   :  { %v2588_v16 = vpop.f32.mrb[38].mxu0 }
 0x5a0   :  { %v4979_v23 = vpop.f32.mrb[39].mxu0 }
 0x5a5   :  { %v2593_v32 = vpop.f32.mrb[40].mxu0 }
 0x5a6   :  { %v4982_v34 = vpop.f32.mrb[41].mxu0 }
 0x5a7   :  { %v2596_v20 = vpop.f32.mrb[42].mxu0 }
 0x5a8   :  { %v4983_v25 = vpop.f32.mrb[43].mxu0 }
 0x5ad   :  { %v2601_v13 = vpop.f32.mrb[44].mxu0 }
 0x5ae   :  { %v4986_v3 = vpop.f32.mrb[45].mxu0 }
 0x5af   :  { %v2604_v9 = vpop.f32.mrb[46].mxu0 }
 0x5b0   :  { %v4987_v56 = vpop.f32.mrb[47].mxu0 }
 0x5ba   :  { %v7181_v29 = vpop.f32.mrb[32].mxu1 }
 0x5bb   :  { %v4908_v41 = vpop.f32.mrb[33].mxu1 }
 0x5bc   :  { %v7183_v21 = vpop.f32.mrb[34].mxu1 }
 0x5bd   :  { %v4909_v63 = vpop.f32.mrb[35].mxu1 }
 0x5da   :  { %v2528_v48 = vpop.f32.mrb[36].mxu1 }
 0x5db   :  { %v2586_v57 = vadd.f32 %v2585_v8, %v2528_v48  ;;  %v4950_v44 = vpop.f32.mrb[37].mxu1 }
 0x5dc   :  { %v2531_v27 = vpop.f32.mrb[38].mxu1 }
 0x5dd   :  { %v2589_v30 = vadd.f32 %v2588_v16, %v2531_v27  ;;  %v4951_v40 = vpop.f32.mrb[39].mxu1 }
 0x5e2   :  { %v2536_v39 = vpop.f32.mrb[40].mxu1 }
 0x5e3   :  { %v2594_v49 = vadd.f32 %v2593_v32, %v2536_v39  ;;  %v4954_v46 = vpop.f32.mrb[41].mxu1 }
 0x5e4   :  { %v2539_v61 = vpop.f32.mrb[42].mxu1 }
 0x5e5   :  { %v2597_v43 = vadd.f32 %v2596_v20, %v2539_v61  ;;  %v4955_v6 = vpop.f32.mrb[43].mxu1 }
 0x5ea   :  { %v2544_v60 = vpop.f32.mrb[44].mxu1 }
 0x5eb   :  { %v2602_v37 = vadd.f32 %v2601_v13, %v2544_v60  ;;  %v4958_v14 = vpop.f32.mrb[45].mxu1 }
 0x5ec   :  { %v2547_v51 = vpop.f32.mrb[46].mxu1 }
 0x5ed   :  { %v2605_v28 = vadd.f32 %v2604_v9, %v2547_v51  ;;  %v4959_v1 = vpop.f32.mrb[47].mxu1 }
 0x5fa   :  { %v2657_v15 = vpop.f32.mrb[48].mxu1 }
 0x5fb   :  { %v2680_v62 = vadd.f32 %v2657_v15, %v2586_v57  ;;  %v5006_v24 = vpop.f32.mrb[49].mxu1  ;;  %v5503_v15 = vld [vmem:[%s7457_s7] sm:$0xff]  }
 0x5fc   :  { %v2660_v4 = vpop.f32.mrb[50].mxu1  ;;  %v5505_v24 = vld [vmem:[%s7457_s7 + $0x8] sm:$0xff]  }
 0x5fd   :  { %v2686_v59 = vadd.f32 %v5502_v35, %v2680_v62  ;;  %v2681_v52 = vadd.f32 %v2660_v4, %v2589_v30  ;;  %v5007_v17 = vpop.f32.mrb[51].mxu1  ;;  %v5504_v62 = vld [vmem:[%s7460_s10 + $0x8] ss:$0 sps:$4 sm:$0xff]   ;;  %v5506_v4 = vld [vmem:[%s7457_s7 + $0x10] sm:$0xff]  }
 0x5fe   :  { %v5510_v17 = vld [vmem:[%s7457_s7 + $0x30] sm:$0xff]  }
 0x5ff   :  { %v2692_v22 = vmax.f32 %v2686_v59, 0.0  ;;  %v2687_v19 = vadd.f32 %v5502_v35, %v2681_v52  ;;  %v5508_v59 = vld [vmem:[%s7457_s7 + $0x20] sm:$0xff]   ;;  %v5509_v52 = vld [vmem:[%s7457_s7 + $0x28] sm:$0xff]  }
 0x601   :  { %v2693_v33 = vmax.f32 %v2687_v19, 0.0  ;;  %v2704_v47 = vrot.slane %v2692_v22, 1 }
 0x602   :  { %v2665_v26 = vpop.f32.mrb[52].mxu1 }
 0x603   :  { %v2705_v53 = vrot.slane %v2693_v33, 1  ;;  %v2682_v54 = vadd.f32 %v2665_v26, %v2594_v49  ;;  %v5010_v7 = vpop.f32.mrb[53].mxu1 }
 0x604   :  { %v2668_v5 = vpop.f32.mrb[54].mxu1 }
 0x605   :  { %v2688_v2 = vadd.f32 %v5502_v35, %v2682_v54  ;;  %v2683_v42 = vadd.f32 %v2668_v5, %v2597_v43  ;;  %v5011_v38 = vpop.f32.mrb[55].mxu1  ;;  %v2706_v8 = vsel %vm306_vm2, %v2704_v47, %v2705_v53 }
 0x606   :  { %v2721_v36 = vmax.f32 %v2692_v22, %v2706_v8  ;;  %v5511_v22 = vld [vmem:[%s7457_s7 + $0x38] sm:$0xff]  }
 0x607   :  { %v2694_v16 = vmax.f32 %v2688_v2, 0.0  ;;  %v2689_v23 = vadd.f32 %v5502_v35, %v2683_v42 }
 0x609   :  { %v2707_v32 = vrot.slane %v2694_v16, 1  ;;  %v2695_v34 = vmax.f32 %v2689_v23, 0.0 }
 0x60a   :  { %v2673_v20 = vpop.f32.mrb[56].mxu1 }
 0x60b   :  { %v2709_v25 = vrot.slane %v2695_v34, 1  ;;  %v2684_v13 = vadd.f32 %v2673_v20, %v2602_v37  ;;  %v5014_v3 = vpop.f32.mrb[57].mxu1  ;;  %v2708_v9 = vsel %vm306_vm2, %v2705_v53, %v2707_v32 }
 0x60c   :  { %v2676_v56 = vpop.f32.mrb[58].mxu1  ;;  %v2722_v41 = vmax.f32 %v2693_v33, %v2708_v9 }
 0x60d   :  { %v2690_v63 = vadd.f32 %v5502_v35, %v2684_v13  ;;  %v2685_v48 = vadd.f32 %v2676_v56, %v2605_v28  ;;  %v5015_v57 = vpop.f32.mrb[59].mxu1  ;;  %v2710_v44 = vsel %vm306_vm2, %v2707_v32, %v2709_v25 }
 0x60e   :  { %v2727_v27 = vpack.c.bf16 %v2722_v41, %v2721_v36  ;;  %v2723_v30 = vmax.f32 %v2694_v16, %v2710_v44 }
 0x60f   :  { %v2696_v40 = vmax.f32 %v2690_v63, 0.0  ;;  %v2691_v39 = vadd.f32 %v5502_v35, %v2685_v48  ;;  %v5507_v35 = vld [vmem:[%s7457_s7 + $0x18] sm:$0xff]  }
 0x610   :  { %5016 = vmatprep.subr.bf16.mxu0 %v2727_v27 }
 0x611   :  { %v2711_v49 = vrot.slane %v2696_v40, 1  ;;  %v2697_v46 = vmax.f32 %v2691_v39, 0.0  ;;  %5017 = vmatpush3.bf16.msra.mxu0 %v2727_v27 }
 0x613   :  { %v2713_v61 = vrot.slane %v2697_v46, 1  ;;  %v2712_v43 = vsel %vm306_vm2, %v2709_v25, %v2711_v49  ;;  %v5512_v25 = vld [vmem:[%s7457_s7 + $0x80] sm:$0xff]  }
 0x614   :  { %v2724_v6 = vmax.f32 %v2695_v34, %v2712_v43 }
 0x615   :  { %v2714_v60 = vsel %vm306_vm2, %v2711_v49, %v2713_v61  ;;  %v2726_v37 = vmax.f32 %v2697_v46, %v2713_v61 }
 0x616   :  { %v2725_v14 = vmax.f32 %v2696_v40, %v2714_v60  ;;  %v2728_v51 = vpack.c.bf16 %v2724_v6, %v2723_v30 }
 0x618   :  { %v2729_v28 = vpack.c.bf16 %v2726_v37, %v2725_v14  ;;  %5018 = vmatprep.subr.bf16.mxu0 %v2728_v51 }
 0x619   :  { %5019 = vmatpush3.bf16.msra.mxu0 %v2728_v51 }
 0x61a   :  { %5315 = vmatprep.subr.msk.bf16.mxu0 %vm306_vm2, %v2729_v28  ;;  %v2731_v1 = vsel %vm306_vm2, %v2729_v28, 0 }
 0x61d   :  { %5021 = vmatpush3.bf16.msra.mxu0 %v2731_v1 }
 0x61e   :  { %5046 = vmatprep.subr.bf16.mxu0 %v5503_v15 }
 0x620   :  { %5023 = vmatmul.mubr.msk.bf16.vlgmr.msra.gmra.mrb[48].mxu0 %vm1289_vm6, %v5504_v62 }
 0x621   :  { %5047 = vmatpush3.bf16.msra.mxu0 %v5503_v15 }
 0x622   :  { %5048 = vmatprep.subr.bf16.mxu0 %v5505_v24 }
 0x625   :  { %5049 = vmatpush3.bf16.msra.mxu0 %v5505_v24 }
 0x626   :  { %5050 = vmatprep.subr.bf16.mxu0 %v5506_v4 }
 0x629   :  { %5051 = vmatpush3.bf16.msra.mxu0 %v5506_v4 }
 0x62a   :  { %5052 = vmatprep.subr.bf16.mxu0 %v5507_v35 }
 0x62d   :  { %5053 = vmatpush3.bf16.msra.mxu0 %v5507_v35 }
 0x62e   :  { %5054 = vmatprep.subr.bf16.mxu0 %v5508_v59 }
 0x631   :  { %5055 = vmatpush3.bf16.msra.mxu0 %v5508_v59 }
 0x632   :  { %5056 = vmatprep.subr.bf16.mxu0 %v5509_v52 }
 0x635   :  { %5057 = vmatpush3.bf16.msra.mxu0 %v5509_v52 }
 0x636   :  { %5058 = vmatprep.subr.bf16.mxu0 %v5510_v17 }
 0x639   :  { %5059 = vmatpush3.bf16.msra.mxu0 %v5510_v17 }
 0x63a   :  { %5060 = vmatprep.subr.bf16.mxu0 %v5511_v22 }
 0x63d   :  { %5061 = vmatpush3.bf16.msra.mxu0 %v5511_v22 }
 0x63e   :  { %5086 = vmatprep.subr.bf16.mxu0 %v7477_v58 }
 0x6f3   :  { %v5024_v19 = vpop.f32.mrb[48].mxu0 }
 0x6f4   :  { %v2782_v33 = vpack.c.bf16 %v5024_v19, %v5024_v19  ;;  %v2767_v26 = vpop.f32.mrb[49].mxu0 }
 0x6f5   :  { %v5025_v47 = vpop.f32.mrb[50].mxu0 }
 0x6f6   :  { %v2770_v53 = vpop.f32.mrb[51].mxu0  ;;  %v2791_v7 = vshll.u32 %v2782_v33, 16  ;;  %v2899_v42 = vrot.slane %v2782_v33, 1  ;;  %v2795_v23 = vshrl.u32 %v2782_v33, 16  ;;  %v5383_v47 = vld [vmem:[#allocation2 + $0x50] sm:$0xff]  }
 0x6f7   :  { %v2781_v54 = vpack.c.bf16 %v2770_v53, %v2767_v26  ;;  %v5381_v26 = vld [vmem:[#allocation2 + $0x48] sm:$0xff]   ;;  %v5385_v53 = vld [vmem:[#allocation2 + $0x58] sm:$0xff]  }
 0x6f8   :  { %v2793_v36 = vrot.slane %v2791_v7, 1  ;;  %v5391_v7 = vld [vmem:[#allocation2 + $0x70] sm:$0xff]  }
 0x6f9   :  { %v2786_v5 = vshll.u32 %v2781_v54, 16  ;;  %5062 = vmatprep.mubr.bf16.mxu0 %v2781_v54  ;;  %v2898_v2 = vrot.slane %v2781_v54, 1  ;;  %v2784_v38 = vshrl.u32 %v2781_v54, 16  ;;  %v5387_v54 = vld [vmem:[#allocation2 + $0x60] sm:$0xff]  }
 0x6fa   :  { %5063 = vmatmul.mubr.bf16.vlgmr.msra.gmra.mrb[52].mxu0 %v2782_v33  ;;  %v2797_v20 = vor.u32 %v2795_v23, %v2793_v36  ;;  %v3460_v23 = vrot.slane %v7181_v29, 4 }
 0x6fb   :  { %v2788_v8 = vrot.slane %v2786_v5, 1  ;;  %v2900_v16 = vsel %vm306_vm2, %v2898_v2, %v2899_v42  ;;  %5090 = vmatprep.mubr.msk.bf16.mxu0 %vm5542_vm4, %v7477_v58  ;;  %v5393_v5 = vld [vmem:[#allocation2 + $0x78] sm:$0xff]  }
 0x6fc   :  { %v5394_v2 = vld [vmem:[#allocation2 + $0x38] sm:$0xff]  }
 0x6fd   :  { %v2789_v32 = vor.u32 %v2788_v8, %v2784_v38  ;;  %v4015_v38 = vrot.slane %v7183_v21, 1 }
 0x6ff   :  { %v2794_v34 = vsel %vm848_vm5, %v2789_v32, %v2793_v36  ;;  %v3238_v36 = vrot.slane %v7181_v29, 2 }
 0x700   :  { %5042 = vmatprep.mubr.bf16.mxu1 %v2794_v34 }
 0x701   :  { %5043 = vmatmul.mubr.bf16.vlgmr.msra.gmra.mrb[60].mxu1 %v2797_v20  ;;  %v5395_v20 = vld [vmem:[#allocation2 + $0x80] sm:$0xff]  }
 0x702   :  { %5067 = vmatpush3.bf16.msra.mxu1 %v5512_v25  ;;  %5082 = vmatprep.mubr.bf16.mxu1 %v2900_v16  ;;  %v3349_v16 = vrot.slane %v7181_v29, 3 }
 0x703   :  { %5068 = vmatprep.subr.bf16.mxu1 %v6925_v11 }
 0x706   :  { %5069 = vmatpush3.bf16.msra.mxu1 %v6925_v11  ;;  %v5380_v11 = vld [vmem:[#allocation2] sm:$0xff]  }
 0x707   :  { %5070 = vmatprep.subr.bf16.mxu1 %v6933_v10 }
 0x70a   :  { %5071 = vmatpush3.bf16.msra.mxu1 %v6933_v10  ;;  %v5382_v10 = vld [vmem:[#allocation2 + $0x8] sm:$0xff]  }
 0x70b   :  { %5072 = vmatprep.subr.bf16.mxu1 %v6944_v18 }
 0x70e   :  { %5073 = vmatpush3.bf16.msra.mxu1 %v6944_v18  ;;  %v5384_v18 = vld [vmem:[#allocation2 + $0x10] sm:$0xff]  }
 0x70f   :  { %5074 = vmatprep.subr.bf16.mxu1 %v6951_v45 }
 0x712   :  { %5075 = vmatpush3.bf16.msra.mxu1 %v6951_v45  ;;  %v5386_v45 = vld [vmem:[#allocation2 + $0x18] sm:$0xff]  }
 0x713   :  { %5076 = vmatprep.subr.bf16.mxu1 %v6959_v50 }
 0x716   :  { %5077 = vmatpush3.bf16.msra.mxu1 %v6959_v50  ;;  %v5388_v50 = vld [vmem:[#allocation2 + $0x20] sm:$0xff]  }
 0x717   :  { %5078 = vmatprep.subr.bf16.mxu1 %v6966_v0 }
 0x71a   :  { %5079 = vmatpush3.bf16.msra.mxu1 %v6966_v0  ;;  %v5390_v0 = vld [vmem:[#allocation2 + $0x28] sm:$0xff]  }
 0x71b   :  { %5080 = vmatprep.subr.bf16.mxu1 %v6978_v12 }
 0x71e   :  { %5081 = vmatpush3.bf16.msra.mxu1 %v6978_v12  ;;  %v5392_v12 = vld [vmem:[#allocation2 + $0x30] sm:$0xff]  }
 0x71f   :  { %5114 = vmatprep.subr.bf16.mxu1 %v7477_v58 }
 0x721   :  { %5083 = vmatmul.mubr.bf16.vlgmr.msra.gmra.mrb[64].mxu1 %v2899_v42  ;;  %v3042_v42 = vrot.slane %v7181_v29, 1 }
 0x722   :  { %5130 = vmatprep.mubr.msk.bf16.mxu1 %vm5542_vm4, %v7477_v58  ;;  %5115 = vmatpush3.bf16.msra.mxu1 %v5380_v11 }
 0x723   :  { %5116 = vmatprep.subr.bf16.mxu1 %v7477_v58 }
 0x726   :  { %5117 = vmatpush3.bf16.msra.mxu1 %v5382_v10 }
 0x727   :  { %5118 = vmatprep.subr.bf16.mxu1 %v7477_v58 }
 0x72a   :  { %5119 = vmatpush3.bf16.msra.mxu1 %v5384_v18 }
 0x72b   :  { %5120 = vmatprep.subr.bf16.mxu1 %v7477_v58 }
 0x72e   :  { %5121 = vmatpush3.bf16.msra.mxu1 %v5386_v45 }
 0x72f   :  { %5122 = vmatprep.subr.bf16.mxu1 %v7477_v58 }
 0x732   :  { %5123 = vmatpush3.bf16.msra.mxu1 %v5388_v50 }
 0x733   :  { %5124 = vmatprep.subr.bf16.mxu1 %v7477_v58 }
 0x736   :  { %5125 = vmatpush3.bf16.msra.mxu1 %v5390_v0 }
 0x737   :  { %5126 = vmatprep.subr.bf16.mxu1 %v7477_v58 }
 0x73a   :  { %5127 = vmatpush3.bf16.msra.mxu1 %v5392_v12 }
 0x73b   :  { %5128 = vmatprep.subr.bf16.mxu1 %v7477_v58 }
 0x73e   :  { %5129 = vmatpush3.bf16.msra.mxu1 %v5394_v2  ;;  %v5423_v2 = vld [vmem:[#allocation2 + $0x130] sm:$0xff]  }
 0x73f   :  { %5154 = vmatprep.subr.bf16.mxu1 %v7477_v58 }
 0x7cd   :  { %v5064_v13 = vpop.f32.mrb[52].mxu0 }
 0x7ce   :  { %v2882_v3 = vpop.f32.mrb[53].mxu0 }
 0x7cf   :  { %v5065_v9 = vpop.f32.mrb[54].mxu0 }
 0x7d0   :  { %v2885_v56 = vpop.f32.mrb[55].mxu0 }
 0x7d4   :  { %v5044_v41 = vpop.f32.mrb[60].mxu1 }
 0x7d5   :  { %v2891_v63 = vadd.f32 %v5064_v13, %v5044_v41  ;;  %v2834_v48 = vpop.f32.mrb[61].mxu1 }
 0x7d6   :  { %v2883_v57 = vadd.f32 %v2882_v3, %v2834_v48  ;;  %v5045_v44 = vpop.f32.mrb[62].mxu1 }
 0x7d7   :  { %v2837_v27 = vpop.f32.mrb[63].mxu1  ;;  %v3571_v44 = vrot.slane %v7181_v29, 5 }
 0x7d8   :  { %v2886_v30 = vadd.f32 %v2885_v56, %v2837_v27  ;;  %v5396_v56 = vld [vmem:[#allocation2 + $0xc0] sm:$0xff]   ;;  %v3682_v27 = vrot.slane %v7181_v29, 6 }
 0x7f4   :  { %v5084_v40 = vpop.f32.mrb[64].mxu1 }
 0x7f5   :  { %v2953_v39 = vadd.f32 %v5084_v40, %v2891_v63  ;;  %v2937_v49 = vpop.f32.mrb[65].mxu1  ;;  %v5397_v40 = vld [vmem:[#allocation2 + $0x88] sm:$0xff]  }
 0x7f6   :  { %v2951_v46 = vadd.f32 %v2937_v49, %v2883_v57  ;;  %v5085_v61 = vpop.f32.mrb[66].mxu1  ;;  %v3793_v49 = vrot.slane %v7181_v29, 7 }
 0x7f7   :  { %v2956_v43 = vadd.f32 %v7037_v55, %v2953_v39  ;;  %v2940_v6 = vpop.f32.mrb[67].mxu1 }
 0x7f8   :  { %v2954_v60 = vadd.f32 %v7037_v55, %v2951_v46  ;;  %v2952_v37 = vadd.f32 %v2940_v6, %v2886_v30 }
 0x7f9   :  { %v2959_v14 = vmax.f32 %v2956_v43, 0.0 }
 0x7fa   :  { %v2957_v51 = vmax.f32 %v2954_v60, 0.0  ;;  %v2955_v28 = vadd.f32 %v7037_v55, %v2952_v37  ;;  %v5379_v55 = vld [vmem:[#allocation2 + $0x40] sm:$0xff]   ;;  %v5400_v60 = vld [vmem:[#allocation2 + $0xd0] sm:$0xff]   ;;  %v5401_v37 = vld [vmem:[#allocation2 + $0x98] sm:$0xff]  }
 0x7fb   :  { %v2966_v1 = vrot.slane %v2959_v14, 1 }
 0x7fc   :  { %v2958_v15 = vmax.f32 %v2955_v28, 0.0  ;;  %v2963_v62 = vrot.slane %v2957_v51, 1  ;;  %v5404_v28 = vld [vmem:[#allocation2 + $0xe0] sm:$0xff]  }
 0x7fd   :  { %v2973_v4 = vmax.f32 %v2959_v14, %v2966_v1  ;;  %v5402_v14 = vld [vmem:[#allocation2 + $0xd8] sm:$0xff]  }
 0x7fe   :  { %v2964_v24 = vrot.slane %v2958_v15, 1 }
 0x7ff   :  { %v2975_v19 = vpack.c.bf16 %v2973_v4, %v2973_v4  ;;  %v5409_v4 = vld [vmem:[#allocation2 + $0xb8] sm:$0xff]  }
 0x800   :  { %v2965_v35 = vsel %vm306_vm2, %v2963_v62, %v2964_v24  ;;  %v2967_v59 = vsel %vm306_vm2, %v2964_v24, %v2966_v1  ;;  %v5405_v1 = vld [vmem:[#allocation2 + $0xa8] sm:$0xff]   ;;  %v5407_v62 = vld [vmem:[#allocation2 + $0xb0] sm:$0xff]  }
 0x801   :  { %v2971_v52 = vmax.f32 %v2957_v51, %v2965_v35  ;;  %v2972_v17 = vmax.f32 %v2958_v15, %v2967_v59  ;;  %v2977_v33 = vsel %vm1751_vm7, %v2975_v19, 0  ;;  %v5403_v51 = vld [vmem:[#allocation2 + $0xa0] sm:$0xff]   ;;  %v5406_v15 = vld [vmem:[#allocation2 + $0xe8] sm:$0xff]   ;;  %v5408_v24 = vld [vmem:[#allocation2 + $0xf0] sm:$0xff]  }
 0x802   :  { %v5410_v35 = vld [vmem:[#allocation2 + $0xf8] sm:$0xff]   ;;  %v5411_v59 = vld [vmem:[#allocation2 + $0x100] sm:$0xff]   ;;  %v5413_v19 = vld [vmem:[#allocation2 + $0x108] sm:$0xff]  }
 0x803   :  { %v2974_v22 = vpack.c.bf16 %v2972_v17, %v2971_v52  ;;  %v5412_v17 = vld [vmem:[#allocation2 + $0x140] sm:$0xff]  }
 0x805   :  { %5087 = vmatpush3.bf16.msra.mxu0 %v2974_v22 }
 0x806   :  { %5088 = vmatprep.subr.bf16.mxu0 %v7477_v58 }
 0x809   :  { %5089 = vmatpush3.bf16.msra.mxu0 %v2977_v33  ;;  %v5414_v33 = vld [vmem:[#allocation2 + $0x148] sm:$0xff]  }
 0x80a   :  { %5094 = vmatprep.subr.bf16.mxu0 %v7477_v58 }
 0x80c   :  { %5091 = vmatmul.mubr.msk.bf16.vlgmr.msra.gmra.mrb[56].mxu0 %vm1747_vm8, %v7073_v31  ;;  %v5389_v31 = vld [vmem:[#allocation2 + $0x68] sm:$0xff]  }
 0x80d   :  { %5095 = vmatpush3.bf16.msra.mxu0 %v5379_v55  ;;  %5110 = vmatprep.mubr.msk.bf16.mxu0 %vm5542_vm4, %v7477_v58  ;;  %v5415_v55 = vld [vmem:[#allocation2 + $0x110] sm:$0xff]  }
 0x80e   :  { %5096 = vmatprep.subr.bf16.mxu0 %v7477_v58 }
 0x811   :  { %5097 = vmatpush3.bf16.msra.mxu0 %v5381_v26  ;;  %v5416_v26 = vld [vmem:[#allocation2 + $0x150] sm:$0xff]  }
 0x812   :  { %5098 = vmatprep.subr.bf16.mxu0 %v7477_v58 }
 0x815   :  { %5099 = vmatpush3.bf16.msra.mxu0 %v5383_v47  ;;  %v5417_v47 = vld [vmem:[#allocation2 + $0x118] sm:$0xff]  }
 0x816   :  { %5100 = vmatprep.subr.bf16.mxu0 %v7477_v58 }
 0x819   :  { %5101 = vmatpush3.bf16.msra.mxu0 %v5385_v53  ;;  %v5418_v53 = vld [vmem:[#allocation2 + $0x158] sm:$0xff]  }
 0x81a   :  { %5102 = vmatprep.subr.bf16.mxu0 %v7477_v58 }
 0x81d   :  { %5103 = vmatpush3.bf16.msra.mxu0 %v5387_v54  ;;  %v5419_v54 = vld [vmem:[#allocation2 + $0x120] sm:$0xff]  }
 0x81e   :  { %5104 = vmatprep.subr.bf16.mxu0 %v7477_v58 }
 0x821   :  { %5105 = vmatpush3.bf16.msra.mxu0 %v5389_v31  ;;  %v5420_v31 = vld [vmem:[#allocation2 + $0x160] sm:$0xff]  }
 0x822   :  { %5106 = vmatprep.subr.bf16.mxu0 %v7477_v58 }
 0x825   :  { %5107 = vmatpush3.bf16.msra.mxu0 %v5391_v7  ;;  %v5421_v7 = vld [vmem:[#allocation2 + $0x128] sm:$0xff]  }
 0x826   :  { %5108 = vmatprep.subr.bf16.mxu0 %v7477_v58 }
 0x829   :  { %5109 = vmatpush3.bf16.msra.mxu0 %v5393_v5  ;;  %v5422_v5 = vld [vmem:[#allocation2 + $0x168] sm:$0xff]  }
 0x82a   :  { %5134 = vmatprep.subr.bf16.mxu0 %v7477_v58 }
 0x8df   :  { %v3013_v8 = vpop.f32.mrb[56].mxu0 }
 0x8e0   :  { %v5092_v32 = vpop.f32.mrb[57].mxu0  ;;  %v3044_v34 = vsel %vm743_vm3, %v3042_v42, %v3013_v8  ;;  %v3021_v25 = vrot.slane %v3013_v8, 7  ;;  %v3240_v11 = vrot.slane %v3013_v8, 1  ;;  %v3351_v10 = vrot.slane %v3013_v8, 2  ;;  %v5424_v42 = vld [vmem:[#allocation2 + $0x170] sm:$0xff]  }
 0x8e1   :  { %v3016_v18 = vpop.f32.mrb[58].mxu0  ;;  %v3045_v45 = vpack.c.bf16 %v3044_v34, %v3044_v34  ;;  %v3462_v50 = vrot.slane %v3013_v8, 3  ;;  %v3573_v0 = vrot.slane %v3013_v8, 4  ;;  %v3684_v12 = vrot.slane %v3013_v8, 5  ;;  %v5429_v34 = vld [vmem:[#allocation2 + $0x188] sm:$0xff]  }
 0x8e2   :  { %v3905_v13 = vrot.slane %v3016_v18, 7  ;;  %v7283_v3 = vsel %vm743_vm3, %v4015_v38, %v3016_v18  ;;  %v3023_v9 = vsel %vm743_vm3, %v7181_v29, %v3021_v25  ;;  %v5093_v41 = vpop.f32.mrb[59].mxu0  ;;  %v7288_v63 = vsel %vm743_vm3, %v3238_v36, %v3240_v11  ;;  %v5399_v29 = vld [vmem:[#allocation2 + $0x90] sm:$0xff]   ;;  %v5425_v38 = vld [vmem:[#allocation2 + $0x138] sm:$0xff]   ;;  %v5427_v36 = vld [vmem:[#allocation2 + $0x180] sm:$0xff]  }
 0x8e3   :  { %5111 = vmatmul.mubr.bf16.vlgmr.msra.gmra.mrb[60].mxu0 %v3045_v45  ;;  %v3024_v48 = vpack.c.bf16 %v3023_v9, %v3023_v9  ;;  %v7291_v57 = vsel %vm743_vm3, %v3349_v16, %v3351_v10  ;;  %v7302_v39 = vsel %vm743_vm3, %v3460_v23, %v3462_v50  ;;  %v3795_v46 = vrot.slane %v3013_v8, 6  ;;  %v5426_v8 = vld [vmem:[#allocation2 + $0x178] sm:$0xff]   ;;  %v5428_v23 = vld [vmem:[#allocation2 + $0x1c0] sm:$0xff]   ;;  %v5431_v25 = vld [vmem:[#allocation2 + $0x190] sm:$0xff]  }
 0x8e4   :  { %v7297_v30 = vsel %vm743_vm3, %v7183_v21, %v3905_v13  ;;  %5135 = vmatpush3.bf16.msra.mxu0 %v5395_v20  ;;  %5150 = vmatprep.mubr.msk.bf16.mxu0 %vm5542_vm4, %v7477_v58  ;;  %v7307_v61 = vsel %vm743_vm3, %v3571_v44, %v3573_v0  ;;  %v5398_v21 = vld [vmem:[#allocation2 + $0xc8] sm:$0xff]   ;;  %v7312_v43 = vsel %vm743_vm3, %v3682_v27, %v3684_v12  ;;  %v5432_v11 = vld [vmem:[#allocation2 + $0x1d0] sm:$0xff]   ;;  %v5433_v10 = vld [vmem:[#allocation2 + $0x198] sm:$0xff]  }
 0x8e5   :  { %5131 = vmatmul.mubr.bf16.vlgmr.msra.gmra.mrb[68].mxu1 %v3024_v48  ;;  %5136 = vmatprep.subr.bf16.mxu0 %v7477_v58  ;;  %v7315_v6 = vsel %vm743_vm3, %v3793_v49, %v3795_v46  ;;  %v3243_v52 = vpack.c.bf16 %v7288_v63, %v7288_v63  ;;  %v3354_v22 = vpack.c.bf16 %v7291_v57, %v7291_v57  ;;  %v5430_v20 = vld [vmem:[#allocation2 + $0x1c8] sm:$0xff]   ;;  %v5434_v18 = vld [vmem:[#allocation2 + $0x1d8] sm:$0xff]   ;;  %v5435_v45 = vld [vmem:[#allocation2 + $0x1a0] sm:$0xff]  }
 0x8e6   :  { %5155 = vmatpush3.bf16.msra.mxu1 %v5396_v56  ;;  %5170 = vmatprep.mubr.msk.bf16.mxu1 %vm5542_vm4, %v7477_v58  ;;  %v3465_v16 = vpack.c.bf16 %v7302_v39, %v7302_v39  ;;  %v3576_v32 = vpack.c.bf16 %v7307_v61, %v7307_v61  ;;  %v5436_v50 = vld [vmem:[#allocation2 + $0x1e0] sm:$0xff]   ;;  %v5437_v0 = vld [vmem:[#allocation2 + $0x1a8] sm:$0xff]   ;;  %v5439_v13 = vld [vmem:[#allocation2 + $0x1b0] sm:$0xff]   ;;  %v3687_v48 = vpack.c.bf16 %v7312_v43, %v7312_v43 }
 0x8e7   :  { %5156 = vmatprep.subr.bf16.mxu1 %v7477_v58  ;;  %v5438_v12 = vld [vmem:[#allocation2 + $0x1e8] sm:$0xff]   ;;  %v5440_v9 = vld [vmem:[#allocation2 + $0x1f0] sm:$0xff]   ;;  %v5441_v56 = vld [vmem:[#allocation2 + $0x1b8] sm:$0xff]   ;;  %v3798_v44 = vpack.c.bf16 %v7315_v6, %v7315_v6 }
 0x8e8   :  { %5137 = vmatpush3.bf16.msra.mxu0 %v5397_v40  ;;  %v5442_v41 = vld [vmem:[#allocation2 + $0x1f8] sm:$0xff]   ;;  %v5443_v63 = vld [vmem:[#allocation2 + $0x200] sm:$0xff]   ;;  %v5445_v27 = vld [vmem:[#allocation2 + $0x208] sm:$0xff]  }
 0x8e9   :  { %5138 = vmatprep.subr.bf16.mxu0 %v7477_v58  ;;  %v5444_v57 = vld [vmem:[#allocation2 + $0x240] sm:$0xff]   ;;  %v5446_v40 = vld [vmem:[#allocation2 + $0x248] sm:$0xff]   ;;  %v5447_v39 = vld [vmem:[#allocation2 + $0x210] sm:$0xff]  }
 0x8ea   :  { %5157 = vmatpush3.bf16.msra.mxu1 %v5398_v21  ;;  %v5448_v49 = vld [vmem:[#allocation2 + $0x250] sm:$0xff]   ;;  %v5449_v46 = vld [vmem:[#allocation2 + $0x218] sm:$0xff]   ;;  %v5451_v21 = vld [vmem:[#allocation2 + $0x220] sm:$0xff]  }
 0x8eb   :  { %5158 = vmatprep.subr.bf16.mxu1 %v7477_v58  ;;  %v5450_v61 = vld [vmem:[#allocation2 + $0x258] sm:$0xff]   ;;  %v5452_v43 = vld [vmem:[#allocation2 + $0x260] sm:$0xff]   ;;  %v5453_v6 = vld [vmem:[#allocation2 + $0x228] sm:$0xff]  }
 0x8ec   :  { %5139 = vmatpush3.bf16.msra.mxu0 %v5399_v29  ;;  %v5454_v29 = vld [vmem:[#allocation2 + $0x268] sm:$0xff]  }
 0x8ed   :  { %5140 = vmatprep.subr.bf16.mxu0 %v7477_v58 }
 0x8ee   :  { %5159 = vmatpush3.bf16.msra.mxu1 %v5400_v60  ;;  %v5455_v60 = vld [vmem:[#allocation2 + $0x230] sm:$0xff]  }
 0x8ef   :  { %5160 = vmatprep.subr.bf16.mxu1 %v7477_v58 }
 0x8f0   :  { %5141 = vmatpush3.bf16.msra.mxu0 %v5401_v37  ;;  %v5456_v37 = vld [vmem:[#allocation2 + $0x270] sm:$0xff]  }
 0x8f1   :  { %5142 = vmatprep.subr.bf16.mxu0 %v7477_v58 }
 0x8f2   :  { %5161 = vmatpush3.bf16.msra.mxu1 %v5402_v14  ;;  %v5457_v14 = vld [vmem:[#allocation2 + $0x238] sm:$0xff]  }
 0x8f3   :  { %5162 = vmatprep.subr.bf16.mxu1 %v7477_v58 }
 0x8f4   :  { %5143 = vmatpush3.bf16.msra.mxu0 %v5403_v51  ;;  %v5458_v51 = vld [vmem:[#allocation2 + $0x278] sm:$0xff]  }
 0x8f5   :  { %5144 = vmatprep.subr.bf16.mxu0 %v7477_v58 }
 0x8f6   :  { %5163 = vmatpush3.bf16.msra.mxu1 %v5404_v28  ;;  %v3908_v28 = vpack.c.bf16 %v7297_v30, %v7297_v30  ;;  %v5460_v30 = vld [vmem:[%s7464_s14 + $0x8] sm:$0xff]  }
 0x8f7   :  { %5164 = vmatprep.subr.bf16.mxu1 %v7477_v58 }
 0x8f8   :  { %5145 = vmatpush3.bf16.msra.mxu0 %v5405_v1  ;;  %v4018_v1 = vpack.c.bf16 %v7283_v3, %v7283_v3  ;;  %v5461_v3 = vld [vmem:[%s7464_s14 + $0x10] sm:$0xff]  }
 0x8f9   :  { %5146 = vmatprep.subr.bf16.mxu0 %v7477_v58 }
 0x8fa   :  { %5165 = vmatpush3.bf16.msra.mxu1 %v5406_v15  ;;  %v5459_v15 = vld [vmem:[%s7464_s14] sm:$0xff]  }
 0x8fb   :  { %5166 = vmatprep.subr.bf16.mxu1 %v7477_v58 }
 0x8fc   :  { %5147 = vmatpush3.bf16.msra.mxu0 %v5407_v62  ;;  %v5462_v62 = vld [vmem:[%s7464_s14 + $0x18] sm:$0xff]  }
 0x8fd   :  { %5148 = vmatprep.subr.bf16.mxu0 %v7477_v58 }
 0x8fe   :  { %5167 = vmatpush3.bf16.msra.mxu1 %v5408_v24  ;;  %v5463_v24 = vld [vmem:[%s7464_s14 + $0x20] sm:$0xff]  }
 0x8ff   :  { %5168 = vmatprep.subr.bf16.mxu1 %v7477_v58 }
 0x900   :  { %5149 = vmatpush3.bf16.msra.mxu0 %v5409_v4 }
 0x901   :  { %5174 = vmatprep.subr.bf16.mxu0 %v7477_v58 }
 0x902   :  { %5169 = vmatpush3.bf16.msra.mxu1 %v5410_v35 }
 0x903   :  { %5151 = vmatmul.mubr.bf16.vlgmr.msra.gmra.mrb[64].mxu0 %v3243_v52  ;;  %5194 = vmatprep.subr.bf16.mxu1 %v7477_v58 }
 0x904   :  { %5175 = vmatpush3.bf16.msra.mxu0 %v5411_v59  ;;  %5190 = vmatprep.mubr.msk.bf16.mxu0 %vm5542_vm4, %v7477_v58  ;;  %v5464_v59 = vld [vmem:[%s7464_s14 + $0x28] sm:$0xff]  }
 0x905   :  { %5171 = vmatmul.mubr.bf16.vlgmr.msra.gmra.mrb[72].mxu1 %v3354_v22  ;;  %5176 = vmatprep.subr.bf16.mxu0 %v7477_v58 }
 0x906   :  { %5195 = vmatpush3.bf16.msra.mxu1 %v5412_v17  ;;  %5210 = vmatprep.mubr.msk.bf16.mxu1 %vm5542_vm4, %v7477_v58 }
 0x907   :  { %5196 = vmatprep.subr.bf16.mxu1 %v7477_v58 }
 0x908   :  { %5177 = vmatpush3.bf16.msra.mxu0 %v5413_v19 }
 0x909   :  { %5178 = vmatprep.subr.bf16.mxu0 %v7477_v58 }
 0x90a   :  { %5197 = vmatpush3.bf16.msra.mxu1 %v5414_v33 }
 0x90b   :  { %5198 = vmatprep.subr.bf16.mxu1 %v7477_v58 }
 0x90c   :  { %5179 = vmatpush3.bf16.msra.mxu0 %v5415_v55 }
 0x90d   :  { %5180 = vmatprep.subr.bf16.mxu0 %v7477_v58 }
 0x90e   :  { %5199 = vmatpush3.bf16.msra.mxu1 %v5416_v26 }
 0x90f   :  { %5200 = vmatprep.subr.bf16.mxu1 %v7477_v58 }
 0x910   :  { %5181 = vmatpush3.bf16.msra.mxu0 %v5417_v47  ;;  %v5465_v47 = vld [vmem:[%s7464_s14 + $0x30] sm:$0xff]  }
 0x911   :  { %5182 = vmatprep.subr.bf16.mxu0 %v7477_v58 }
 0x912   :  { %5201 = vmatpush3.bf16.msra.mxu1 %v5418_v53  ;;  %v5466_v53 = vld [vmem:[%s7464_s14 + $0x38] sm:$0xff]  }
 0x913   :  { %5202 = vmatprep.subr.bf16.mxu1 %v7477_v58 }
 0x914   :  { %5183 = vmatpush3.bf16.msra.mxu0 %v5419_v54 }
 0x915   :  { %5184 = vmatprep.subr.bf16.mxu0 %v7477_v58 }
 0x916   :  { %5203 = vmatpush3.bf16.msra.mxu1 %v5420_v31 }
 0x917   :  { %5204 = vmatprep.subr.bf16.mxu1 %v7477_v58 }
 0x918   :  { %5185 = vmatpush3.bf16.msra.mxu0 %v5421_v7 }
 0x919   :  { %5186 = vmatprep.subr.bf16.mxu0 %v7477_v58 }
 0x91a   :  { %5205 = vmatpush3.bf16.msra.mxu1 %v5422_v5 }
 0x91b   :  { %5206 = vmatprep.subr.bf16.mxu1 %v7477_v58 }
 0x91c   :  { %5187 = vmatpush3.bf16.msra.mxu0 %v5423_v2 }
 0x91d   :  { %5188 = vmatprep.subr.bf16.mxu0 %v7477_v58 }
 0x91e   :  { %5207 = vmatpush3.bf16.msra.mxu1 %v5424_v42 }
 0x91f   :  { %5208 = vmatprep.subr.bf16.mxu1 %v7477_v58 }
 0x920   :  { %5189 = vmatpush3.bf16.msra.mxu0 %v5425_v38 }
 0x921   :  { %5214 = vmatprep.subr.bf16.mxu0 %v7477_v58 }
 0x922   :  { %5209 = vmatpush3.bf16.msra.mxu1 %v5426_v8 }
 0x923   :  { %5191 = vmatmul.mubr.bf16.vlgmr.msra.gmra.mrb[68].mxu0 %v3465_v16  ;;  %5234 = vmatprep.subr.bf16.mxu1 %v7477_v58 }
 0x924   :  { %5215 = vmatpush3.bf16.msra.mxu0 %v5427_v36  ;;  %5230 = vmatprep.mubr.msk.bf16.mxu0 %vm5542_vm4, %v7477_v58 }
 0x925   :  { %5211 = vmatmul.mubr.bf16.vlgmr.msra.gmra.mrb[76].mxu1 %v3576_v32  ;;  %5216 = vmatprep.subr.bf16.mxu0 %v7477_v58 }
 0x926   :  { %5235 = vmatpush3.bf16.msra.mxu1 %v5428_v23  ;;  %5250 = vmatprep.mubr.msk.bf16.mxu1 %vm5542_vm4, %v7477_v58 }
 0x927   :  { %5236 = vmatprep.subr.bf16.mxu1 %v7477_v58 }
 0x928   :  { %5217 = vmatpush3.bf16.msra.mxu0 %v5429_v34 }
 0x929   :  { %5218 = vmatprep.subr.bf16.mxu0 %v7477_v58 }
 0x92a   :  { %5237 = vmatpush3.bf16.msra.mxu1 %v5430_v20 }
 0x92b   :  { %5238 = vmatprep.subr.bf16.mxu1 %v7477_v58 }
 0x92c   :  { %5219 = vmatpush3.bf16.msra.mxu0 %v5431_v25 }
 0x92d   :  { %5220 = vmatprep.subr.bf16.mxu0 %v7477_v58 }
 0x92e   :  { %5239 = vmatpush3.bf16.msra.mxu1 %v5432_v11 }
 0x92f   :  { %5240 = vmatprep.subr.bf16.mxu1 %v7477_v58 }
 0x930   :  { %5221 = vmatpush3.bf16.msra.mxu0 %v5433_v10 }
 0x931   :  { %5222 = vmatprep.subr.bf16.mxu0 %v7477_v58 }
 0x932   :  { %5241 = vmatpush3.bf16.msra.mxu1 %v5434_v18 }
 0x933   :  { %5242 = vmatprep.subr.bf16.mxu1 %v7477_v58 }
 0x934   :  { %5223 = vmatpush3.bf16.msra.mxu0 %v5435_v45 }
 0x935   :  { %5224 = vmatprep.subr.bf16.mxu0 %v7477_v58 }
 0x936   :  { %5243 = vmatpush3.bf16.msra.mxu1 %v5436_v50 }
 0x937   :  { %5244 = vmatprep.subr.bf16.mxu1 %v7477_v58 }
 0x938   :  { %5225 = vmatpush3.bf16.msra.mxu0 %v5437_v0 }
 0x939   :  { %5226 = vmatprep.subr.bf16.mxu0 %v7477_v58 }
 0x93a   :  { %5245 = vmatpush3.bf16.msra.mxu1 %v5438_v12 }
 0x93b   :  { %5246 = vmatprep.subr.bf16.mxu1 %v7477_v58 }
 0x93c   :  { %5227 = vmatpush3.bf16.msra.mxu0 %v5439_v13 }
 0x93d   :  { %5228 = vmatprep.subr.bf16.mxu0 %v7477_v58 }
 0x93e   :  { %5247 = vmatpush3.bf16.msra.mxu1 %v5440_v9 }
 0x93f   :  { %5248 = vmatprep.subr.bf16.mxu1 %v7477_v58 }
 0x940   :  { %5229 = vmatpush3.bf16.msra.mxu0 %v5441_v56 }
 0x941   :  { %5254 = vmatprep.subr.bf16.mxu0 %v7477_v58 }
 0x942   :  { %5249 = vmatpush3.bf16.msra.mxu1 %v5442_v41 }
 0x943   :  { %5231 = vmatmul.mubr.bf16.vlgmr.msra.gmra.mrb[72].mxu0 %v3687_v48  ;;  %5274 = vmatprep.subr.bf16.mxu1 %v7477_v58 }
 0x944   :  { %5255 = vmatpush3.bf16.msra.mxu0 %v5443_v63  ;;  %5270 = vmatprep.mubr.msk.bf16.mxu0 %vm5542_vm4, %v7477_v58 }
 0x945   :  { %5251 = vmatmul.mubr.bf16.vlgmr.msra.gmra.mrb[80].mxu1 %v3798_v44  ;;  %5256 = vmatprep.subr.bf16.mxu0 %v7477_v58 }
 0x946   :  { %5275 = vmatpush3.bf16.msra.mxu1 %v5444_v57  ;;  %5290 = vmatprep.mubr.msk.bf16.mxu1 %vm5542_vm4, %v7477_v58 }
 0x947   :  { %5276 = vmatprep.subr.bf16.mxu1 %v7477_v58 }
 0x948   :  { %5257 = vmatpush3.bf16.msra.mxu0 %v5445_v27 }
 0x949   :  { %5258 = vmatprep.subr.bf16.mxu0 %v7477_v58 }
 0x94a   :  { %5277 = vmatpush3.bf16.msra.mxu1 %v5446_v40 }
 0x94b   :  { %5278 = vmatprep.subr.bf16.mxu1 %v7477_v58 }
 0x94c   :  { %5259 = vmatpush3.bf16.msra.mxu0 %v5447_v39 }
 0x94d   :  { %5260 = vmatprep.subr.bf16.mxu0 %v7477_v58 }
 0x94e   :  { %5279 = vmatpush3.bf16.msra.mxu1 %v5448_v49 }
 0x94f   :  { %5280 = vmatprep.subr.bf16.mxu1 %v7477_v58 }
 0x950   :  { %5261 = vmatpush3.bf16.msra.mxu0 %v5449_v46  ;;  %v4453_v46 = vld [vmem:[%s7463_s13] ss:$0 sm:$0xff] }
 0x951   :  { %5262 = vmatprep.subr.bf16.mxu0 %v7477_v58 }
 0x952   :  { %5281 = vmatpush3.bf16.msra.mxu1 %v5450_v61 }
 0x953   :  { %5282 = vmatprep.subr.bf16.mxu1 %v7477_v58 }
 0x954   :  { %5263 = vmatpush3.bf16.msra.mxu0 %v5451_v21 }
 0x955   :  { %5264 = vmatprep.subr.bf16.mxu0 %v7477_v58 }
 0x956   :  { %5283 = vmatpush3.bf16.msra.mxu1 %v5452_v43 }
 0x957   :  { %5284 = vmatprep.subr.bf16.mxu1 %v7477_v58 }
 0x958   :  { %5265 = vmatpush3.bf16.msra.mxu0 %v5453_v6 }
 0x959   :  { %5266 = vmatprep.subr.bf16.mxu0 %v7477_v58 }
 0x95a   :  { %5285 = vmatpush3.bf16.msra.mxu1 %v5454_v29 }
 0x95b   :  { %5286 = vmatprep.subr.bf16.mxu1 %v7477_v58 }
 0x95c   :  { %5267 = vmatpush3.bf16.msra.mxu0 %v5455_v60 }
 0x95d   :  { %5268 = vmatprep.subr.bf16.mxu0 %v7477_v58 }
 0x95e   :  { %5287 = vmatpush3.bf16.msra.mxu1 %v5456_v37 }
 0x95f   :  { %5288 = vmatprep.subr.bf16.mxu1 %v7477_v58 }
 0x960   :  { %5269 = vmatpush3.bf16.msra.mxu0 %v5457_v14 }
 0x961   :  { %5294 = vmatprep.subr.bf16.mxu0 %v7477_v58 }
 0x962   :  { %5289 = vmatpush3.bf16.msra.mxu1 %v5458_v51  ;;  %v4454_v51 = vld [vmem:[%s7465_s15] ss:$0 sm:$0xff] }
 0x963   :  { %5271 = vmatmul.mubr.bf16.vlgmr.msra.gmra.mrb[76].mxu0 %v3908_v28 }
 0x964   :  { %5310 = vmatprep.mubr.msk.bf16.mxu0 %vm5542_vm4, %v7477_v58  ;;  %5295 = vmatpush3.bf16.msra.mxu0 %v5459_v15 }
 0x965   :  { %5291 = vmatmul.mubr.bf16.vlgmr.msra.gmra.mrb[84].mxu1 %v4018_v1  ;;  %5296 = vmatprep.subr.bf16.mxu0 %v7477_v58 }
 0x968   :  { %5297 = vmatpush3.bf16.msra.mxu0 %v5460_v30 }
 0x969   :  { %5298 = vmatprep.subr.bf16.mxu0 %v7477_v58 }
 0x96c   :  { %5299 = vmatpush3.bf16.msra.mxu0 %v5461_v3 }
 0x96d   :  { %5300 = vmatprep.subr.bf16.mxu0 %v7477_v58 }
 0x970   :  { %5301 = vmatpush3.bf16.msra.mxu0 %v5462_v62 }
 0x971   :  { %5302 = vmatprep.subr.bf16.mxu0 %v7477_v58 }
 0x974   :  { %5303 = vmatpush3.bf16.msra.mxu0 %v5463_v24  ;;  %v7478_v24 = vlaneseq }
 0x975   :  { %5304 = vmatprep.subr.bf16.mxu0 %v7477_v58 }
 0x978   :  { %5305 = vmatpush3.bf16.msra.mxu0 %v5464_v59 }
 0x979   :  { %5306 = vmatprep.subr.bf16.mxu0 %v7477_v58 }
 0x97c   :  { %5307 = vmatpush3.bf16.msra.mxu0 %v5465_v47 }
 0x97d   :  { %5308 = vmatprep.subr.bf16.mxu0 %v7477_v58 }
 0x980   :  { %5309 = vmatpush3.bf16.msra.mxu0 %v5466_v53 }
 0x9b6   :  { %v3144_v4 = vpop.f32.mrb[60].mxu0 }
 0x9b7   :  { %v5112_v35 = vpop.f32.mrb[61].mxu0 }
 0x9b8   :  { %v3147_v52 = vpop.f32.mrb[62].mxu0  ;;  %v3232_v17 = vpop.f32.mrb[68].mxu1 }
 0x9b9   :  { %v3233_v22 = vadd.f32 %v3232_v17, %v3144_v4  ;;  %v5113_v19 = vpop.f32.mrb[63].mxu0  ;;  %v5132_v33 = vpop.f32.mrb[69].mxu1  ;;  %v4246_v4 = vand.u32 127, %v7478_v24 }
 0x9ba   :  { %v3235_v55 = vpop.f32.mrb[70].mxu1 }
 0x9bb   :  { %v5133_v26 = vpop.f32.mrb[71].mxu1 }
 0x9d6   :  { %v3342_v54 = vpop.f32.mrb[64].mxu0 }
 0x9d7   :  { %v3348_v31 = vadd.f32 %v3342_v54, %v3233_v22  ;;  %v5152_v7 = vpop.f32.mrb[65].mxu0 }
 0x9d8   :  { %v3345_v5 = vpop.f32.mrb[66].mxu0  ;;  %v3453_v2 = vpop.f32.mrb[72].mxu1 }
 0x9d9   :  { %v3459_v42 = vadd.f32 %v3453_v2, %v3348_v31  ;;  %v5153_v38 = vpop.f32.mrb[67].mxu0  ;;  %v5172_v8 = vpop.f32.mrb[73].mxu1 }
 0x9da   :  { %v3456_v36 = vpop.f32.mrb[74].mxu1 }
 0x9db   :  { %v5173_v16 = vpop.f32.mrb[75].mxu1 }
 0x9f6   :  { %v3564_v23 = vpop.f32.mrb[68].mxu0 }
 0x9f7   :  { %v3570_v32 = vadd.f32 %v3564_v23, %v3459_v42  ;;  %v5192_v34 = vpop.f32.mrb[69].mxu0 }
 0x9f8   :  { %v3567_v20 = vpop.f32.mrb[70].mxu0  ;;  %v3675_v25 = vpop.f32.mrb[76].mxu1 }
 0x9f9   :  { %v3681_v11 = vadd.f32 %v3675_v25, %v3570_v32  ;;  %v5193_v10 = vpop.f32.mrb[71].mxu0  ;;  %v5212_v18 = vpop.f32.mrb[77].mxu1 }
 0x9fa   :  { %v3678_v58 = vpop.f32.mrb[78].mxu1 }
 0x9fb   :  { %v5213_v45 = vpop.f32.mrb[79].mxu1 }
 0xa16   :  { %v3786_v50 = vpop.f32.mrb[72].mxu0 }
 0xa17   :  { %v3792_v0 = vadd.f32 %v3786_v50, %v3681_v11  ;;  %v5232_v12 = vpop.f32.mrb[73].mxu0 }
 0xa18   :  { %v3789_v13 = vpop.f32.mrb[74].mxu0  ;;  %v3897_v9 = vpop.f32.mrb[80].mxu1 }
 0xa19   :  { %v3903_v56 = vadd.f32 %v3897_v9, %v3792_v0  ;;  %v5233_v41 = vpop.f32.mrb[75].mxu0  ;;  %v5252_v63 = vpop.f32.mrb[81].mxu1 }
 0xa1a   :  { %v3900_v48 = vpop.f32.mrb[82].mxu1 }
 0xa1b   :  { %v5253_v57 = vpop.f32.mrb[83].mxu1 }
 0xa36   :  { %v4007_v44 = vpop.f32.mrb[76].mxu0 }
 0xa37   :  { %v4013_v27 = vadd.f32 %v4007_v44, %v3903_v56  ;;  %v5272_v40 = vpop.f32.mrb[77].mxu0 }
 0xa38   :  { %v4010_v39 = vpop.f32.mrb[78].mxu0  ;;  %v4117_v49 = vpop.f32.mrb[84].mxu1 }
 0xa39   :  { %v4123_v61 = vadd.f32 %v4117_v49, %v4013_v27  ;;  %v5273_v21 = vpop.f32.mrb[79].mxu0  ;;  %v5292_v43 = vpop.f32.mrb[85].mxu1 }
 0xa3a   :  { %v4120_v6 = vpop.f32.mrb[86].mxu1 }
 0xa3b   :  { %v4131_v29 = vadd.f32 %v4453_v46, %v4123_v61  ;;  %v5293_v60 = vpop.f32.mrb[87].mxu1 }
 0xa3d   :  { %v4132_v37 = vmax.f32 %v4131_v29, 0.0 }
 0xa3f   :  { %v4133_v14 = vpack.c.bf16 %v4132_v37, %v4132_v37 }
 0xa41   :  { %5311 = vmatmul.mubr.bf16.vlgmr.msra.gmra.mrb[80].mxu0 %v4133_v14 }
 0xb14   :  { %v4239_v28 = vpop.f32.mrb[80].mxu0 }
 0xb15   :  { %v4240_v1 = vadd.f32 %v4454_v51, %v4239_v28  ;;  %v5312_v15 = vpop.f32.mrb[81].mxu0 }
 0xb16   :  { %v4242_v30 = vpop.f32.mrb[82].mxu0 }
 0xb17   :  { %v5313_v3 = vpop.f32.mrb[83].mxu0  ;;  %v4248_v62 = vsel %vm4247_vm9, %v4240_v1, -inf }
 0xb18   :  { %4249 = vmax.xlane.f32.xlu0 %v4248_v62 }
 0xba5   :  { %v4250_v35 = vpop.xlane.xlu0 %4249 }
 0xba6   :  { %vm4251_vm10 = vcmp.eq.f32.partialorder %v4240_v1, %v4250_v35 }
 0xba7   :  { %v4252_v59 = vsel %vm4251_vm10, %v4246_v4, 8 }
 0xba8   :  { %v4253_v52 = vsel %vm4247_vm9, %v4252_v59, 2147483647 }
 0xba9   :  { %v4255_v17 = vshra.s32 %v4253_v52, 16  ;;  %v4254_v19 = vand.u32 65535, %v4253_v52 }
 0xbab   :  { %v4257_v22 = vcvt.s32.f32 %v4255_v17  ;;  %v4256_v55 = vcvt.s32.f32 %v4254_v19 }
 0xbad   :  { %4258 = vmin.xlane.f32.xlu1 %v4257_v22 }
 0xc3a   :  { %v4259_v33 = vpop.xlane.xlu1 %4258 }
 0xc3b   :  { %vm4260_vm11 = vcmp.eq.f32.partialorder %v4257_v22, %v4259_v33  ;;  %v4265_v47 = vcvt.f32.s32 %v4259_v33 }
 0xc3c   :  { %v4261_v26 = vsel %vm4260_vm11, %v4256_v55, inf }
 0xc3d   :  { %4262 = vmin.xlane.f32.xlu0 %v4261_v26  ;;  %v4266_v54 = vshll.u32 %v4265_v47, 16 }
 0xcca   :  { %v4263_v53 = vpop.xlane.xlu0 %4262 }
 0xccb   :  { %v4264_v31 = vcvt.f32.s32 %v4263_v53 }
 0xccd   :  { %v4267_v7 = vadd.s32 %v4266_v54, %v4264_v31 }
 0xccf   :  { %4269 = vst.msk [vmem:[%s7466_s16] sm:$0x3] %vm4268_vm12, %v4267_v7 }
 0xcd0   :  { %4274 = vsyncpa [#allocation3], 1 }

</bundles_post_ra>
